<compile_context>
chip_gen: v7x
topology: tpu7x:2x2x1
jax: 0.10.0
libtpu: 0.0.40
codegen_flags: <defaults>
</compile_context>

<pallas_src>
import jax
import jax.numpy as jnp
from jax import lax
from jax.experimental import pallas as pl
from jax.experimental.pallas import tpu as pltpu

# Model dimensions (consistent with the module's __init__)
INPUT_CHANNELS = 4      # input_channels
HIDDEN_CHANNELS = 32    # hidden_channels
OUTPUT_CHANNELS = 4     # output_channels
WIDTH = 128             # CDEFunc.linear1 output width (fixed at 128 in the module)


def _cde_kernel(coef_ref, z0_ref, w1_ref, b1_ref, w2_ref, b2_ref,
                r_ref, wr_ref, br_ref, out_ref, z_sc):
    pb = pl.program_id(1)

    @pl.when(pb == 0)
    def _():
        z_sc[...] = z0_ref[...]

    # Weights resident in VMEM; hoist loads out of the piece loop.
    w1 = w1_ref[...]
    b1 = b1_ref[...]
    w2 = w2_ref[...]
    b2 = b2_ref[...]
    r = r_ref[...]

    CH = r_ref.shape[0]          # C * H
    TP = coef_ref.shape[0]       # pieces per block (static)

    def vf(z, dxt):
        # CDEFunc: tanh(linear2(relu(linear1(z)))) flattened as (B, H*C), then
        # dz[b, h] = sum_c flat[b, h*C + c] * dX[b, c]
        #          = ((flat * dxt) @ R)[b, h]   with R[j, h] = (j // C == h).
        h1 = jnp.maximum(
            jnp.dot(z, w1, preferred_element_type=jnp.float32) + b1, 0.0)
        flat = jnp.tanh(
            jnp.dot(h1, w2, preferred_element_type=jnp.float32) + b2)
        return jnp.dot(flat * dxt, r, preferred_element_type=jnp.float32)

    def step(p, z):
        piece = coef_ref[p]                       # (BT, 3*CH)
        cb = piece[:, 0 * CH:1 * CH]              # b      (tiled per hidden unit)
        cc = piece[:, 1 * CH:2 * CH]              # 2c
        cd = piece[:, 2 * CH:3 * CH]              # 3d
        # dX/dt(frac) = b + (2c + 3d*frac)*frac, evaluated once per knot.
        dxt0 = cb
        dxt_h = cb + (cc + 0.5 * cd) * 0.5
        dxt1 = cb + cc + cd
        # One RK4 step across this knot interval (step size h = 1).
        k1 = vf(z, dxt0)
        k2 = vf(z + 0.5 * k1, dxt_h)
        k3 = vf(z + 0.5 * k2, dxt_h)
        k4 = vf(z + k3, dxt1)
        return z + (k1 + 2.0 * k2 + 2.0 * k3 + k4) * (1.0 / 6.0)

    unroll = TP if TP <= 8 else 4
    z_new = lax.fori_loop(0, TP, step, z_sc[...], unroll=unroll)
    z_sc[...] = z_new

    @pl.when(pb == pl.num_programs(1) - 1)
    def _():
        # pred_y = readout(z_T)
        out_ref[...] = (jnp.dot(z_new, wr_ref[...],
                                preferred_element_type=jnp.float32)
                        + br_ref[...]).astype(out_ref.dtype)


def neural_cde_forward(coeffs, params):
    """coeffs: (B, P, 4*C) cubic-spline coefficients [a | b | 2c | 3d]."""
    B, P, FC = coeffs.shape
    C = FC // 4
    H = HIDDEN_CHANNELS
    CH = C * H
    wi, bi, w1, b1, w2, b2, wr, br = params

    # z0 = initial(X0), X0 = X.evaluate(0) = a of the first piece.  Tiny one-off
    # matmul outside the latency-critical kernel.
    z0 = coeffs[:, 0, 0:C] @ wi + bi                        # (B, H)

    # Pre-tile the dX/dt coefficients to width C*H so the in-kernel channel
    # expansion is a VPU FMA (tiled[b, p, h*C + c] == coef[b, p, c]), and pack
    # b / 2c / 3d into one time-major slab -> a single DMA stream per block.
    def tile_ch(x):                                         # (B, P, C) -> (B, P, C*H)
        return jnp.tile(x, (1, 1, H))
    slab = jnp.concatenate(
        [tile_ch(coeffs[:, :, 1 * C:2 * C]),
         tile_ch(coeffs[:, :, 2 * C:3 * C]),
         tile_ch(coeffs[:, :, 3 * C:4 * C])], axis=-1)      # (B, P, 3*CH)
    slab = jnp.transpose(slab, (1, 0, 2))                   # (P, B, 3*CH)

    # Reduction matrix for the (B,H,C)x(B,C) contraction: R[j, h] = (j // C == h).
    j = jnp.arange(CH)
    R = (j[:, None] // C == jnp.arange(H)[None, :]).astype(jnp.float32)  # (CH, H)

    # Many spline pieces per grid step; pad the piece axis with zeros (zero
    # dX/dt => RK4 no-op) so the in-kernel loop bound stays static.
    TP = min(P, 64)
    npb = -(-P // TP)
    P_pad = npb * TP
    if P_pad != P:
        slab = jnp.concatenate(
            [slab, jnp.zeros((P_pad - P, B, 3 * CH), slab.dtype)], axis=0)

    # Batch tiles map onto the 'parallel' grid axis (megacore on v7x for big B).
    BT = 128 if (B % 128 == 0) else B
    nbt = B // BT

    def full(arr):
        return pl.BlockSpec(arr.shape, lambda b, pb: (0, 0))

    out = pl.pallas_call(
        _cde_kernel,
        out_shape=jax.ShapeDtypeStruct((B, OUTPUT_CHANNELS), jnp.float32),
        grid_spec=pltpu.PrefetchScalarGridSpec(
            num_scalar_prefetch=0,
            grid=(nbt, npb),
            in_specs=[pl.BlockSpec((TP, BT, 3 * CH), lambda b, pb: (pb, b, 0)),
                      pl.BlockSpec((BT, H), lambda b, pb: (b, 0))]
                     + [full(x) for x in (w1, b1, w2, b2, R, wr, br)],
            out_specs=pl.BlockSpec((BT, OUTPUT_CHANNELS), lambda b, pb: (b, 0)),
            scratch_shapes=[pltpu.VMEM((BT, H), jnp.float32)],
        ),
        compiler_params=pltpu.CompilerParams(
            dimension_semantics=("parallel", "arbitrary")),
    )(slab, z0, w1, b1, w2, b2, R, wr, br)
    return out


def reference_forward(coeffs, params):
    """Pure-JAX mirror of the kernel math (same fixed-step RK4)."""
    wi, bi, w1, b1, w2, b2, wr, br = params
    B, P, FC = coeffs.shape
    C = FC // 4
    H = HIDDEN_CHANNELS
    ca = coeffs[:, :, 0 * C:1 * C]
    cb = coeffs[:, :, 1 * C:2 * C]
    cc = coeffs[:, :, 2 * C:3 * C]
    cd = coeffs[:, :, 3 * C:4 * C]

    def f(z):
        h1 = jnp.maximum(z @ w1 + b1, 0.0)
        flat = jnp.tanh(h1 @ w2 + b2)
        return flat.reshape(B, H, C)

    z = ca[:, 0] @ wi + bi
    for p in range(P):
        def dXdt(frac):
            return cb[:, p] + (cc[:, p] + cd[:, p] * frac) * frac

        def vf(zz, dx):
            return jnp.einsum('bhc,bc->bh', f(zz), dx)

        d0, dh, d1 = dXdt(0.0), dXdt(0.5), dXdt(1.0)
        k1 = vf(z, d0)
        k2 = vf(z + 0.5 * k1, dh)
        k3 = vf(z + 0.5 * k2, dh)
        k4 = vf(z + k3, d1)
        z = z + (k1 + 2.0 * k2 + 2.0 * k3 + k4) / 6.0
    return z @ wr + br


def init_params(key):
    """Deterministic PyTorch-Linear-style init (uniform +/- 1/sqrt(fan_in))."""
    ks = jax.random.split(key, 8)

    def lin(kw, kb, fan_in, fan_out):
        bound = 1.0 / (fan_in ** 0.5)
        w = jax.random.uniform(kw, (fan_in, fan_out), jnp.float32, -bound, bound)
        b = jax.random.uniform(kb, (1, fan_out), jnp.float32, -bound, bound)
        return w, b

    wi, bi = lin(ks[0], ks[1], INPUT_CHANNELS, HIDDEN_CHANNELS)          # initial
    w1, b1 = lin(ks[2], ks[3], HIDDEN_CHANNELS, WIDTH)                   # func.linear1
    w2, b2 = lin(ks[4], ks[5], WIDTH, INPUT_CHANNELS * HIDDEN_CHANNELS)  # func.linear2
    wr, br = lin(ks[6], ks[7], HIDDEN_CHANNELS, OUTPUT_CHANNELS)         # readout
    return (wi, bi, w1, b1, w2, b2, wr, br)


if __name__ == "__main__":
    key = jax.random.PRNGKey(0)
    k_params, k_coeffs = jax.random.split(key)
    params = init_params(k_params)

    B, LENGTH = 8, 8                       # sequence length 8 -> 7 spline pieces
    coeffs = 0.1 * jax.random.normal(
        k_coeffs, (B, LENGTH - 1, 4 * INPUT_CHANNELS), jnp.float32)

    out = neural_cde_forward(coeffs, params)
    out = jax.block_until_ready(out)

    assert out.shape == (B, OUTPUT_CHANNELS)
    ref = reference_forward(coeffs, params)
    err = float(jnp.max(jnp.abs(out - ref)))
    # Default (bf16-pass) MXU precision is used now that the 'highest' config is
    # gone, so allow a modest tolerance vs. the XLA reference.
    assert err < 2e-2, f"mismatch vs reference: {err}"
    print("KERNEL_OK")
</pallas_src>

<mosaic_0001>
module attributes {stable_mosaic.version = 11 : i64} {
  func.func @_cde_kernel(%arg0: i32, %arg1: i32, %arg2: memref<7x8x384xf32, #tpu.memory_space<vmem>>, %arg3: memref<8x32xf32, #tpu.memory_space<vmem>>, %arg4: memref<32x128xf32, #tpu.memory_space<vmem>>, %arg5: memref<1x128xf32, #tpu.memory_space<vmem>>, %arg6: memref<128x128xf32, #tpu.memory_space<vmem>>, %arg7: memref<1x128xf32, #tpu.memory_space<vmem>>, %arg8: memref<128x32xf32, #tpu.memory_space<vmem>>, %arg9: memref<32x4xf32, #tpu.memory_space<vmem>>, %arg10: memref<1x4xf32, #tpu.memory_space<vmem>>, %arg11: memref<8x4xf32, #tpu.memory_space<vmem>>, %arg12: memref<8x32xf32, #tpu.memory_space<vmem>>) attributes {dimension_semantics = [#tpu.dimension_semantics<parallel>, #tpu.dimension_semantics<arbitrary>], iteration_bounds = array<i64: 1, 1>, scalar_prefetch = 0 : i64, scratch_operands = 1 : i64, tpu.core_type = #tpu.core_type<tc>, window_params = [{transform_indices = @transform_0, window_bounds = array<i64: 7, 8, 384>}, {transform_indices = @transform_1, window_bounds = array<i64: 8, 32>}, {pipeline_mode = #tpu.pipeline_mode<synchronous>, transform_indices = @transform_2, window_bounds = array<i64: 32, 128>}, {pipeline_mode = #tpu.pipeline_mode<synchronous>, transform_indices = @transform_3, window_bounds = array<i64: 1, 128>}, {pipeline_mode = #tpu.pipeline_mode<synchronous>, transform_indices = @transform_4, window_bounds = array<i64: 128, 128>}, {pipeline_mode = #tpu.pipeline_mode<synchronous>, transform_indices = @transform_5, window_bounds = array<i64: 1, 128>}, {pipeline_mode = #tpu.pipeline_mode<synchronous>, transform_indices = @transform_6, window_bounds = array<i64: 128, 32>}, {pipeline_mode = #tpu.pipeline_mode<synchronous>, transform_indices = @transform_7, window_bounds = array<i64: 32, 4>}, {pipeline_mode = #tpu.pipeline_mode<synchronous>, transform_indices = @transform_8, window_bounds = array<i64: 1, 4>}, {transform_indices = @transform_9, window_bounds = array<i64: 8, 4>}]} {
    %c0_i32 = arith.constant 0 : i32
    %0 = arith.cmpi eq, %arg1, %c0_i32 : i32
    %1 = arith.extui %0 : i1 to i32
    %c0_i32_0 = arith.constant 0 : i32
    %2 = arith.cmpi ne, %1, %c0_i32_0 : i32
    scf.if %2 {
      %c0_191 = arith.constant 0 : index
      %c0_192 = arith.constant 0 : index
      %538 = vector.load %arg3[%c0_191, %c0_192] : memref<8x32xf32, #tpu.memory_space<vmem>>, vector<8x32xf32>
      %c0_193 = arith.constant 0 : index
      %c0_194 = arith.constant 0 : index
      %539 = vector.load %arg12[%c0_193, %c0_194] : memref<8x32xf32, #tpu.memory_space<vmem>>, vector<8x32xf32>
      tpu.vector_store %arg12[%c0_193, %c0_194], %538 {strides = array<i32>} : memref<8x32xf32, #tpu.memory_space<vmem>>, vector<8x32xf32>,
    } else {
    }
    %c0 = arith.constant 0 : index
    %c0_1 = arith.constant 0 : index
    %3 = vector.load %arg4[%c0, %c0_1] : memref<32x128xf32, #tpu.memory_space<vmem>>, vector<32x128xf32>
    %c0_2 = arith.constant 0 : index
    %c0_3 = arith.constant 0 : index
    %4 = vector.load %arg5[%c0_2, %c0_3] : memref<1x128xf32, #tpu.memory_space<vmem>>, vector<1x128xf32>
    %c0_4 = arith.constant 0 : index
    %c0_5 = arith.constant 0 : index
    %5 = vector.load %arg6[%c0_4, %c0_5] : memref<128x128xf32, #tpu.memory_space<vmem>>, vector<128x128xf32>
    %c0_6 = arith.constant 0 : index
    %c0_7 = arith.constant 0 : index
    %6 = vector.load %arg7[%c0_6, %c0_7] : memref<1x128xf32, #tpu.memory_space<vmem>>, vector<1x128xf32>
    %c0_8 = arith.constant 0 : index
    %c0_9 = arith.constant 0 : index
    %7 = vector.load %arg8[%c0_8, %c0_9] : memref<128x32xf32, #tpu.memory_space<vmem>>, vector<128x32xf32>
    %c0_10 = arith.constant 0 : index
    %c0_11 = arith.constant 0 : index
    %8 = vector.load %arg12[%c0_10, %c0_11] : memref<8x32xf32, #tpu.memory_space<vmem>>, vector<8x32xf32>
    %c0_i32_12 = arith.constant 0 : i32
    %9 = arith.index_cast %c0_i32_12 : i32 to index
    %c0_13 = arith.constant 0 : index
    %c0_14 = arith.constant 0 : index
    %10 = vector.load %arg2[%9, %c0_13, %c0_14] : memref<7x8x384xf32, #tpu.memory_space<vmem>>, vector<1x8x384xf32>
    %11 = vector.shape_cast %10 : vector<1x8x384xf32> to vector<8x384xf32>
    %12 = vector.extract_strided_slice %11 {offsets = [0, 0], sizes = [8, 128], strides = [1, 1]} : vector<8x384xf32> to vector<8x128xf32>
    %13 = vector.extract_strided_slice %11 {offsets = [0, 128], sizes = [8, 128], strides = [1, 1]} : vector<8x384xf32> to vector<8x128xf32>
    %14 = vector.extract_strided_slice %11 {offsets = [0, 256], sizes = [8, 128], strides = [1, 1]} : vector<8x384xf32> to vector<8x128xf32>
    %cst = arith.constant 5.000000e-01 : f32
    %15 = vector.broadcast %cst : f32 to vector<8x128xf32>
    %16 = arith.mulf %15, %14 : vector<8x128xf32>
    %17 = arith.addf %13, %16 : vector<8x128xf32>
    %cst_15 = arith.constant 5.000000e-01 : f32
    %18 = vector.broadcast %cst_15 : f32 to vector<8x128xf32>
    %19 = arith.mulf %17, %18 : vector<8x128xf32>
    %20 = arith.addf %12, %19 : vector<8x128xf32>
    %21 = arith.addf %12, %13 : vector<8x128xf32>
    %22 = arith.addf %21, %14 : vector<8x128xf32>
    %cst_16 = arith.constant dense<0.000000e+00> : vector<8x128xf32>
    %23 = tpu.matmul %8, %3, %cst_16 {dimension_numbers = #tpu.dot_dimension_numbers<[1], [0], [0], [1], [0, 0, 1, 1], [], []>} : vector<8x32xf32>, vector<32x128xf32>, vector<8x128xf32> -> vector<8x128xf32>
    %24 = vector.broadcast %4 : vector<1x128xf32> to vector<8x128xf32>
    %25 = arith.addf %23, %24 : vector<8x128xf32>
    %cst_17 = arith.constant 0.000000e+00 : f32
    %26 = vector.broadcast %cst_17 : f32 to vector<8x128xf32>
    %27 = arith.maximumf %25, %26 : vector<8x128xf32>
    %cst_18 = arith.constant dense<0.000000e+00> : vector<8x128xf32>
    %28 = tpu.matmul %27, %5, %cst_18 {dimension_numbers = #tpu.dot_dimension_numbers<[1], [0], [0], [1], [0, 0, 1, 1], [], []>} : vector<8x128xf32>, vector<128x128xf32>, vector<8x128xf32> -> vector<8x128xf32>
    %29 = vector.broadcast %6 : vector<1x128xf32> to vector<8x128xf32>
    %30 = arith.addf %28, %29 : vector<8x128xf32>
    %31 = math.tanh %30 : vector<8x128xf32>
    %32 = arith.mulf %31, %12 : vector<8x128xf32>
    %cst_19 = arith.constant dense<0.000000e+00> : vector<8x32xf32>
    %33 = tpu.matmul %32, %7, %cst_19 {dimension_numbers = #tpu.dot_dimension_numbers<[1], [0], [0], [1], [0, 0, 1, 1], [], []>} : vector<8x128xf32>, vector<128x32xf32>, vector<8x32xf32> -> vector<8x32xf32>
    %cst_20 = arith.constant 5.000000e-01 : f32
    %34 = vector.broadcast %cst_20 : f32 to vector<8x32xf32>
    %35 = arith.mulf %34, %33 : vector<8x32xf32>
    %36 = arith.addf %8, %35 : vector<8x32xf32>
    %cst_21 = arith.constant dense<0.000000e+00> : vector<8x128xf32>
    %37 = tpu.matmul %36, %3, %cst_21 {dimension_numbers = #tpu.dot_dimension_numbers<[1], [0], [0], [1], [0, 0, 1, 1], [], []>} : vector<8x32xf32>, vector<32x128xf32>, vector<8x128xf32> -> vector<8x128xf32>
    %38 = vector.broadcast %4 : vector<1x128xf32> to vector<8x128xf32>
    %39 = arith.addf %37, %38 : vector<8x128xf32>
    %cst_22 = arith.constant 0.000000e+00 : f32
    %40 = vector.broadcast %cst_22 : f32 to vector<8x128xf32>
    %41 = arith.maximumf %39, %40 : vector<8x128xf32>
    %cst_23 = arith.constant dense<0.000000e+00> : vector<8x128xf32>
    %42 = tpu.matmul %41, %5, %cst_23 {dimension_numbers = #tpu.dot_dimension_numbers<[1], [0], [0], [1], [0, 0, 1, 1], [], []>} : vector<8x128xf32>, vector<128x128xf32>, vector<8x128xf32> -> vector<8x128xf32>
    %43 = vector.broadcast %6 : vector<1x128xf32> to vector<8x128xf32>
    %44 = arith.addf %42, %43 : vector<8x128xf32>
    %45 = math.tanh %44 : vector<8x128xf32>
    %46 = arith.mulf %45, %20 : vector<8x128xf32>
    %cst_24 = arith.constant dense<0.000000e+00> : vector<8x32xf32>
    %47 = tpu.matmul %46, %7, %cst_24 {dimension_numbers = #tpu.dot_dimension_numbers<[1], [0], [0], [1], [0, 0, 1, 1], [], []>} : vector<8x128xf32>, vector<128x32xf32>, vector<8x32xf32> -> vector<8x32xf32>
    %cst_25 = arith.constant 5.000000e-01 : f32
    %48 = vector.broadcast %cst_25 : f32 to vector<8x32xf32>
    %49 = arith.mulf %48, %47 : vector<8x32xf32>
    %50 = arith.addf %8, %49 : vector<8x32xf32>
    %cst_26 = arith.constant dense<0.000000e+00> : vector<8x128xf32>
    %51 = tpu.matmul %50, %3, %cst_26 {dimension_numbers = #tpu.dot_dimension_numbers<[1], [0], [0], [1], [0, 0, 1, 1], [], []>} : vector<8x32xf32>, vector<32x128xf32>, vector<8x128xf32> -> vector<8x128xf32>
    %52 = vector.broadcast %4 : vector<1x128xf32> to vector<8x128xf32>
    %53 = arith.addf %51, %52 : vector<8x128xf32>
    %cst_27 = arith.constant 0.000000e+00 : f32
    %54 = vector.broadcast %cst_27 : f32 to vector<8x128xf32>
    %55 = arith.maximumf %53, %54 : vector<8x128xf32>
    %cst_28 = arith.constant dense<0.000000e+00> : vector<8x128xf32>
    %56 = tpu.matmul %55, %5, %cst_28 {dimension_numbers = #tpu.dot_dimension_numbers<[1], [0], [0], [1], [0, 0, 1, 1], [], []>} : vector<8x128xf32>, vector<128x128xf32>, vector<8x128xf32> -> vector<8x128xf32>
    %57 = vector.broadcast %6 : vector<1x128xf32> to vector<8x128xf32>
    %58 = arith.addf %56, %57 : vector<8x128xf32>
    %59 = math.tanh %58 : vector<8x128xf32>
    %60 = arith.mulf %59, %20 : vector<8x128xf32>
    %cst_29 = arith.constant dense<0.000000e+00> : vector<8x32xf32>
    %61 = tpu.matmul %60, %7, %cst_29 {dimension_numbers = #tpu.dot_dimension_numbers<[1], [0], [0], [1], [0, 0, 1, 1], [], []>} : vector<8x128xf32>, vector<128x32xf32>, vector<8x32xf32> -> vector<8x32xf32>
    %62 = arith.addf %8, %61 : vector<8x32xf32>
    %cst_30 = arith.constant dense<0.000000e+00> : vector<8x128xf32>
    %63 = tpu.matmul %62, %3, %cst_30 {dimension_numbers = #tpu.dot_dimension_numbers<[1], [0], [0], [1], [0, 0, 1, 1], [], []>} : vector<8x32xf32>, vector<32x128xf32>, vector<8x128xf32> -> vector<8x128xf32>
    %64 = vector.broadcast %4 : vector<1x128xf32> to vector<8x128xf32>
    %65 = arith.addf %63, %64 : vector<8x128xf32>
    %cst_31 = arith.constant 0.000000e+00 : f32
    %66 = vector.broadcast %cst_31 : f32 to vector<8x128xf32>
    %67 = arith.maximumf %65, %66 : vector<8x128xf32>
    %cst_32 = arith.constant dense<0.000000e+00> : vector<8x128xf32>
    %68 = tpu.matmul %67, %5, %cst_32 {dimension_numbers = #tpu.dot_dimension_numbers<[1], [0], [0], [1], [0, 0, 1, 1], [], []>} : vector<8x128xf32>, vector<128x128xf32>, vector<8x128xf32> -> vector<8x128xf32>
    %69 = vector.broadcast %6 : vector<1x128xf32> to vector<8x128xf32>
    %70 = arith.addf %68, %69 : vector<8x128xf32>
    %71 = math.tanh %70 : vector<8x128xf32>
    %72 = arith.mulf %71, %22 : vector<8x128xf32>
    %cst_33 = arith.constant dense<0.000000e+00> : vector<8x32xf32>
    %73 = tpu.matmul %72, %7, %cst_33 {dimension_numbers = #tpu.dot_dimension_numbers<[1], [0], [0], [1], [0, 0, 1, 1], [], []>} : vector<8x128xf32>, vector<128x32xf32>, vector<8x32xf32> -> vector<8x32xf32>
    %cst_34 = arith.constant 2.000000e+00 : f32
    %74 = vector.broadcast %cst_34 : f32 to vector<8x32xf32>
    %75 = arith.mulf %74, %47 : vector<8x32xf32>
    %76 = arith.addf %33, %75 : vector<8x32xf32>
    %cst_35 = arith.constant 2.000000e+00 : f32
    %77 = vector.broadcast %cst_35 : f32 to vector<8x32xf32>
    %78 = arith.mulf %77, %61 : vector<8x32xf32>
    %79 = arith.addf %76, %78 : vector<8x32xf32>
    %80 = arith.addf %79, %73 : vector<8x32xf32>
    %cst_36 = arith.constant 0.166666672 : f32
    %81 = vector.broadcast %cst_36 : f32 to vector<8x32xf32>
    %82 = arith.mulf %80, %81 : vector<8x32xf32>
    %83 = arith.addf %8, %82 : vector<8x32xf32>
    %c1_i32 = arith.constant 1 : i32
    %84 = arith.index_cast %c1_i32 : i32 to index
    %c0_37 = arith.constant 0 : index
    %c0_38 = arith.constant 0 : index
    %85 = vector.load %arg2[%84, %c0_37, %c0_38] : memref<7x8x384xf32, #tpu.memory_space<vmem>>, vector<1x8x384xf32>
    %86 = vector.shape_cast %85 : vector<1x8x384xf32> to vector<8x384xf32>
    %87 = vector.extract_strided_slice %86 {offsets = [0, 0], sizes = [8, 128], strides = [1, 1]} : vector<8x384xf32> to vector<8x128xf32>
    %88 = vector.extract_strided_slice %86 {offsets = [0, 128], sizes = [8, 128], strides = [1, 1]} : vector<8x384xf32> to vector<8x128xf32>
    %89 = vector.extract_strided_slice %86 {offsets = [0, 256], sizes = [8, 128], strides = [1, 1]} : vector<8x384xf32> to vector<8x128xf32>
    %cst_39 = arith.constant 5.000000e-01 : f32
    %90 = vector.broadcast %cst_39 : f32 to vector<8x128xf32>
    %91 = arith.mulf %90, %89 : vector<8x128xf32>
    %92 = arith.addf %88, %91 : vector<8x128xf32>
    %cst_40 = arith.constant 5.000000e-01 : f32
    %93 = vector.broadcast %cst_40 : f32 to vector<8x128xf32>
    %94 = arith.mulf %92, %93 : vector<8x128xf32>
    %95 = arith.addf %87, %94 : vector<8x128xf32>
    %96 = arith.addf %87, %88 : vector<8x128xf32>
    %97 = arith.addf %96, %89 : vector<8x128xf32>
    %cst_41 = arith.constant dense<0.000000e+00> : vector<8x128xf32>
    %98 = tpu.matmul %83, %3, %cst_41 {dimension_numbers = #tpu.dot_dimension_numbers<[1], [0], [0], [1], [0, 0, 1, 1], [], []>} : vector<8x32xf32>, vector<32x128xf32>, vector<8x128xf32> -> vector<8x128xf32>
    %99 = vector.broadcast %4 : vector<1x128xf32> to vector<8x128xf32>
    %100 = arith.addf %98, %99 : vector<8x128xf32>
    %cst_42 = arith.constant 0.000000e+00 : f32
    %101 = vector.broadcast %cst_42 : f32 to vector<8x128xf32>
    %102 = arith.maximumf %100, %101 : vector<8x128xf32>
    %cst_43 = arith.constant dense<0.000000e+00> : vector<8x128xf32>
    %103 = tpu.matmul %102, %5, %cst_43 {dimension_numbers = #tpu.dot_dimension_numbers<[1], [0], [0], [1], [0, 0, 1, 1], [], []>} : vector<8x128xf32>, vector<128x128xf32>, vector<8x128xf32> -> vector<8x128xf32>
    %104 = vector.broadcast %6 : vector<1x128xf32> to vector<8x128xf32>
    %105 = arith.addf %103, %104 : vector<8x128xf32>
    %106 = math.tanh %105 : vector<8x128xf32>
    %107 = arith.mulf %106, %87 : vector<8x128xf32>
    %cst_44 = arith.constant dense<0.000000e+00> : vector<8x32xf32>
    %108 = tpu.matmul %107, %7, %cst_44 {dimension_numbers = #tpu.dot_dimension_numbers<[1], [0], [0], [1], [0, 0, 1, 1], [], []>} : vector<8x128xf32>, vector<128x32xf32>, vector<8x32xf32> -> vector<8x32xf32>
    %cst_45 = arith.constant 5.000000e-01 : f32
    %109 = vector.broadcast %cst_45 : f32 to vector<8x32xf32>
    %110 = arith.mulf %109, %108 : vector<8x32xf32>
    %111 = arith.addf %83, %110 : vector<8x32xf32>
    %cst_46 = arith.constant dense<0.000000e+00> : vector<8x128xf32>
    %112 = tpu.matmul %111, %3, %cst_46 {dimension_numbers = #tpu.dot_dimension_numbers<[1], [0], [0], [1], [0, 0, 1, 1], [], []>} : vector<8x32xf32>, vector<32x128xf32>, vector<8x128xf32> -> vector<8x128xf32>
    %113 = vector.broadcast %4 : vector<1x128xf32> to vector<8x128xf32>
    %114 = arith.addf %112, %113 : vector<8x128xf32>
    %cst_47 = arith.constant 0.000000e+00 : f32
    %115 = vector.broadcast %cst_47 : f32 to vector<8x128xf32>
    %116 = arith.maximumf %114, %115 : vector<8x128xf32>
    %cst_48 = arith.constant dense<0.000000e+00> : vector<8x128xf32>
    %117 = tpu.matmul %116, %5, %cst_48 {dimension_numbers = #tpu.dot_dimension_numbers<[1], [0], [0], [1], [0, 0, 1, 1], [], []>} : vector<8x128xf32>, vector<128x128xf32>, vector<8x128xf32> -> vector<8x128xf32>
    %118 = vector.broadcast %6 : vector<1x128xf32> to vector<8x128xf32>
    %119 = arith.addf %117, %118 : vector<8x128xf32>
    %120 = math.tanh %119 : vector<8x128xf32>
    %121 = arith.mulf %120, %95 : vector<8x128xf32>
    %cst_49 = arith.constant dense<0.000000e+00> : vector<8x32xf32>
    %122 = tpu.matmul %121, %7, %cst_49 {dimension_numbers = #tpu.dot_dimension_numbers<[1], [0], [0], [1], [0, 0, 1, 1], [], []>} : vector<8x128xf32>, vector<128x32xf32>, vector<8x32xf32> -> vector<8x32xf32>
    %cst_50 = arith.constant 5.000000e-01 : f32
    %123 = vector.broadcast %cst_50 : f32 to vector<8x32xf32>
    %124 = arith.mulf %123, %122 : vector<8x32xf32>
    %125 = arith.addf %83, %124 : vector<8x32xf32>
    %cst_51 = arith.constant dense<0.000000e+00> : vector<8x128xf32>
    %126 = tpu.matmul %125, %3, %cst_51 {dimension_numbers = #tpu.dot_dimension_numbers<[1], [0], [0], [1], [0, 0, 1, 1], [], []>} : vector<8x32xf32>, vector<32x128xf32>, vector<8x128xf32> -> vector<8x128xf32>
    %127 = vector.broadcast %4 : vector<1x128xf32> to vector<8x128xf32>
    %128 = arith.addf %126, %127 : vector<8x128xf32>
    %cst_52 = arith.constant 0.000000e+00 : f32
    %129 = vector.broadcast %cst_52 : f32 to vector<8x128xf32>
    %130 = arith.maximumf %128, %129 : vector<8x128xf32>
    %cst_53 = arith.constant dense<0.000000e+00> : vector<8x128xf32>
    %131 = tpu.matmul %130, %5, %cst_53 {dimension_numbers = #tpu.dot_dimension_numbers<[1], [0], [0], [1], [0, 0, 1, 1], [], []>} : vector<8x128xf32>, vector<128x128xf32>, vector<8x128xf32> -> vector<8x128xf32>
    %132 = vector.broadcast %6 : vector<1x128xf32> to vector<8x128xf32>
    %133 = arith.addf %131, %132 : vector<8x128xf32>
    %134 = math.tanh %133 : vector<8x128xf32>
    %135 = arith.mulf %134, %95 : vector<8x128xf32>
    %cst_54 = arith.constant dense<0.000000e+00> : vector<8x32xf32>
    %136 = tpu.matmul %135, %7, %cst_54 {dimension_numbers = #tpu.dot_dimension_numbers<[1], [0], [0], [1], [0, 0, 1, 1], [], []>} : vector<8x128xf32>, vector<128x32xf32>, vector<8x32xf32> -> vector<8x32xf32>
    %137 = arith.addf %83, %136 : vector<8x32xf32>
    %cst_55 = arith.constant dense<0.000000e+00> : vector<8x128xf32>
    %138 = tpu.matmul %137, %3, %cst_55 {dimension_numbers = #tpu.dot_dimension_numbers<[1], [0], [0], [1], [0, 0, 1, 1], [], []>} : vector<8x32xf32>, vector<32x128xf32>, vector<8x128xf32> -> vector<8x128xf32>
    %139 = vector.broadcast %4 : vector<1x128xf32> to vector<8x128xf32>
    %140 = arith.addf %138, %139 : vector<8x128xf32>
    %cst_56 = arith.constant 0.000000e+00 : f32
    %141 = vector.broadcast %cst_56 : f32 to vector<8x128xf32>
    %142 = arith.maximumf %140, %141 : vector<8x128xf32>
    %cst_57 = arith.constant dense<0.000000e+00> : vector<8x128xf32>
    %143 = tpu.matmul %142, %5, %cst_57 {dimension_numbers = #tpu.dot_dimension_numbers<[1], [0], [0], [1], [0, 0, 1, 1], [], []>} : vector<8x128xf32>, vector<128x128xf32>, vector<8x128xf32> -> vector<8x128xf32>
    %144 = vector.broadcast %6 : vector<1x128xf32> to vector<8x128xf32>
    %145 = arith.addf %143, %144 : vector<8x128xf32>
    %146 = math.tanh %145 : vector<8x128xf32>
    %147 = arith.mulf %146, %97 : vector<8x128xf32>
    %cst_58 = arith.constant dense<0.000000e+00> : vector<8x32xf32>
    %148 = tpu.matmul %147, %7, %cst_58 {dimension_numbers = #tpu.dot_dimension_numbers<[1], [0], [0], [1], [0, 0, 1, 1], [], []>} : vector<8x128xf32>, vector<128x32xf32>, vector<8x32xf32> -> vector<8x32xf32>
    %cst_59 = arith.constant 2.000000e+00 : f32
    %149 = vector.broadcast %cst_59 : f32 to vector<8x32xf32>
    %150 = arith.mulf %149, %122 : vector<8x32xf32>
    %151 = arith.addf %108, %150 : vector<8x32xf32>
    %cst_60 = arith.constant 2.000000e+00 : f32
    %152 = vector.broadcast %cst_60 : f32 to vector<8x32xf32>
    %153 = arith.mulf %152, %136 : vector<8x32xf32>
    %154 = arith.addf %151, %153 : vector<8x32xf32>
    %155 = arith.addf %154, %148 : vector<8x32xf32>
    %cst_61 = arith.constant 0.166666672 : f32
    %156 = vector.broadcast %cst_61 : f32 to vector<8x32xf32>
    %157 = arith.mulf %155, %156 : vector<8x32xf32>
    %158 = arith.addf %83, %157 : vector<8x32xf32>
    %c2_i32 = arith.constant 2 : i32
    %159 = arith.index_cast %c2_i32 : i32 to index
    %c0_62 = arith.constant 0 : index
    %c0_63 = arith.constant 0 : index
    %160 = vector.load %arg2[%159, %c0_62, %c0_63] : memref<7x8x384xf32, #tpu.memory_space<vmem>>, vector<1x8x384xf32>
    %161 = vector.shape_cast %160 : vector<1x8x384xf32> to vector<8x384xf32>
    %162 = vector.extract_strided_slice %161 {offsets = [0, 0], sizes = [8, 128], strides = [1, 1]} : vector<8x384xf32> to vector<8x128xf32>
    %163 = vector.extract_strided_slice %161 {offsets = [0, 128], sizes = [8, 128], strides = [1, 1]} : vector<8x384xf32> to vector<8x128xf32>
    %164 = vector.extract_strided_slice %161 {offsets = [0, 256], sizes = [8, 128], strides = [1, 1]} : vector<8x384xf32> to vector<8x128xf32>
    %cst_64 = arith.constant 5.000000e-01 : f32
    %165 = vector.broadcast %cst_64 : f32 to vector<8x128xf32>
    %166 = arith.mulf %165, %164 : vector<8x128xf32>
    %167 = arith.addf %163, %166 : vector<8x128xf32>
    %cst_65 = arith.constant 5.000000e-01 : f32
    %168 = vector.broadcast %cst_65 : f32 to vector<8x128xf32>
    %169 = arith.mulf %167, %168 : vector<8x128xf32>
    %170 = arith.addf %162, %169 : vector<8x128xf32>
    %171 = arith.addf %162, %163 : vector<8x128xf32>
    %172 = arith.addf %171, %164 : vector<8x128xf32>
    %cst_66 = arith.constant dense<0.000000e+00> : vector<8x128xf32>
    %173 = tpu.matmul %158, %3, %cst_66 {dimension_numbers = #tpu.dot_dimension_numbers<[1], [0], [0], [1], [0, 0, 1, 1], [], []>} : vector<8x32xf32>, vector<32x128xf32>, vector<8x128xf32> -> vector<8x128xf32>
    %174 = vector.broadcast %4 : vector<1x128xf32> to vector<8x128xf32>
    %175 = arith.addf %173, %174 : vector<8x128xf32>
    %cst_67 = arith.constant 0.000000e+00 : f32
    %176 = vector.broadcast %cst_67 : f32 to vector<8x128xf32>
    %177 = arith.maximumf %175, %176 : vector<8x128xf32>
    %cst_68 = arith.constant dense<0.000000e+00> : vector<8x128xf32>
    %178 = tpu.matmul %177, %5, %cst_68 {dimension_numbers = #tpu.dot_dimension_numbers<[1], [0], [0], [1], [0, 0, 1, 1], [], []>} : vector<8x128xf32>, vector<128x128xf32>, vector<8x128xf32> -> vector<8x128xf32>
    %179 = vector.broadcast %6 : vector<1x128xf32> to vector<8x128xf32>
    %180 = arith.addf %178, %179 : vector<8x128xf32>
    %181 = math.tanh %180 : vector<8x128xf32>
    %182 = arith.mulf %181, %162 : vector<8x128xf32>
    %cst_69 = arith.constant dense<0.000000e+00> : vector<8x32xf32>
    %183 = tpu.matmul %182, %7, %cst_69 {dimension_numbers = #tpu.dot_dimension_numbers<[1], [0], [0], [1], [0, 0, 1, 1], [], []>} : vector<8x128xf32>, vector<128x32xf32>, vector<8x32xf32> -> vector<8x32xf32>
    %cst_70 = arith.constant 5.000000e-01 : f32
    %184 = vector.broadcast %cst_70 : f32 to vector<8x32xf32>
    %185 = arith.mulf %184, %183 : vector<8x32xf32>
    %186 = arith.addf %158, %185 : vector<8x32xf32>
    %cst_71 = arith.constant dense<0.000000e+00> : vector<8x128xf32>
    %187 = tpu.matmul %186, %3, %cst_71 {dimension_numbers = #tpu.dot_dimension_numbers<[1], [0], [0], [1], [0, 0, 1, 1], [], []>} : vector<8x32xf32>, vector<32x128xf32>, vector<8x128xf32> -> vector<8x128xf32>
    %188 = vector.broadcast %4 : vector<1x128xf32> to vector<8x128xf32>
    %189 = arith.addf %187, %188 : vector<8x128xf32>
    %cst_72 = arith.constant 0.000000e+00 : f32
    %190 = vector.broadcast %cst_72 : f32 to vector<8x128xf32>
    %191 = arith.maximumf %189, %190 : vector<8x128xf32>
    %cst_73 = arith.constant dense<0.000000e+00> : vector<8x128xf32>
    %192 = tpu.matmul %191, %5, %cst_73 {dimension_numbers = #tpu.dot_dimension_numbers<[1], [0], [0], [1], [0, 0, 1, 1], [], []>} : vector<8x128xf32>, vector<128x128xf32>, vector<8x128xf32> -> vector<8x128xf32>
    %193 = vector.broadcast %6 : vector<1x128xf32> to vector<8x128xf32>
    %194 = arith.addf %192, %193 : vector<8x128xf32>
    %195 = math.tanh %194 : vector<8x128xf32>
    %196 = arith.mulf %195, %170 : vector<8x128xf32>
    %cst_74 = arith.constant dense<0.000000e+00> : vector<8x32xf32>
    %197 = tpu.matmul %196, %7, %cst_74 {dimension_numbers = #tpu.dot_dimension_numbers<[1], [0], [0], [1], [0, 0, 1, 1], [], []>} : vector<8x128xf32>, vector<128x32xf32>, vector<8x32xf32> -> vector<8x32xf32>
    %cst_75 = arith.constant 5.000000e-01 : f32
    %198 = vector.broadcast %cst_75 : f32 to vector<8x32xf32>
    %199 = arith.mulf %198, %197 : vector<8x32xf32>
    %200 = arith.addf %158, %199 : vector<8x32xf32>
    %cst_76 = arith.constant dense<0.000000e+00> : vector<8x128xf32>
    %201 = tpu.matmul %200, %3, %cst_76 {dimension_numbers = #tpu.dot_dimension_numbers<[1], [0], [0], [1], [0, 0, 1, 1], [], []>} : vector<8x32xf32>, vector<32x128xf32>, vector<8x128xf32> -> vector<8x128xf32>
    %202 = vector.broadcast %4 : vector<1x128xf32> to vector<8x128xf32>
    %203 = arith.addf %201, %202 : vector<8x128xf32>
    %cst_77 = arith.constant 0.000000e+00 : f32
    %204 = vector.broadcast %cst_77 : f32 to vector<8x128xf32>
    %205 = arith.maximumf %203, %204 : vector<8x128xf32>
    %cst_78 = arith.constant dense<0.000000e+00> : vector<8x128xf32>
    %206 = tpu.matmul %205, %5, %cst_78 {dimension_numbers = #tpu.dot_dimension_numbers<[1], [0], [0], [1], [0, 0, 1, 1], [], []>} : vector<8x128xf32>, vector<128x128xf32>, vector<8x128xf32> -> vector<8x128xf32>
    %207 = vector.broadcast %6 : vector<1x128xf32> to vector<8x128xf32>
    %208 = arith.addf %206, %207 : vector<8x128xf32>
    %209 = math.tanh %208 : vector<8x128xf32>
    %210 = arith.mulf %209, %170 : vector<8x128xf32>
    %cst_79 = arith.constant dense<0.000000e+00> : vector<8x32xf32>
    %211 = tpu.matmul %210, %7, %cst_79 {dimension_numbers = #tpu.dot_dimension_numbers<[1], [0], [0], [1], [0, 0, 1, 1], [], []>} : vector<8x128xf32>, vector<128x32xf32>, vector<8x32xf32> -> vector<8x32xf32>
    %212 = arith.addf %158, %211 : vector<8x32xf32>
    %cst_80 = arith.constant dense<0.000000e+00> : vector<8x128xf32>
    %213 = tpu.matmul %212, %3, %cst_80 {dimension_numbers = #tpu.dot_dimension_numbers<[1], [0], [0], [1], [0, 0, 1, 1], [], []>} : vector<8x32xf32>, vector<32x128xf32>, vector<8x128xf32> -> vector<8x128xf32>
    %214 = vector.broadcast %4 : vector<1x128xf32> to vector<8x128xf32>
    %215 = arith.addf %213, %214 : vector<8x128xf32>
    %cst_81 = arith.constant 0.000000e+00 : f32
    %216 = vector.broadcast %cst_81 : f32 to vector<8x128xf32>
    %217 = arith.maximumf %215, %216 : vector<8x128xf32>
    %cst_82 = arith.constant dense<0.000000e+00> : vector<8x128xf32>
    %218 = tpu.matmul %217, %5, %cst_82 {dimension_numbers = #tpu.dot_dimension_numbers<[1], [0], [0], [1], [0, 0, 1, 1], [], []>} : vector<8x128xf32>, vector<128x128xf32>, vector<8x128xf32> -> vector<8x128xf32>
    %219 = vector.broadcast %6 : vector<1x128xf32> to vector<8x128xf32>
    %220 = arith.addf %218, %219 : vector<8x128xf32>
    %221 = math.tanh %220 : vector<8x128xf32>
    %222 = arith.mulf %221, %172 : vector<8x128xf32>
    %cst_83 = arith.constant dense<0.000000e+00> : vector<8x32xf32>
    %223 = tpu.matmul %222, %7, %cst_83 {dimension_numbers = #tpu.dot_dimension_numbers<[1], [0], [0], [1], [0, 0, 1, 1], [], []>} : vector<8x128xf32>, vector<128x32xf32>, vector<8x32xf32> -> vector<8x32xf32>
    %cst_84 = arith.constant 2.000000e+00 : f32
    %224 = vector.broadcast %cst_84 : f32 to vector<8x32xf32>
    %225 = arith.mulf %224, %197 : vector<8x32xf32>
    %226 = arith.addf %183, %225 : vector<8x32xf32>
    %cst_85 = arith.constant 2.000000e+00 : f32
    %227 = vector.broadcast %cst_85 : f32 to vector<8x32xf32>
    %228 = arith.mulf %227, %211 : vector<8x32xf32>
    %229 = arith.addf %226, %228 : vector<8x32xf32>
    %230 = arith.addf %229, %223 : vector<8x32xf32>
    %cst_86 = arith.constant 0.166666672 : f32
    %231 = vector.broadcast %cst_86 : f32 to vector<8x32xf32>
    %232 = arith.mulf %230, %231 : vector<8x32xf32>
    %233 = arith.addf %158, %232 : vector<8x32xf32>
    %c3_i32 = arith.constant 3 : i32
    %234 = arith.index_cast %c3_i32 : i32 to index
    %c0_87 = arith.constant 0 : index
    %c0_88 = arith.constant 0 : index
    %235 = vector.load %arg2[%234, %c0_87, %c0_88] : memref<7x8x384xf32, #tpu.memory_space<vmem>>, vector<1x8x384xf32>
    %236 = vector.shape_cast %235 : vector<1x8x384xf32> to vector<8x384xf32>
    %237 = vector.extract_strided_slice %236 {offsets = [0, 0], sizes = [8, 128], strides = [1, 1]} : vector<8x384xf32> to vector<8x128xf32>
    %238 = vector.extract_strided_slice %236 {offsets = [0, 128], sizes = [8, 128], strides = [1, 1]} : vector<8x384xf32> to vector<8x128xf32>
    %239 = vector.extract_strided_slice %236 {offsets = [0, 256], sizes = [8, 128], strides = [1, 1]} : vector<8x384xf32> to vector<8x128xf32>
    %cst_89 = arith.constant 5.000000e-01 : f32
    %240 = vector.broadcast %cst_89 : f32 to vector<8x128xf32>
    %241 = arith.mulf %240, %239 : vector<8x128xf32>
    %242 = arith.addf %238, %241 : vector<8x128xf32>
    %cst_90 = arith.constant 5.000000e-01 : f32
    %243 = vector.broadcast %cst_90 : f32 to vector<8x128xf32>
    %244 = arith.mulf %242, %243 : vector<8x128xf32>
    %245 = arith.addf %237, %244 : vector<8x128xf32>
    %246 = arith.addf %237, %238 : vector<8x128xf32>
    %247 = arith.addf %246, %239 : vector<8x128xf32>
    %cst_91 = arith.constant dense<0.000000e+00> : vector<8x128xf32>
    %248 = tpu.matmul %233, %3, %cst_91 {dimension_numbers = #tpu.dot_dimension_numbers<[1], [0], [0], [1], [0, 0, 1, 1], [], []>} : vector<8x32xf32>, vector<32x128xf32>, vector<8x128xf32> -> vector<8x128xf32>
    %249 = vector.broadcast %4 : vector<1x128xf32> to vector<8x128xf32>
    %250 = arith.addf %248, %249 : vector<8x128xf32>
    %cst_92 = arith.constant 0.000000e+00 : f32
    %251 = vector.broadcast %cst_92 : f32 to vector<8x128xf32>
    %252 = arith.maximumf %250, %251 : vector<8x128xf32>
    %cst_93 = arith.constant dense<0.000000e+00> : vector<8x128xf32>
    %253 = tpu.matmul %252, %5, %cst_93 {dimension_numbers = #tpu.dot_dimension_numbers<[1], [0], [0], [1], [0, 0, 1, 1], [], []>} : vector<8x128xf32>, vector<128x128xf32>, vector<8x128xf32> -> vector<8x128xf32>
    %254 = vector.broadcast %6 : vector<1x128xf32> to vector<8x128xf32>
    %255 = arith.addf %253, %254 : vector<8x128xf32>
    %256 = math.tanh %255 : vector<8x128xf32>
    %257 = arith.mulf %256, %237 : vector<8x128xf32>
    %cst_94 = arith.constant dense<0.000000e+00> : vector<8x32xf32>
    %258 = tpu.matmul %257, %7, %cst_94 {dimension_numbers = #tpu.dot_dimension_numbers<[1], [0], [0], [1], [0, 0, 1, 1], [], []>} : vector<8x128xf32>, vector<128x32xf32>, vector<8x32xf32> -> vector<8x32xf32>
    %cst_95 = arith.constant 5.000000e-01 : f32
    %259 = vector.broadcast %cst_95 : f32 to vector<8x32xf32>
    %260 = arith.mulf %259, %258 : vector<8x32xf32>
    %261 = arith.addf %233, %260 : vector<8x32xf32>
    %cst_96 = arith.constant dense<0.000000e+00> : vector<8x128xf32>
    %262 = tpu.matmul %261, %3, %cst_96 {dimension_numbers = #tpu.dot_dimension_numbers<[1], [0], [0], [1], [0, 0, 1, 1], [], []>} : vector<8x32xf32>, vector<32x128xf32>, vector<8x128xf32> -> vector<8x128xf32>
    %263 = vector.broadcast %4 : vector<1x128xf32> to vector<8x128xf32>
    %264 = arith.addf %262, %263 : vector<8x128xf32>
    %cst_97 = arith.constant 0.000000e+00 : f32
    %265 = vector.broadcast %cst_97 : f32 to vector<8x128xf32>
    %266 = arith.maximumf %264, %265 : vector<8x128xf32>
    %cst_98 = arith.constant dense<0.000000e+00> : vector<8x128xf32>
    %267 = tpu.matmul %266, %5, %cst_98 {dimension_numbers = #tpu.dot_dimension_numbers<[1], [0], [0], [1], [0, 0, 1, 1], [], []>} : vector<8x128xf32>, vector<128x128xf32>, vector<8x128xf32> -> vector<8x128xf32>
    %268 = vector.broadcast %6 : vector<1x128xf32> to vector<8x128xf32>
    %269 = arith.addf %267, %268 : vector<8x128xf32>
    %270 = math.tanh %269 : vector<8x128xf32>
    %271 = arith.mulf %270, %245 : vector<8x128xf32>
    %cst_99 = arith.constant dense<0.000000e+00> : vector<8x32xf32>
    %272 = tpu.matmul %271, %7, %cst_99 {dimension_numbers = #tpu.dot_dimension_numbers<[1], [0], [0], [1], [0, 0, 1, 1], [], []>} : vector<8x128xf32>, vector<128x32xf32>, vector<8x32xf32> -> vector<8x32xf32>
    %cst_100 = arith.constant 5.000000e-01 : f32
    %273 = vector.broadcast %cst_100 : f32 to vector<8x32xf32>
    %274 = arith.mulf %273, %272 : vector<8x32xf32>
    %275 = arith.addf %233, %274 : vector<8x32xf32>
    %cst_101 = arith.constant dense<0.000000e+00> : vector<8x128xf32>
    %276 = tpu.matmul %275, %3, %cst_101 {dimension_numbers = #tpu.dot_dimension_numbers<[1], [0], [0], [1], [0, 0, 1, 1], [], []>} : vector<8x32xf32>, vector<32x128xf32>, vector<8x128xf32> -> vector<8x128xf32>
    %277 = vector.broadcast %4 : vector<1x128xf32> to vector<8x128xf32>
    %278 = arith.addf %276, %277 : vector<8x128xf32>
    %cst_102 = arith.constant 0.000000e+00 : f32
    %279 = vector.broadcast %cst_102 : f32 to vector<8x128xf32>
    %280 = arith.maximumf %278, %279 : vector<8x128xf32>
    %cst_103 = arith.constant dense<0.000000e+00> : vector<8x128xf32>
    %281 = tpu.matmul %280, %5, %cst_103 {dimension_numbers = #tpu.dot_dimension_numbers<[1], [0], [0], [1], [0, 0, 1, 1], [], []>} : vector<8x128xf32>, vector<128x128xf32>, vector<8x128xf32> -> vector<8x128xf32>
    %282 = vector.broadcast %6 : vector<1x128xf32> to vector<8x128xf32>
    %283 = arith.addf %281, %282 : vector<8x128xf32>
    %284 = math.tanh %283 : vector<8x128xf32>
    %285 = arith.mulf %284, %245 : vector<8x128xf32>
    %cst_104 = arith.constant dense<0.000000e+00> : vector<8x32xf32>
    %286 = tpu.matmul %285, %7, %cst_104 {dimension_numbers = #tpu.dot_dimension_numbers<[1], [0], [0], [1], [0, 0, 1, 1], [], []>} : vector<8x128xf32>, vector<128x32xf32>, vector<8x32xf32> -> vector<8x32xf32>
    %287 = arith.addf %233, %286 : vector<8x32xf32>
    %cst_105 = arith.constant dense<0.000000e+00> : vector<8x128xf32>
    %288 = tpu.matmul %287, %3, %cst_105 {dimension_numbers = #tpu.dot_dimension_numbers<[1], [0], [0], [1], [0, 0, 1, 1], [], []>} : vector<8x32xf32>, vector<32x128xf32>, vector<8x128xf32> -> vector<8x128xf32>
    %289 = vector.broadcast %4 : vector<1x128xf32> to vector<8x128xf32>
    %290 = arith.addf %288, %289 : vector<8x128xf32>
    %cst_106 = arith.constant 0.000000e+00 : f32
    %291 = vector.broadcast %cst_106 : f32 to vector<8x128xf32>
    %292 = arith.maximumf %290, %291 : vector<8x128xf32>
    %cst_107 = arith.constant dense<0.000000e+00> : vector<8x128xf32>
    %293 = tpu.matmul %292, %5, %cst_107 {dimension_numbers = #tpu.dot_dimension_numbers<[1], [0], [0], [1], [0, 0, 1, 1], [], []>} : vector<8x128xf32>, vector<128x128xf32>, vector<8x128xf32> -> vector<8x128xf32>
    %294 = vector.broadcast %6 : vector<1x128xf32> to vector<8x128xf32>
    %295 = arith.addf %293, %294 : vector<8x128xf32>
    %296 = math.tanh %295 : vector<8x128xf32>
    %297 = arith.mulf %296, %247 : vector<8x128xf32>
    %cst_108 = arith.constant dense<0.000000e+00> : vector<8x32xf32>
    %298 = tpu.matmul %297, %7, %cst_108 {dimension_numbers = #tpu.dot_dimension_numbers<[1], [0], [0], [1], [0, 0, 1, 1], [], []>} : vector<8x128xf32>, vector<128x32xf32>, vector<8x32xf32> -> vector<8x32xf32>
    %cst_109 = arith.constant 2.000000e+00 : f32
    %299 = vector.broadcast %cst_109 : f32 to vector<8x32xf32>
    %300 = arith.mulf %299, %272 : vector<8x32xf32>
    %301 = arith.addf %258, %300 : vector<8x32xf32>
    %cst_110 = arith.constant 2.000000e+00 : f32
    %302 = vector.broadcast %cst_110 : f32 to vector<8x32xf32>
    %303 = arith.mulf %302, %286 : vector<8x32xf32>
    %304 = arith.addf %301, %303 : vector<8x32xf32>
    %305 = arith.addf %304, %298 : vector<8x32xf32>
    %cst_111 = arith.constant 0.166666672 : f32
    %306 = vector.broadcast %cst_111 : f32 to vector<8x32xf32>
    %307 = arith.mulf %305, %306 : vector<8x32xf32>
    %308 = arith.addf %233, %307 : vector<8x32xf32>
    %c4_i32 = arith.constant 4 : i32
    %309 = arith.index_cast %c4_i32 : i32 to index
    %c0_112 = arith.constant 0 : index
    %c0_113 = arith.constant 0 : index
    %310 = vector.load %arg2[%309, %c0_112, %c0_113] : memref<7x8x384xf32, #tpu.memory_space<vmem>>, vector<1x8x384xf32>
    %311 = vector.shape_cast %310 : vector<1x8x384xf32> to vector<8x384xf32>
    %312 = vector.extract_strided_slice %311 {offsets = [0, 0], sizes = [8, 128], strides = [1, 1]} : vector<8x384xf32> to vector<8x128xf32>
    %313 = vector.extract_strided_slice %311 {offsets = [0, 128], sizes = [8, 128], strides = [1, 1]} : vector<8x384xf32> to vector<8x128xf32>
    %314 = vector.extract_strided_slice %311 {offsets = [0, 256], sizes = [8, 128], strides = [1, 1]} : vector<8x384xf32> to vector<8x128xf32>
    %cst_114 = arith.constant 5.000000e-01 : f32
    %315 = vector.broadcast %cst_114 : f32 to vector<8x128xf32>
    %316 = arith.mulf %315, %314 : vector<8x128xf32>
    %317 = arith.addf %313, %316 : vector<8x128xf32>
    %cst_115 = arith.constant 5.000000e-01 : f32
    %318 = vector.broadcast %cst_115 : f32 to vector<8x128xf32>
    %319 = arith.mulf %317, %318 : vector<8x128xf32>
    %320 = arith.addf %312, %319 : vector<8x128xf32>
    %321 = arith.addf %312, %313 : vector<8x128xf32>
    %322 = arith.addf %321, %314 : vector<8x128xf32>
    %cst_116 = arith.constant dense<0.000000e+00> : vector<8x128xf32>
    %323 = tpu.matmul %308, %3, %cst_116 {dimension_numbers = #tpu.dot_dimension_numbers<[1], [0], [0], [1], [0, 0, 1, 1], [], []>} : vector<8x32xf32>, vector<32x128xf32>, vector<8x128xf32> -> vector<8x128xf32>
    %324 = vector.broadcast %4 : vector<1x128xf32> to vector<8x128xf32>
    %325 = arith.addf %323, %324 : vector<8x128xf32>
    %cst_117 = arith.constant 0.000000e+00 : f32
    %326 = vector.broadcast %cst_117 : f32 to vector<8x128xf32>
    %327 = arith.maximumf %325, %326 : vector<8x128xf32>
    %cst_118 = arith.constant dense<0.000000e+00> : vector<8x128xf32>
    %328 = tpu.matmul %327, %5, %cst_118 {dimension_numbers = #tpu.dot_dimension_numbers<[1], [0], [0], [1], [0, 0, 1, 1], [], []>} : vector<8x128xf32>, vector<128x128xf32>, vector<8x128xf32> -> vector<8x128xf32>
    %329 = vector.broadcast %6 : vector<1x128xf32> to vector<8x128xf32>
    %330 = arith.addf %328, %329 : vector<8x128xf32>
    %331 = math.tanh %330 : vector<8x128xf32>
    %332 = arith.mulf %331, %312 : vector<8x128xf32>
    %cst_119 = arith.constant dense<0.000000e+00> : vector<8x32xf32>
    %333 = tpu.matmul %332, %7, %cst_119 {dimension_numbers = #tpu.dot_dimension_numbers<[1], [0], [0], [1], [0, 0, 1, 1], [], []>} : vector<8x128xf32>, vector<128x32xf32>, vector<8x32xf32> -> vector<8x32xf32>
    %cst_120 = arith.constant 5.000000e-01 : f32
    %334 = vector.broadcast %cst_120 : f32 to vector<8x32xf32>
    %335 = arith.mulf %334, %333 : vector<8x32xf32>
    %336 = arith.addf %308, %335 : vector<8x32xf32>
    %cst_121 = arith.constant dense<0.000000e+00> : vector<8x128xf32>
    %337 = tpu.matmul %336, %3, %cst_121 {dimension_numbers = #tpu.dot_dimension_numbers<[1], [0], [0], [1], [0, 0, 1, 1], [], []>} : vector<8x32xf32>, vector<32x128xf32>, vector<8x128xf32> -> vector<8x128xf32>
    %338 = vector.broadcast %4 : vector<1x128xf32> to vector<8x128xf32>
    %339 = arith.addf %337, %338 : vector<8x128xf32>
    %cst_122 = arith.constant 0.000000e+00 : f32
    %340 = vector.broadcast %cst_122 : f32 to vector<8x128xf32>
    %341 = arith.maximumf %339, %340 : vector<8x128xf32>
    %cst_123 = arith.constant dense<0.000000e+00> : vector<8x128xf32>
    %342 = tpu.matmul %341, %5, %cst_123 {dimension_numbers = #tpu.dot_dimension_numbers<[1], [0], [0], [1], [0, 0, 1, 1], [], []>} : vector<8x128xf32>, vector<128x128xf32>, vector<8x128xf32> -> vector<8x128xf32>
    %343 = vector.broadcast %6 : vector<1x128xf32> to vector<8x128xf32>
    %344 = arith.addf %342, %343 : vector<8x128xf32>
    %345 = math.tanh %344 : vector<8x128xf32>
    %346 = arith.mulf %345, %320 : vector<8x128xf32>
    %cst_124 = arith.constant dense<0.000000e+00> : vector<8x32xf32>
    %347 = tpu.matmul %346, %7, %cst_124 {dimension_numbers = #tpu.dot_dimension_numbers<[1], [0], [0], [1], [0, 0, 1, 1], [], []>} : vector<8x128xf32>, vector<128x32xf32>, vector<8x32xf32> -> vector<8x32xf32>
    %cst_125 = arith.constant 5.000000e-01 : f32
    %348 = vector.broadcast %cst_125 : f32 to vector<8x32xf32>
    %349 = arith.mulf %348, %347 : vector<8x32xf32>
    %350 = arith.addf %308, %349 : vector<8x32xf32>
    %cst_126 = arith.constant dense<0.000000e+00> : vector<8x128xf32>
    %351 = tpu.matmul %350, %3, %cst_126 {dimension_numbers = #tpu.dot_dimension_numbers<[1], [0], [0], [1], [0, 0, 1, 1], [], []>} : vector<8x32xf32>, vector<32x128xf32>, vector<8x128xf32> -> vector<8x128xf32>
    %352 = vector.broadcast %4 : vector<1x128xf32> to vector<8x128xf32>
    %353 = arith.addf %351, %352 : vector<8x128xf32>
    %cst_127 = arith.constant 0.000000e+00 : f32
    %354 = vector.broadcast %cst_127 : f32 to vector<8x128xf32>
    %355 = arith.maximumf %353, %354 : vector<8x128xf32>
    %cst_128 = arith.constant dense<0.000000e+00> : vector<8x128xf32>
    %356 = tpu.matmul %355, %5, %cst_128 {dimension_numbers = #tpu.dot_dimension_numbers<[1], [0], [0], [1], [0, 0, 1, 1], [], []>} : vector<8x128xf32>, vector<128x128xf32>, vector<8x128xf32> -> vector<8x128xf32>
    %357 = vector.broadcast %6 : vector<1x128xf32> to vector<8x128xf32>
    %358 = arith.addf %356, %357 : vector<8x128xf32>
    %359 = math.tanh %358 : vector<8x128xf32>
    %360 = arith.mulf %359, %320 : vector<8x128xf32>
    %cst_129 = arith.constant dense<0.000000e+00> : vector<8x32xf32>
    %361 = tpu.matmul %360, %7, %cst_129 {dimension_numbers = #tpu.dot_dimension_numbers<[1], [0], [0], [1], [0, 0, 1, 1], [], []>} : vector<8x128xf32>, vector<128x32xf32>, vector<8x32xf32> -> vector<8x32xf32>
    %362 = arith.addf %308, %361 : vector<8x32xf32>
    %cst_130 = arith.constant dense<0.000000e+00> : vector<8x128xf32>
    %363 = tpu.matmul %362, %3, %cst_130 {dimension_numbers = #tpu.dot_dimension_numbers<[1], [0], [0], [1], [0, 0, 1, 1], [], []>} : vector<8x32xf32>, vector<32x128xf32>, vector<8x128xf32> -> vector<8x128xf32>
    %364 = vector.broadcast %4 : vector<1x128xf32> to vector<8x128xf32>
    %365 = arith.addf %363, %364 : vector<8x128xf32>
    %cst_131 = arith.constant 0.000000e+00 : f32
    %366 = vector.broadcast %cst_131 : f32 to vector<8x128xf32>
    %367 = arith.maximumf %365, %366 : vector<8x128xf32>
    %cst_132 = arith.constant dense<0.000000e+00> : vector<8x128xf32>
    %368 = tpu.matmul %367, %5, %cst_132 {dimension_numbers = #tpu.dot_dimension_numbers<[1], [0], [0], [1], [0, 0, 1, 1], [], []>} : vector<8x128xf32>, vector<128x128xf32>, vector<8x128xf32> -> vector<8x128xf32>
    %369 = vector.broadcast %6 : vector<1x128xf32> to vector<8x128xf32>
    %370 = arith.addf %368, %369 : vector<8x128xf32>
    %371 = math.tanh %370 : vector<8x128xf32>
    %372 = arith.mulf %371, %322 : vector<8x128xf32>
    %cst_133 = arith.constant dense<0.000000e+00> : vector<8x32xf32>
    %373 = tpu.matmul %372, %7, %cst_133 {dimension_numbers = #tpu.dot_dimension_numbers<[1], [0], [0], [1], [0, 0, 1, 1], [], []>} : vector<8x128xf32>, vector<128x32xf32>, vector<8x32xf32> -> vector<8x32xf32>
    %cst_134 = arith.constant 2.000000e+00 : f32
    %374 = vector.broadcast %cst_134 : f32 to vector<8x32xf32>
    %375 = arith.mulf %374, %347 : vector<8x32xf32>
    %376 = arith.addf %333, %375 : vector<8x32xf32>
    %cst_135 = arith.constant 2.000000e+00 : f32
    %377 = vector.broadcast %cst_135 : f32 to vector<8x32xf32>
    %378 = arith.mulf %377, %361 : vector<8x32xf32>
    %379 = arith.addf %376, %378 : vector<8x32xf32>
    %380 = arith.addf %379, %373 : vector<8x32xf32>
    %cst_136 = arith.constant 0.166666672 : f32
    %381 = vector.broadcast %cst_136 : f32 to vector<8x32xf32>
    %382 = arith.mulf %380, %381 : vector<8x32xf32>
    %383 = arith.addf %308, %382 : vector<8x32xf32>
    %c5_i32 = arith.constant 5 : i32
    %384 = arith.index_cast %c5_i32 : i32 to index
    %c0_137 = arith.constant 0 : index
    %c0_138 = arith.constant 0 : index
    %385 = vector.load %arg2[%384, %c0_137, %c0_138] : memref<7x8x384xf32, #tpu.memory_space<vmem>>, vector<1x8x384xf32>
    %386 = vector.shape_cast %385 : vector<1x8x384xf32> to vector<8x384xf32>
    %387 = vector.extract_strided_slice %386 {offsets = [0, 0], sizes = [8, 128], strides = [1, 1]} : vector<8x384xf32> to vector<8x128xf32>
    %388 = vector.extract_strided_slice %386 {offsets = [0, 128], sizes = [8, 128], strides = [1, 1]} : vector<8x384xf32> to vector<8x128xf32>
    %389 = vector.extract_strided_slice %386 {offsets = [0, 256], sizes = [8, 128], strides = [1, 1]} : vector<8x384xf32> to vector<8x128xf32>
    %cst_139 = arith.constant 5.000000e-01 : f32
    %390 = vector.broadcast %cst_139 : f32 to vector<8x128xf32>
    %391 = arith.mulf %390, %389 : vector<8x128xf32>
    %392 = arith.addf %388, %391 : vector<8x128xf32>
    %cst_140 = arith.constant 5.000000e-01 : f32
    %393 = vector.broadcast %cst_140 : f32 to vector<8x128xf32>
    %394 = arith.mulf %392, %393 : vector<8x128xf32>
    %395 = arith.addf %387, %394 : vector<8x128xf32>
    %396 = arith.addf %387, %388 : vector<8x128xf32>
    %397 = arith.addf %396, %389 : vector<8x128xf32>
    %cst_141 = arith.constant dense<0.000000e+00> : vector<8x128xf32>
    %398 = tpu.matmul %383, %3, %cst_141 {dimension_numbers = #tpu.dot_dimension_numbers<[1], [0], [0], [1], [0, 0, 1, 1], [], []>} : vector<8x32xf32>, vector<32x128xf32>, vector<8x128xf32> -> vector<8x128xf32>
    %399 = vector.broadcast %4 : vector<1x128xf32> to vector<8x128xf32>
    %400 = arith.addf %398, %399 : vector<8x128xf32>
    %cst_142 = arith.constant 0.000000e+00 : f32
    %401 = vector.broadcast %cst_142 : f32 to vector<8x128xf32>
    %402 = arith.maximumf %400, %401 : vector<8x128xf32>
    %cst_143 = arith.constant dense<0.000000e+00> : vector<8x128xf32>
    %403 = tpu.matmul %402, %5, %cst_143 {dimension_numbers = #tpu.dot_dimension_numbers<[1], [0], [0], [1], [0, 0, 1, 1], [], []>} : vector<8x128xf32>, vector<128x128xf32>, vector<8x128xf32> -> vector<8x128xf32>
    %404 = vector.broadcast %6 : vector<1x128xf32> to vector<8x128xf32>
    %405 = arith.addf %403, %404 : vector<8x128xf32>
    %406 = math.tanh %405 : vector<8x128xf32>
    %407 = arith.mulf %406, %387 : vector<8x128xf32>
    %cst_144 = arith.constant dense<0.000000e+00> : vector<8x32xf32>
    %408 = tpu.matmul %407, %7, %cst_144 {dimension_numbers = #tpu.dot_dimension_numbers<[1], [0], [0], [1], [0, 0, 1, 1], [], []>} : vector<8x128xf32>, vector<128x32xf32>, vector<8x32xf32> -> vector<8x32xf32>
    %cst_145 = arith.constant 5.000000e-01 : f32
    %409 = vector.broadcast %cst_145 : f32 to vector<8x32xf32>
    %410 = arith.mulf %409, %408 : vector<8x32xf32>
    %411 = arith.addf %383, %410 : vector<8x32xf32>
    %cst_146 = arith.constant dense<0.000000e+00> : vector<8x128xf32>
    %412 = tpu.matmul %411, %3, %cst_146 {dimension_numbers = #tpu.dot_dimension_numbers<[1], [0], [0], [1], [0, 0, 1, 1], [], []>} : vector<8x32xf32>, vector<32x128xf32>, vector<8x128xf32> -> vector<8x128xf32>
    %413 = vector.broadcast %4 : vector<1x128xf32> to vector<8x128xf32>
    %414 = arith.addf %412, %413 : vector<8x128xf32>
    %cst_147 = arith.constant 0.000000e+00 : f32
    %415 = vector.broadcast %cst_147 : f32 to vector<8x128xf32>
    %416 = arith.maximumf %414, %415 : vector<8x128xf32>
    %cst_148 = arith.constant dense<0.000000e+00> : vector<8x128xf32>
    %417 = tpu.matmul %416, %5, %cst_148 {dimension_numbers = #tpu.dot_dimension_numbers<[1], [0], [0], [1], [0, 0, 1, 1], [], []>} : vector<8x128xf32>, vector<128x128xf32>, vector<8x128xf32> -> vector<8x128xf32>
    %418 = vector.broadcast %6 : vector<1x128xf32> to vector<8x128xf32>
    %419 = arith.addf %417, %418 : vector<8x128xf32>
    %420 = math.tanh %419 : vector<8x128xf32>
    %421 = arith.mulf %420, %395 : vector<8x128xf32>
    %cst_149 = arith.constant dense<0.000000e+00> : vector<8x32xf32>
    %422 = tpu.matmul %421, %7, %cst_149 {dimension_numbers = #tpu.dot_dimension_numbers<[1], [0], [0], [1], [0, 0, 1, 1], [], []>} : vector<8x128xf32>, vector<128x32xf32>, vector<8x32xf32> -> vector<8x32xf32>
    %cst_150 = arith.constant 5.000000e-01 : f32
    %423 = vector.broadcast %cst_150 : f32 to vector<8x32xf32>
    %424 = arith.mulf %423, %422 : vector<8x32xf32>
    %425 = arith.addf %383, %424 : vector<8x32xf32>
    %cst_151 = arith.constant dense<0.000000e+00> : vector<8x128xf32>
    %426 = tpu.matmul %425, %3, %cst_151 {dimension_numbers = #tpu.dot_dimension_numbers<[1], [0], [0], [1], [0, 0, 1, 1], [], []>} : vector<8x32xf32>, vector<32x128xf32>, vector<8x128xf32> -> vector<8x128xf32>
    %427 = vector.broadcast %4 : vector<1x128xf32> to vector<8x128xf32>
    %428 = arith.addf %426, %427 : vector<8x128xf32>
    %cst_152 = arith.constant 0.000000e+00 : f32
    %429 = vector.broadcast %cst_152 : f32 to vector<8x128xf32>
    %430 = arith.maximumf %428, %429 : vector<8x128xf32>
    %cst_153 = arith.constant dense<0.000000e+00> : vector<8x128xf32>
    %431 = tpu.matmul %430, %5, %cst_153 {dimension_numbers = #tpu.dot_dimension_numbers<[1], [0], [0], [1], [0, 0, 1, 1], [], []>} : vector<8x128xf32>, vector<128x128xf32>, vector<8x128xf32> -> vector<8x128xf32>
    %432 = vector.broadcast %6 : vector<1x128xf32> to vector<8x128xf32>
    %433 = arith.addf %431, %432 : vector<8x128xf32>
    %434 = math.tanh %433 : vector<8x128xf32>
    %435 = arith.mulf %434, %395 : vector<8x128xf32>
    %cst_154 = arith.constant dense<0.000000e+00> : vector<8x32xf32>
    %436 = tpu.matmul %435, %7, %cst_154 {dimension_numbers = #tpu.dot_dimension_numbers<[1], [0], [0], [1], [0, 0, 1, 1], [], []>} : vector<8x128xf32>, vector<128x32xf32>, vector<8x32xf32> -> vector<8x32xf32>
    %437 = arith.addf %383, %436 : vector<8x32xf32>
    %cst_155 = arith.constant dense<0.000000e+00> : vector<8x128xf32>
    %438 = tpu.matmul %437, %3, %cst_155 {dimension_numbers = #tpu.dot_dimension_numbers<[1], [0], [0], [1], [0, 0, 1, 1], [], []>} : vector<8x32xf32>, vector<32x128xf32>, vector<8x128xf32> -> vector<8x128xf32>
    %439 = vector.broadcast %4 : vector<1x128xf32> to vector<8x128xf32>
    %440 = arith.addf %438, %439 : vector<8x128xf32>
    %cst_156 = arith.constant 0.000000e+00 : f32
    %441 = vector.broadcast %cst_156 : f32 to vector<8x128xf32>
    %442 = arith.maximumf %440, %441 : vector<8x128xf32>
    %cst_157 = arith.constant dense<0.000000e+00> : vector<8x128xf32>
    %443 = tpu.matmul %442, %5, %cst_157 {dimension_numbers = #tpu.dot_dimension_numbers<[1], [0], [0], [1], [0, 0, 1, 1], [], []>} : vector<8x128xf32>, vector<128x128xf32>, vector<8x128xf32> -> vector<8x128xf32>
    %444 = vector.broadcast %6 : vector<1x128xf32> to vector<8x128xf32>
    %445 = arith.addf %443, %444 : vector<8x128xf32>
    %446 = math.tanh %445 : vector<8x128xf32>
    %447 = arith.mulf %446, %397 : vector<8x128xf32>
    %cst_158 = arith.constant dense<0.000000e+00> : vector<8x32xf32>
    %448 = tpu.matmul %447, %7, %cst_158 {dimension_numbers = #tpu.dot_dimension_numbers<[1], [0], [0], [1], [0, 0, 1, 1], [], []>} : vector<8x128xf32>, vector<128x32xf32>, vector<8x32xf32> -> vector<8x32xf32>
    %cst_159 = arith.constant 2.000000e+00 : f32
    %449 = vector.broadcast %cst_159 : f32 to vector<8x32xf32>
    %450 = arith.mulf %449, %422 : vector<8x32xf32>
    %451 = arith.addf %408, %450 : vector<8x32xf32>
    %cst_160 = arith.constant 2.000000e+00 : f32
    %452 = vector.broadcast %cst_160 : f32 to vector<8x32xf32>
    %453 = arith.mulf %452, %436 : vector<8x32xf32>
    %454 = arith.addf %451, %453 : vector<8x32xf32>
    %455 = arith.addf %454, %448 : vector<8x32xf32>
    %cst_161 = arith.constant 0.166666672 : f32
    %456 = vector.broadcast %cst_161 : f32 to vector<8x32xf32>
    %457 = arith.mulf %455, %456 : vector<8x32xf32>
    %458 = arith.addf %383, %457 : vector<8x32xf32>
    %c6_i32 = arith.constant 6 : i32
    %459 = arith.index_cast %c6_i32 : i32 to index
    %c0_162 = arith.constant 0 : index
    %c0_163 = arith.constant 0 : index
    %460 = vector.load %arg2[%459, %c0_162, %c0_163] : memref<7x8x384xf32, #tpu.memory_space<vmem>>, vector<1x8x384xf32>
    %461 = vector.shape_cast %460 : vector<1x8x384xf32> to vector<8x384xf32>
    %462 = vector.extract_strided_slice %461 {offsets = [0, 0], sizes = [8, 128], strides = [1, 1]} : vector<8x384xf32> to vector<8x128xf32>
    %463 = vector.extract_strided_slice %461 {offsets = [0, 128], sizes = [8, 128], strides = [1, 1]} : vector<8x384xf32> to vector<8x128xf32>
    %464 = vector.extract_strided_slice %461 {offsets = [0, 256], sizes = [8, 128], strides = [1, 1]} : vector<8x384xf32> to vector<8x128xf32>
    %cst_164 = arith.constant 5.000000e-01 : f32
    %465 = vector.broadcast %cst_164 : f32 to vector<8x128xf32>
    %466 = arith.mulf %465, %464 : vector<8x128xf32>
    %467 = arith.addf %463, %466 : vector<8x128xf32>
    %cst_165 = arith.constant 5.000000e-01 : f32
    %468 = vector.broadcast %cst_165 : f32 to vector<8x128xf32>
    %469 = arith.mulf %467, %468 : vector<8x128xf32>
    %470 = arith.addf %462, %469 : vector<8x128xf32>
    %471 = arith.addf %462, %463 : vector<8x128xf32>
    %472 = arith.addf %471, %464 : vector<8x128xf32>
    %cst_166 = arith.constant dense<0.000000e+00> : vector<8x128xf32>
    %473 = tpu.matmul %458, %3, %cst_166 {dimension_numbers = #tpu.dot_dimension_numbers<[1], [0], [0], [1], [0, 0, 1, 1], [], []>} : vector<8x32xf32>, vector<32x128xf32>, vector<8x128xf32> -> vector<8x128xf32>
    %474 = vector.broadcast %4 : vector<1x128xf32> to vector<8x128xf32>
    %475 = arith.addf %473, %474 : vector<8x128xf32>
    %cst_167 = arith.constant 0.000000e+00 : f32
    %476 = vector.broadcast %cst_167 : f32 to vector<8x128xf32>
    %477 = arith.maximumf %475, %476 : vector<8x128xf32>
    %cst_168 = arith.constant dense<0.000000e+00> : vector<8x128xf32>
    %478 = tpu.matmul %477, %5, %cst_168 {dimension_numbers = #tpu.dot_dimension_numbers<[1], [0], [0], [1], [0, 0, 1, 1], [], []>} : vector<8x128xf32>, vector<128x128xf32>, vector<8x128xf32> -> vector<8x128xf32>
    %479 = vector.broadcast %6 : vector<1x128xf32> to vector<8x128xf32>
    %480 = arith.addf %478, %479 : vector<8x128xf32>
    %481 = math.tanh %480 : vector<8x128xf32>
    %482 = arith.mulf %481, %462 : vector<8x128xf32>
    %cst_169 = arith.constant dense<0.000000e+00> : vector<8x32xf32>
    %483 = tpu.matmul %482, %7, %cst_169 {dimension_numbers = #tpu.dot_dimension_numbers<[1], [0], [0], [1], [0, 0, 1, 1], [], []>} : vector<8x128xf32>, vector<128x32xf32>, vector<8x32xf32> -> vector<8x32xf32>
    %cst_170 = arith.constant 5.000000e-01 : f32
    %484 = vector.broadcast %cst_170 : f32 to vector<8x32xf32>
    %485 = arith.mulf %484, %483 : vector<8x32xf32>
    %486 = arith.addf %458, %485 : vector<8x32xf32>
    %cst_171 = arith.constant dense<0.000000e+00> : vector<8x128xf32>
    %487 = tpu.matmul %486, %3, %cst_171 {dimension_numbers = #tpu.dot_dimension_numbers<[1], [0], [0], [1], [0, 0, 1, 1], [], []>} : vector<8x32xf32>, vector<32x128xf32>, vector<8x128xf32> -> vector<8x128xf32>
    %488 = vector.broadcast %4 : vector<1x128xf32> to vector<8x128xf32>
    %489 = arith.addf %487, %488 : vector<8x128xf32>
    %cst_172 = arith.constant 0.000000e+00 : f32
    %490 = vector.broadcast %cst_172 : f32 to vector<8x128xf32>
    %491 = arith.maximumf %489, %490 : vector<8x128xf32>
    %cst_173 = arith.constant dense<0.000000e+00> : vector<8x128xf32>
    %492 = tpu.matmul %491, %5, %cst_173 {dimension_numbers = #tpu.dot_dimension_numbers<[1], [0], [0], [1], [0, 0, 1, 1], [], []>} : vector<8x128xf32>, vector<128x128xf32>, vector<8x128xf32> -> vector<8x128xf32>
    %493 = vector.broadcast %6 : vector<1x128xf32> to vector<8x128xf32>
    %494 = arith.addf %492, %493 : vector<8x128xf32>
    %495 = math.tanh %494 : vector<8x128xf32>
    %496 = arith.mulf %495, %470 : vector<8x128xf32>
    %cst_174 = arith.constant dense<0.000000e+00> : vector<8x32xf32>
    %497 = tpu.matmul %496, %7, %cst_174 {dimension_numbers = #tpu.dot_dimension_numbers<[1], [0], [0], [1], [0, 0, 1, 1], [], []>} : vector<8x128xf32>, vector<128x32xf32>, vector<8x32xf32> -> vector<8x32xf32>
    %cst_175 = arith.constant 5.000000e-01 : f32
    %498 = vector.broadcast %cst_175 : f32 to vector<8x32xf32>
    %499 = arith.mulf %498, %497 : vector<8x32xf32>
    %500 = arith.addf %458, %499 : vector<8x32xf32>
    %cst_176 = arith.constant dense<0.000000e+00> : vector<8x128xf32>
    %501 = tpu.matmul %500, %3, %cst_176 {dimension_numbers = #tpu.dot_dimension_numbers<[1], [0], [0], [1], [0, 0, 1, 1], [], []>} : vector<8x32xf32>, vector<32x128xf32>, vector<8x128xf32> -> vector<8x128xf32>
    %502 = vector.broadcast %4 : vector<1x128xf32> to vector<8x128xf32>
    %503 = arith.addf %501, %502 : vector<8x128xf32>
    %cst_177 = arith.constant 0.000000e+00 : f32
    %504 = vector.broadcast %cst_177 : f32 to vector<8x128xf32>
    %505 = arith.maximumf %503, %504 : vector<8x128xf32>
    %cst_178 = arith.constant dense<0.000000e+00> : vector<8x128xf32>
    %506 = tpu.matmul %505, %5, %cst_178 {dimension_numbers = #tpu.dot_dimension_numbers<[1], [0], [0], [1], [0, 0, 1, 1], [], []>} : vector<8x128xf32>, vector<128x128xf32>, vector<8x128xf32> -> vector<8x128xf32>
    %507 = vector.broadcast %6 : vector<1x128xf32> to vector<8x128xf32>
    %508 = arith.addf %506, %507 : vector<8x128xf32>
    %509 = math.tanh %508 : vector<8x128xf32>
    %510 = arith.mulf %509, %470 : vector<8x128xf32>
    %cst_179 = arith.constant dense<0.000000e+00> : vector<8x32xf32>
    %511 = tpu.matmul %510, %7, %cst_179 {dimension_numbers = #tpu.dot_dimension_numbers<[1], [0], [0], [1], [0, 0, 1, 1], [], []>} : vector<8x128xf32>, vector<128x32xf32>, vector<8x32xf32> -> vector<8x32xf32>
    %512 = arith.addf %458, %511 : vector<8x32xf32>
    %cst_180 = arith.constant dense<0.000000e+00> : vector<8x128xf32>
    %513 = tpu.matmul %512, %3, %cst_180 {dimension_numbers = #tpu.dot_dimension_numbers<[1], [0], [0], [1], [0, 0, 1, 1], [], []>} : vector<8x32xf32>, vector<32x128xf32>, vector<8x128xf32> -> vector<8x128xf32>
    %514 = vector.broadcast %4 : vector<1x128xf32> to vector<8x128xf32>
    %515 = arith.addf %513, %514 : vector<8x128xf32>
    %cst_181 = arith.constant 0.000000e+00 : f32
    %516 = vector.broadcast %cst_181 : f32 to vector<8x128xf32>
    %517 = arith.maximumf %515, %516 : vector<8x128xf32>
    %cst_182 = arith.constant dense<0.000000e+00> : vector<8x128xf32>
    %518 = tpu.matmul %517, %5, %cst_182 {dimension_numbers = #tpu.dot_dimension_numbers<[1], [0], [0], [1], [0, 0, 1, 1], [], []>} : vector<8x128xf32>, vector<128x128xf32>, vector<8x128xf32> -> vector<8x128xf32>
    %519 = vector.broadcast %6 : vector<1x128xf32> to vector<8x128xf32>
    %520 = arith.addf %518, %519 : vector<8x128xf32>
    %521 = math.tanh %520 : vector<8x128xf32>
    %522 = arith.mulf %521, %472 : vector<8x128xf32>
    %cst_183 = arith.constant dense<0.000000e+00> : vector<8x32xf32>
    %523 = tpu.matmul %522, %7, %cst_183 {dimension_numbers = #tpu.dot_dimension_numbers<[1], [0], [0], [1], [0, 0, 1, 1], [], []>} : vector<8x128xf32>, vector<128x32xf32>, vector<8x32xf32> -> vector<8x32xf32>
    %cst_184 = arith.constant 2.000000e+00 : f32
    %524 = vector.broadcast %cst_184 : f32 to vector<8x32xf32>
    %525 = arith.mulf %524, %497 : vector<8x32xf32>
    %526 = arith.addf %483, %525 : vector<8x32xf32>
    %cst_185 = arith.constant 2.000000e+00 : f32
    %527 = vector.broadcast %cst_185 : f32 to vector<8x32xf32>
    %528 = arith.mulf %527, %511 : vector<8x32xf32>
    %529 = arith.addf %526, %528 : vector<8x32xf32>
    %530 = arith.addf %529, %523 : vector<8x32xf32>
    %cst_186 = arith.constant 0.166666672 : f32
    %531 = vector.broadcast %cst_186 : f32 to vector<8x32xf32>
    %532 = arith.mulf %530, %531 : vector<8x32xf32>
    %533 = arith.addf %458, %532 : vector<8x32xf32>
    %c7_i32 = arith.constant 7 : i32
    %c0_187 = arith.constant 0 : index
    %c0_188 = arith.constant 0 : index
    %534 = vector.load %arg12[%c0_187, %c0_188] : memref<8x32xf32, #tpu.memory_space<vmem>>, vector<8x32xf32>
    tpu.vector_store %arg12[%c0_187, %c0_188], %533 {strides = array<i32>} : memref<8x32xf32, #tpu.memory_space<vmem>>, vector<8x32xf32>,
    %c0_i32_189 = arith.constant 0 : i32
    %535 = arith.cmpi eq, %arg1, %c0_i32_189 : i32
    %536 = arith.extui %535 : i1 to i32
    %c0_i32_190 = arith.constant 0 : i32
    %537 = arith.cmpi ne, %536, %c0_i32_190 : i32
    scf.if %537 {
      %c0_191 = arith.constant 0 : index
      %c0_192 = arith.constant 0 : index
      %538 = vector.load %arg9[%c0_191, %c0_192] : memref<32x4xf32, #tpu.memory_space<vmem>>, vector<32x4xf32>
      %cst_193 = arith.constant dense<0.000000e+00> : vector<8x4xf32>
      %539 = tpu.matmul %533, %538, %cst_193 {dimension_numbers = #tpu.dot_dimension_numbers<[1], [0], [0], [1], [0, 0, 1, 1], [], []>} : vector<8x32xf32>, vector<32x4xf32>, vector<8x4xf32> -> vector<8x4xf32>
      %c0_194 = arith.constant 0 : index
      %c0_195 = arith.constant 0 : index
      %540 = vector.load %arg10[%c0_194, %c0_195] : memref<1x4xf32, #tpu.memory_space<vmem>>, vector<1x4xf32>
      %541 = vector.broadcast %540 : vector<1x4xf32> to vector<8x4xf32>
      %542 = arith.addf %539, %541 : vector<8x4xf32>
      %c0_196 = arith.constant 0 : index
      %c0_197 = arith.constant 0 : index
      %543 = vector.load %arg11[%c0_196, %c0_197] : memref<8x4xf32, #tpu.memory_space<vmem>>, vector<8x4xf32>
      tpu.vector_store %arg11[%c0_196, %c0_197], %542 {strides = array<i32>} : memref<8x4xf32, #tpu.memory_space<vmem>>, vector<8x4xf32>,
    } else {
    }
    return
  }
  func.func @transform_0(%arg0: i32, %arg1: i32) -> (i32, i32, i32) {
    %c0_i32 = arith.constant 0 : i32
    %c0_i32_0 = arith.constant 0 : i32
    return %arg1, %arg0, %c0_i32 : i32, i32, i32
  }
  func.func @transform_1(%arg0: i32, %arg1: i32) -> (i32, i32) {
    %c0_i32 = arith.constant 0 : i32
    %c0_i32_0 = arith.constant 0 : i32
    return %arg0, %c0_i32 : i32, i32
  }
  func.func @transform_2(%arg0: i32, %arg1: i32) -> (i32, i32) {
    %c0_i32 = arith.constant 0 : i32
    %c0_i32_0 = arith.constant 0 : i32
    %c0_i32_1 = arith.constant 0 : i32
    return %c0_i32, %c0_i32_0 : i32, i32
  }
  func.func @transform_3(%arg0: i32, %arg1: i32) -> (i32, i32) {
    %c0_i32 = arith.constant 0 : i32
    %c0_i32_0 = arith.constant 0 : i32
    %c0_i32_1 = arith.constant 0 : i32
    return %c0_i32, %c0_i32_0 : i32, i32
  }
  func.func @transform_4(%arg0: i32, %arg1: i32) -> (i32, i32) {
    %c0_i32 = arith.constant 0 : i32
    %c0_i32_0 = arith.constant 0 : i32
    %c0_i32_1 = arith.constant 0 : i32
    return %c0_i32, %c0_i32_0 : i32, i32
  }
  func.func @transform_5(%arg0: i32, %arg1: i32) -> (i32, i32) {
    %c0_i32 = arith.constant 0 : i32
    %c0_i32_0 = arith.constant 0 : i32
    %c0_i32_1 = arith.constant 0 : i32
    return %c0_i32, %c0_i32_0 : i32, i32
  }
  func.func @transform_6(%arg0: i32, %arg1: i32) -> (i32, i32) {
    %c0_i32 = arith.constant 0 : i32
    %c0_i32_0 = arith.constant 0 : i32
    %c0_i32_1 = arith.constant 0 : i32
    return %c0_i32, %c0_i32_0 : i32, i32
  }
  func.func @transform_7(%arg0: i32, %arg1: i32) -> (i32, i32) {
    %c0_i32 = arith.constant 0 : i32
    %c0_i32_0 = arith.constant 0 : i32
    %c0_i32_1 = arith.constant 0 : i32
    return %c0_i32, %c0_i32_0 : i32, i32
  }
  func.func @transform_8(%arg0: i32, %arg1: i32) -> (i32, i32) {
    %c0_i32 = arith.constant 0 : i32
    %c0_i32_0 = arith.constant 0 : i32
    %c0_i32_1 = arith.constant 0 : i32
    return %c0_i32, %c0_i32_0 : i32, i32
  }
  func.func @transform_9(%arg0: i32, %arg1: i32) -> (i32, i32) {
    %c0_i32 = arith.constant 0 : i32
    %c0_i32_0 = arith.constant 0 : i32
    return %arg0, %c0_i32 : i32, i32
  }
}

</mosaic_0001>

<bundles_post_ra>
// kernel: tpu_custom_call.1
= control target key start
LH: loop header
LB: loop body
LE: loop exit
PB: predicated region body
PF: predicated region fallthrough
CT: control target
= control target key end

     0   :  { %14 = vsyncpa [#allocation4], 0  ;;  %s13195_s0 = inlined_call_operand.vmem [shape: f32[7,8,384], index: 0, kind: input, shape index: {}]   ;;  %s13196_s1 = inlined_call_operand.vmem [shape: f32[8,32], index: 1, kind: input, shape index: {}]   ;;  %s13197_s2 = inlined_call_operand.hbm [shape: f32[32,128], index: 2, kind: input, shape index: {}]   ;;  %s13198_s3 = inlined_call_operand.vmem [shape: f32[1,128], index: 3, kind: input, shape index: {}]   ;;  %s13199_s4 = inlined_call_operand.hbm [shape: f32[128,128], index: 4, kind: input, shape index: {}]   ;;  %s13200_s5 = inlined_call_operand.vmem [shape: f32[1,128], index: 5, kind: input, shape index: {}]   ;;  %s13201_s6 = inlined_call_operand.vmem [shape: f32[128,32], index: 6, kind: input, shape index: {}]   ;;  %s13202_s7 = inlined_call_operand.vmem [shape: f32[32,4], index: 7, kind: input, shape index: {}]   ;;  %s13203_s8 = inlined_call_operand.vmem [shape: f32[1,4], index: 8, kind: input, shape index: {}]   ;;  %s13204_s9 = inlined_call_operand.vmem [shape: f32[8,4], index: 9, kind: output, shape index: {}]  }
   0x1   :  { %15 = vsyncpa [#allocation6], 0  ;;  %s11477_s30 = smov [#allocation3]   ;;  %s11429_s13 = scalar_lea.hbm %s13197_s2, 512 }
   0x2   :  { %s25_s10 = sshll.u32 %s11477_s30, 4  ;;  %p11430_p0 = scmp.ne.s32.totalorder %s13197_s2, %s11429_s13  ;;  %s26_s10 = int_to_ptr.vmem [resolvable:$true] %s25_s10 }
   0x3   :  { %p11433_p1 = scmp.lt.u32.totalorder %s11429_s13, %s13197_s2 }
   0x5   :  { %p11435_p2 = pnand %p11433_p1, %p11430_p0 }
   0x7   :  { %11438 = shalt.err (!%p11435_p2)
}
   0x8   :  { %s11439_s18 = scalar_lea.vmem %s26_s10, 512  ;;  %p11444_p4 = scmp.lt.s32.totalorder %s26_s10, %s26_s10 }
   0x9   :  { %p11440_p3 = scmp.ne.s32.totalorder %s26_s10, %s11439_s18  ;;  %p11445_p5 = scmp.lt.s32.totalorder %s11439_s18, %s11439_s18 }
   0xb   :  { %p11446_p6 = por %p11445_p5, %p11444_p4 }
   0xd   :  { %p11447_p7 = pnand %p11446_p6, %p11440_p3 }
   0xf   :  { %11450 = shalt.err (!%p11447_p7)
}
  0x10   :  { %s11478_s19 = smov 128   ;;  %s11479_s20 = smov 8  }
  0x11   :  { %31 = dma.hbm_to_vmem [thread:$0]  %s13197_s2, 512, %s26_s10, [#allocation4], %s11478_s19, %s11478_s19, %s11479_s20  }
  0x12   :  { %s11480_s23 = smov [#allocation5]   ;;  %s11451_s27 = scalar_lea.hbm %s13199_s4, 2048 }
  0x13   :  { %s39_s24 = sshll.u32 %s11480_s23, 4  ;;  %p11452_p8 = scmp.ne.s32.totalorder %s13199_s4, %s11451_s27  ;;  %s40_s24 = int_to_ptr.vmem [resolvable:$true] %s39_s24 }
  0x14   :  { %p11455_p9 = scmp.lt.u32.totalorder %s11451_s27, %s13199_s4 }
  0x16   :  { %p11457_p10 = pnand %p11455_p9, %p11452_p8 }
  0x18   :  { %11460 = shalt.err (!%p11457_p10)
}
  0x19   :  { %s11461_s12 = scalar_lea.vmem %s40_s24, 2048  ;;  %p11466_p12 = scmp.lt.s32.totalorder %s40_s24, %s40_s24 }
  0x1a   :  { %p11462_p11 = scmp.ne.s32.totalorder %s40_s24, %s11461_s12  ;;  %p11467_p13 = scmp.lt.s32.totalorder %s11461_s12, %s11461_s12 }
  0x1c   :  { %p11468_p0 = por %p11467_p13, %p11466_p12 }
  0x1e   :  { %p11469_p1 = pnand %p11468_p0, %p11462_p11 }
  0x20   :  { %11472 = shalt.err (!%p11469_p1)
}
  0x21   :  { %45 = dma.hbm_to_vmem [thread:$0]  %s13199_s4, 2048, %s40_s24, [#allocation6], %s11478_s19, %s11478_s19, %s11479_s20  }
  0x22   :  { %11473 = dma.done.wait [#allocation4], 512  }
  0x23   :  { %11474 = vsyncadd [#allocation4], 4294966784 }
  0x24   :  { %11475 = dma.done.wait [#allocation6], 2048  }
  0x25   :  { %11476 = vsyncadd [#allocation6], 4294965248  ;;  %v11481_v0 = vmov 0.0|0.0   ;;  %vm11482_vm0 = vmmov 0   ;;  %v11483_v1 = vmov 0.0   ;;  %vm65_vm1 = vcmask 261120  }
  0x26   :  { %9842 = vmatprep.subr.bf16.mxu0 %v11481_v0  ;;  %7571 = vmatprep.mubr.msk.f32.mxu0 %vm11482_vm0, %v11483_v1  ;;  %v67_v2 = vld [vmem:[#allocation3] sm:$0xff]  ;;  %v68_v3 = vld [vmem:[#allocation3 + $0x8] sm:$0xff]  ;;  %v69_v4 = vld [vmem:[#allocation3 + $0x10] sm:$0xff]  ;;  %vm6408_vm2 = vcmask 31744  }
  0x27   :  { %9848 = vmatprep.subr.bf16.mxu1 %v11481_v0  ;;  %7606 = vmatprep.mubr.msk.f32.mxu1 %vm11482_vm0, %v11483_v1  ;;  %v11564_v5 = vpack.c.bf16 %v68_v3, %v67_v2  ;;  %v70_v6 = vld [vmem:[#allocation3 + $0x18] sm:$0xff]  ;;  %v72_v8 = vld [vmem:[#allocation5] sm:$0xff]  ;;  %v73_v9 = vld [vmem:[#allocation5 + $0x8] sm:$0xff] }
  0x28   :  { %v64_v7 = vld [vmem:[%s13196_s1] sm:$0xff]  ;;  %v74_v10 = vld [vmem:[#allocation5 + $0x10] sm:$0xff]  ;;  %v11571_v12 = vpack.c.bf16 %v70_v6, %v69_v4  ;;  %v11573_v13 = vpack.c.bf16 %v73_v9, %v72_v8  ;;  %v76_v15 = vld [vmem:[#allocation5 + $0x20] sm:$0xff] }
  0x29   :  { %66 = vst.msk [vmem:[#allocation2] sm:$0xff] %vm65_vm1, %v64_v7  ;;  %v75_v11 = vld [vmem:[#allocation5 + $0x18] sm:$0xff]  ;;  %9844 = vmatpush3.bf16.msra.mxu0 %v11564_v5  ;;  %v77_v16 = vld [vmem:[#allocation5 + $0x28] sm:$0xff]  ;;  %v78_v19 = vld [vmem:[#allocation5 + $0x30] sm:$0xff] }
  0x2a   :  { %9845 = vmatprep.subr.bf16.mxu0 %v11481_v0  ;;  %9850 = vmatpush3.bf16.msra.mxu1 %v11573_v13  ;;  %v11577_v14 = vpack.c.bf16 %v75_v11, %v74_v10  ;;  %v11585_v18 = vpack.c.bf16 %v77_v16, %v76_v15  ;;  %v79_v20 = vld [vmem:[#allocation5 + $0x38] sm:$0xff]  ;;  %v80_v22 = vld [vmem:[#allocation5 + $0x40] sm:$0xff]  ;;  %v81_v23 = vld [vmem:[#allocation5 + $0x48] sm:$0xff] }
  0x2b   :  { %9851 = vmatprep.subr.bf16.mxu1 %v11481_v0  ;;  %v11593_v21 = vpack.c.bf16 %v79_v20, %v78_v19  ;;  %v11597_v24 = vpack.c.bf16 %v81_v23, %v80_v22  ;;  %v82_v25 = vld [vmem:[#allocation5 + $0x50] sm:$0xff]  ;;  %v83_v26 = vld [vmem:[#allocation5 + $0x58] sm:$0xff]  ;;  %v84_v28 = vld [vmem:[#allocation5 + $0x60] sm:$0xff] }
  0x2c   :  { %v11601_v27 = vpack.c.bf16 %v83_v26, %v82_v25  ;;  %v85_v29 = vld [vmem:[#allocation5 + $0x68] sm:$0xff]  ;;  %v86_v31 = vld [vmem:[#allocation5 + $0x70] sm:$0xff]  ;;  %v87_v32 = vld [vmem:[#allocation5 + $0x78] sm:$0xff] }
  0x2d   :  { %9847 = vmatpush3.bf16.msra.mxu0 %v11571_v12  ;;  %v11605_v30 = vpack.c.bf16 %v85_v29, %v84_v28  ;;  %v11610_v33 = vpack.c.bf16 %v87_v32, %v86_v31  ;;  %v89_v34 = vld [vmem:[%s13201_s6] sm:$0xff]  ;;  %v90_v35 = vld [vmem:[%s13201_s6 + $0x8] sm:$0xff]  ;;  %v91_v36 = vld [vmem:[%s13201_s6 + $0x10] sm:$0xff] }
  0x2e   :  { %9872 = vmatprep.subr.bf16.mxu0 %v11481_v0  ;;  %9853 = vmatpush3.bf16.msra.mxu1 %v11577_v14  ;;  %v11623_v37 = vpack.c.bf16 %v90_v35, %v89_v34  ;;  %v92_v38 = vld [vmem:[%s13201_s6 + $0x18] sm:$0xff]  ;;  %v93_v40 = vld [vmem:[%s13201_s6 + $0x20] sm:$0xff]  ;;  %v94_v41 = vld [vmem:[%s13201_s6 + $0x28] sm:$0xff] }
  0x2f   :  { %9854 = vmatprep.subr.bf16.mxu1 %v11481_v0  ;;  %v11629_v39 = vpack.c.bf16 %v92_v38, %v91_v36  ;;  %v11639_v42 = vpack.c.bf16 %v94_v41, %v93_v40  ;;  %v95_v43 = vld [vmem:[%s13201_s6 + $0x30] sm:$0xff]  ;;  %v96_v44 = vld [vmem:[%s13201_s6 + $0x38] sm:$0xff]  ;;  %v11657_v46 = vld [vmem:[%s13198_s3] ss:$0 sm:$0xff] }
  0x30   :  { %v11582_v17 = vld [vmem:[#allocation2] sm:$0xff]  ;;  %v11649_v45 = vpack.c.bf16 %v96_v44, %v95_v43  ;;  %v98_v52 = vld [vmem:[%s13201_s6 + $0x48] sm:$0xff]  ;;  %v99_v54 = vld [vmem:[%s13201_s6 + $0x50] sm:$0xff] }
  0x31   :  { %7572 = vmatmul.mubr.msk.f32.vlgmr.msra.gmra.mrb[0].mxu0 %vm65_vm1, %v11582_v17  ;;  %v97_v51 = vld [vmem:[%s13201_s6 + $0x40] sm:$0xff]  ;;  %v100_v55 = vld [vmem:[%s13201_s6 + $0x58] sm:$0xff]  ;;  %v102_v58 = vld [vmem:[%s13201_s6 + $0x68] sm:$0xff] }
  0x32   :  { %7641 = vmatprep.mubr.msk.f32.mxu0 %vm11482_vm0, %v11483_v1  ;;  %9856 = vmatpush3.bf16.msra.mxu1 %v11585_v18  ;;  %v11672_v53 = vpack.c.bf16 %v98_v52, %v97_v51  ;;  %v11682_v56 = vpack.c.bf16 %v100_v55, %v99_v54  ;;  %v101_v57 = vld [vmem:[%s13201_s6 + $0x60] sm:$0xff]  ;;  %v103_v60 = vld [vmem:[%s13201_s6 + $0x70] sm:$0xff]  ;;  %v104_v61 = vld [vmem:[%s13201_s6 + $0x78] sm:$0xff] }
  0x33   :  { %9857 = vmatprep.subr.bf16.mxu1 %v11481_v0  ;;  %9874 = vmatpush3.bf16.msra.mxu0 %v11623_v37  ;;  %v11691_v59 = vpack.c.bf16 %v102_v58, %v101_v57  ;;  %v11701_v62 = vpack.c.bf16 %v104_v61, %v103_v60  ;;  %v11709_v63 = vld [vmem:[%s13200_s5] ss:$0 sm:$0xff]  ;;  %v11769_v23 = vld [vmem:[%s13195_s0 + $0x10] sm:$0xff]  ;;  %v11775_v26 = vld [vmem:[%s13195_s0 + $0x8] sm:$0xff] }
  0x34   :  { %9875 = vmatprep.subr.bf16.mxu0 %v11481_v0  ;;  %v11715_v6 = vld [vmem:[%s13195_s0] sm:$0xff]  ;;  %v109_v25 = vmul.f32 0.5, %v11769_v23 }
  0x36   :  { %9859 = vmatpush3.bf16.msra.mxu1 %v11593_v21  ;;  %v110_v32 = vadd.f32 %v109_v25, %v11775_v26 }
  0x37   :  { %9860 = vmatprep.subr.bf16.mxu1 %v11481_v0  ;;  %9877 = vmatpush3.bf16.msra.mxu0 %v11629_v39 }
  0x38   :  { %9878 = vmatprep.subr.bf16.mxu0 %v11481_v0  ;;  %v111_v34 = vmul.f32 0.5, %v110_v32 }
  0x3a   :  { %9862 = vmatpush3.bf16.msra.mxu1 %v11597_v24  ;;  %v112_v35 = vadd.f32 %v111_v34, %v11715_v6 }
  0x3b   :  { %9863 = vmatprep.subr.bf16.mxu1 %v11481_v0  ;;  %9880 = vmatpush3.bf16.msra.mxu0 %v11639_v42 }
  0x3c   :  { %9881 = vmatprep.subr.bf16.mxu0 %v11481_v0 }
  0x3e   :  { %9865 = vmatpush3.bf16.msra.mxu1 %v11601_v27 }
  0x3f   :  { %9866 = vmatprep.subr.bf16.mxu1 %v11481_v0  ;;  %9883 = vmatpush3.bf16.msra.mxu0 %v11649_v45 }
  0x40   :  { %9884 = vmatprep.subr.bf16.mxu0 %v11481_v0 }
  0x42   :  { %9868 = vmatpush3.bf16.msra.mxu1 %v11605_v30 }
  0x43   :  { %9869 = vmatprep.subr.bf16.mxu1 %v11481_v0  ;;  %9886 = vmatpush3.bf16.msra.mxu0 %v11672_v53 }
  0x44   :  { %9887 = vmatprep.subr.bf16.mxu0 %v11481_v0 }
  0x46   :  { %9871 = vmatpush3.bf16.msra.mxu1 %v11610_v33 }
  0x47   :  { %9896 = vmatprep.subr.bf16.mxu1 %v11481_v0  ;;  %9889 = vmatpush3.bf16.msra.mxu0 %v11682_v56 }
  0x48   :  { %9890 = vmatprep.subr.bf16.mxu0 %v11481_v0 }
  0x4b   :  { %9892 = vmatpush3.bf16.msra.mxu0 %v11691_v59 }
  0x4c   :  { %9893 = vmatprep.subr.bf16.mxu0 %v11481_v0 }
  0x4f   :  { %9895 = vmatpush3.bf16.msra.mxu0 %v11701_v62 }
  0x50   :  { %9902 = vmatprep.subr.bf16.mxu0 %v11481_v0 }
 0x104   :  { %v191_v47 = vpop.f32.mrb[0].mxu0 }
 0x105   :  { %v192_v48 = vadd.f32 %v11657_v46, %v191_v47  ;;  %v7573_v49 = vpop.f32.mrb[1].mxu0 }
 0x107   :  { %v195_v50 = vmax.f32 %v192_v48, 0.0 }
 0x109   :  { %7607 = vmatmul.mubr.f32.vlgmr.msra.gmra.mrb[0].mxu1 %v195_v50 }
 0x10a   :  { %9898 = vmatpush3.bf16.msra.mxu1 %v11564_v5  ;;  %7652 = vmatprep.mubr.msk.f32.mxu1 %vm11482_vm0, %v11483_v1 }
 0x10b   :  { %9899 = vmatprep.subr.bf16.mxu1 %v11481_v0 }
 0x10e   :  { %9901 = vmatpush3.bf16.msra.mxu1 %v11571_v12 }
 0x10f   :  { %9926 = vmatprep.subr.bf16.mxu1 %v11481_v0 }
 0x1dc   :  { %v268_v2 = vpop.f32.mrb[0].mxu1 }
 0x1dd   :  { %v269_v3 = vadd.f32 %v11709_v63, %v268_v2  ;;  %v7608_v4 = vpop.f32.mrb[1].mxu1 }
 0x1df   :  { %11367 = vtanh.f32 %v269_v3 }
 0x1e9   :  { %v11368_v7 = vpop.eup %11367 }
 0x1ea   :  { %v273_v8 = vmul.f32 %v11368_v7, %v11715_v6 }
 0x1ec   :  { %7642 = vmatmul.mubr.f32.vlgmr.msra.gmra.mrb[2].mxu0 %v273_v8 }
 0x1ed   :  { %9904 = vmatpush3.bf16.msra.mxu0 %v11573_v13  ;;  %7687 = vmatprep.mubr.msk.f32.mxu0 %vm11482_vm0, %v11483_v1 }
 0x1ee   :  { %9905 = vmatprep.subr.bf16.mxu0 %v11481_v0 }
 0x1f1   :  { %9907 = vmatpush3.bf16.msra.mxu0 %v11577_v14 }
 0x1f2   :  { %9908 = vmatprep.subr.bf16.mxu0 %v11481_v0 }
 0x1f5   :  { %9910 = vmatpush3.bf16.msra.mxu0 %v11585_v18 }
 0x1f6   :  { %9911 = vmatprep.subr.bf16.mxu0 %v11481_v0 }
 0x1f9   :  { %9913 = vmatpush3.bf16.msra.mxu0 %v11593_v21 }
 0x1fa   :  { %9914 = vmatprep.subr.bf16.mxu0 %v11481_v0 }
 0x1fd   :  { %9916 = vmatpush3.bf16.msra.mxu0 %v11597_v24 }
 0x1fe   :  { %9917 = vmatprep.subr.bf16.mxu0 %v11481_v0 }
 0x201   :  { %9919 = vmatpush3.bf16.msra.mxu0 %v11601_v27 }
 0x202   :  { %9920 = vmatprep.subr.bf16.mxu0 %v11481_v0 }
 0x205   :  { %9922 = vmatpush3.bf16.msra.mxu0 %v11605_v30 }
 0x206   :  { %9923 = vmatprep.subr.bf16.mxu0 %v11481_v0 }
 0x209   :  { %9925 = vmatpush3.bf16.msra.mxu0 %v11610_v33 }
 0x20a   :  { %9950 = vmatprep.subr.bf16.mxu0 %v11481_v0 }
 0x2bf   :  { %v11736_v9 = vpop.f32.mrb[2].mxu0 }
 0x2c0   :  { %v344_v10 = vmul.f32 0.5, %v11736_v9  ;;  %v7643_v11 = vpop.f32.mrb[3].mxu0 }
 0x2c2   :  { %v345_v15 = vadd.f32 %v344_v10, %v11582_v17 }
 0x2c4   :  { %7653 = vmatmul.mubr.msk.f32.vlgmr.msra.gmra.mrb[2].mxu1 %vm65_vm1, %v345_v15 }
 0x2c5   :  { %9928 = vmatpush3.bf16.msra.mxu1 %v11623_v37  ;;  %7722 = vmatprep.mubr.msk.f32.mxu1 %vm11482_vm0, %v11483_v1 }
 0x2c6   :  { %9929 = vmatprep.subr.bf16.mxu1 %v11481_v0 }
 0x2c9   :  { %9931 = vmatpush3.bf16.msra.mxu1 %v11629_v39 }
 0x2ca   :  { %9932 = vmatprep.subr.bf16.mxu1 %v11481_v0 }
 0x2cd   :  { %9934 = vmatpush3.bf16.msra.mxu1 %v11639_v42 }
 0x2ce   :  { %9935 = vmatprep.subr.bf16.mxu1 %v11481_v0 }
 0x2d1   :  { %9937 = vmatpush3.bf16.msra.mxu1 %v11649_v45 }
 0x2d2   :  { %9938 = vmatprep.subr.bf16.mxu1 %v11481_v0 }
 0x2d5   :  { %9940 = vmatpush3.bf16.msra.mxu1 %v11672_v53 }
 0x2d6   :  { %9941 = vmatprep.subr.bf16.mxu1 %v11481_v0 }
 0x2d9   :  { %9943 = vmatpush3.bf16.msra.mxu1 %v11682_v56 }
 0x2da   :  { %9944 = vmatprep.subr.bf16.mxu1 %v11481_v0 }
 0x2dd   :  { %9946 = vmatpush3.bf16.msra.mxu1 %v11691_v59 }
 0x2de   :  { %9947 = vmatprep.subr.bf16.mxu1 %v11481_v0 }
 0x2e1   :  { %9949 = vmatpush3.bf16.msra.mxu1 %v11701_v62 }
 0x2e2   :  { %9956 = vmatprep.subr.bf16.mxu1 %v11481_v0 }
 0x397   :  { %v415_v16 = vpop.f32.mrb[2].mxu1 }
 0x398   :  { %v416_v19 = vadd.f32 %v11657_v46, %v415_v16  ;;  %v7654_v20 = vpop.f32.mrb[3].mxu1 }
 0x399   :  { %v113_v20 = vadd.f32 %v11775_v26, %v11715_v6 }
 0x39a   :  { %v419_v22 = vmax.f32 %v416_v19, 0.0 }
 0x39c   :  { %7688 = vmatmul.mubr.f32.vlgmr.msra.gmra.mrb[4].mxu0 %v419_v22  ;;  %v114_v22 = vadd.f32 %v113_v20, %v11769_v23 }
 0x39d   :  { %9952 = vmatpush3.bf16.msra.mxu0 %v11564_v5  ;;  %7733 = vmatprep.mubr.msk.f32.mxu0 %vm11482_vm0, %v11483_v1 }
 0x39e   :  { %9953 = vmatprep.subr.bf16.mxu0 %v11481_v0 }
 0x3a1   :  { %9955 = vmatpush3.bf16.msra.mxu0 %v11571_v12 }
 0x3a2   :  { %9980 = vmatprep.subr.bf16.mxu0 %v11481_v0 }
 0x46f   :  { %v486_v28 = vpop.f32.mrb[4].mxu0 }
 0x470   :  { %v487_v29 = vadd.f32 %v11709_v63, %v486_v28  ;;  %v7689_v31 = vpop.f32.mrb[5].mxu0 }
 0x472   :  { %11369 = vtanh.f32 %v487_v29 }
 0x47c   :  { %v11370_v36 = vpop.eup %11369 }
 0x47d   :  { %v491_v38 = vmul.f32 %v11370_v36, %v112_v35 }
 0x47f   :  { %7723 = vmatmul.mubr.f32.vlgmr.msra.gmra.mrb[4].mxu1 %v491_v38 }
 0x480   :  { %9958 = vmatpush3.bf16.msra.mxu1 %v11573_v13  ;;  %7768 = vmatprep.mubr.msk.f32.mxu1 %vm11482_vm0, %v11483_v1 }
 0x481   :  { %9959 = vmatprep.subr.bf16.mxu1 %v11481_v0 }
 0x484   :  { %9961 = vmatpush3.bf16.msra.mxu1 %v11577_v14 }
 0x485   :  { %9962 = vmatprep.subr.bf16.mxu1 %v11481_v0 }
 0x488   :  { %9964 = vmatpush3.bf16.msra.mxu1 %v11585_v18 }
 0x489   :  { %9965 = vmatprep.subr.bf16.mxu1 %v11481_v0 }
 0x48c   :  { %9967 = vmatpush3.bf16.msra.mxu1 %v11593_v21 }
 0x48d   :  { %9968 = vmatprep.subr.bf16.mxu1 %v11481_v0 }
 0x490   :  { %9970 = vmatpush3.bf16.msra.mxu1 %v11597_v24 }
 0x491   :  { %9971 = vmatprep.subr.bf16.mxu1 %v11481_v0 }
 0x494   :  { %9973 = vmatpush3.bf16.msra.mxu1 %v11601_v27 }
 0x495   :  { %9974 = vmatprep.subr.bf16.mxu1 %v11481_v0 }
 0x498   :  { %9976 = vmatpush3.bf16.msra.mxu1 %v11605_v30 }
 0x499   :  { %9977 = vmatprep.subr.bf16.mxu1 %v11481_v0 }
 0x49c   :  { %9979 = vmatpush3.bf16.msra.mxu1 %v11610_v33 }
 0x49d   :  { %10004 = vmatprep.subr.bf16.mxu1 %v11481_v0 }
 0x552   :  { %v558_v40 = vpop.f32.mrb[4].mxu1 }
 0x553   :  { %v562_v41 = vmul.f32 0.5, %v558_v40  ;;  %v997_v43 = vmul.f32 2.0, %v558_v40  ;;  %v7724_v44 = vpop.f32.mrb[5].mxu1 }
 0x555   :  { %v563_v47 = vadd.f32 %v562_v41, %v11582_v17  ;;  %v998_v48 = vadd.f32 %v997_v43, %v11736_v9  ;;  %v11928_v41 = vld [vmem:[%s13195_s0 + $0x18] sm:$0xff] }
 0x557   :  { %7734 = vmatmul.mubr.msk.f32.vlgmr.msra.gmra.mrb[6].mxu0 %vm65_vm1, %v563_v47 }
 0x558   :  { %9982 = vmatpush3.bf16.msra.mxu0 %v11623_v37  ;;  %7803 = vmatprep.mubr.msk.f32.mxu0 %vm11482_vm0, %v11483_v1 }
 0x559   :  { %9983 = vmatprep.subr.bf16.mxu0 %v11481_v0 }
 0x55c   :  { %9985 = vmatpush3.bf16.msra.mxu0 %v11629_v39 }
 0x55d   :  { %9986 = vmatprep.subr.bf16.mxu0 %v11481_v0 }
 0x560   :  { %9988 = vmatpush3.bf16.msra.mxu0 %v11639_v42 }
 0x561   :  { %9989 = vmatprep.subr.bf16.mxu0 %v11481_v0 }
 0x564   :  { %9991 = vmatpush3.bf16.msra.mxu0 %v11649_v45 }
 0x565   :  { %9992 = vmatprep.subr.bf16.mxu0 %v11481_v0 }
 0x568   :  { %9994 = vmatpush3.bf16.msra.mxu0 %v11672_v53 }
 0x569   :  { %9995 = vmatprep.subr.bf16.mxu0 %v11481_v0 }
 0x56c   :  { %9997 = vmatpush3.bf16.msra.mxu0 %v11682_v56 }
 0x56d   :  { %9998 = vmatprep.subr.bf16.mxu0 %v11481_v0 }
 0x570   :  { %10000 = vmatpush3.bf16.msra.mxu0 %v11691_v59 }
 0x571   :  { %10001 = vmatprep.subr.bf16.mxu0 %v11481_v0 }
 0x574   :  { %10003 = vmatpush3.bf16.msra.mxu0 %v11701_v62 }
 0x575   :  { %10010 = vmatprep.subr.bf16.mxu0 %v11481_v0 }
 0x62a   :  { %v633_v49 = vpop.f32.mrb[6].mxu0 }
 0x62b   :  { %v634_v50 = vadd.f32 %v11657_v46, %v633_v49  ;;  %v7735_v51 = vpop.f32.mrb[7].mxu0 }
 0x62d   :  { %v637_v52 = vmax.f32 %v634_v50, 0.0 }
 0x62f   :  { %7769 = vmatmul.mubr.f32.vlgmr.msra.gmra.mrb[6].mxu1 %v637_v52 }
 0x630   :  { %10006 = vmatpush3.bf16.msra.mxu1 %v11564_v5  ;;  %7814 = vmatprep.mubr.msk.f32.mxu1 %vm11482_vm0, %v11483_v1 }
 0x631   :  { %10007 = vmatprep.subr.bf16.mxu1 %v11481_v0 }
 0x634   :  { %10009 = vmatpush3.bf16.msra.mxu1 %v11571_v12 }
 0x635   :  { %10034 = vmatprep.subr.bf16.mxu1 %v11481_v0 }
 0x702   :  { %v704_v54 = vpop.f32.mrb[6].mxu1 }
 0x703   :  { %v705_v55 = vadd.f32 %v11709_v63, %v704_v54  ;;  %v7770_v57 = vpop.f32.mrb[7].mxu1 }
 0x704   :  { %v11982_v57 = vld [vmem:[%s13195_s0 + $0x28] sm:$0xff] }
 0x705   :  { %11371 = vtanh.f32 %v705_v55 }
 0x70f   :  { %v11372_v58 = vpop.eup %11371 }
 0x710   :  { %v709_v60 = vmul.f32 %v11372_v58, %v112_v35  ;;  %v1008_v58 = vmul.f32 0.5, %v11982_v57 }
 0x712   :  { %7804 = vmatmul.mubr.f32.vlgmr.msra.gmra.mrb[8].mxu0 %v709_v60  ;;  %v11988_v60 = vld [vmem:[%s13195_s0 + $0x20] sm:$0xff] }
 0x713   :  { %10012 = vmatpush3.bf16.msra.mxu0 %v11573_v13  ;;  %7849 = vmatprep.mubr.msk.f32.mxu0 %vm11482_vm0, %v11483_v1 }
 0x714   :  { %10013 = vmatprep.subr.bf16.mxu0 %v11481_v0 }
 0x717   :  { %10015 = vmatpush3.bf16.msra.mxu0 %v11577_v14 }
 0x718   :  { %10016 = vmatprep.subr.bf16.mxu0 %v11481_v0 }
 0x71b   :  { %10018 = vmatpush3.bf16.msra.mxu0 %v11585_v18 }
 0x71c   :  { %10019 = vmatprep.subr.bf16.mxu0 %v11481_v0 }
 0x71f   :  { %10021 = vmatpush3.bf16.msra.mxu0 %v11593_v21 }
 0x720   :  { %10022 = vmatprep.subr.bf16.mxu0 %v11481_v0 }
 0x723   :  { %10024 = vmatpush3.bf16.msra.mxu0 %v11597_v24 }
 0x724   :  { %10025 = vmatprep.subr.bf16.mxu0 %v11481_v0 }
 0x727   :  { %10027 = vmatpush3.bf16.msra.mxu0 %v11601_v27 }
 0x728   :  { %10028 = vmatprep.subr.bf16.mxu0 %v11481_v0 }
 0x72b   :  { %10030 = vmatpush3.bf16.msra.mxu0 %v11605_v30 }
 0x72c   :  { %10031 = vmatprep.subr.bf16.mxu0 %v11481_v0 }
 0x72f   :  { %10033 = vmatpush3.bf16.msra.mxu0 %v11610_v33 }
 0x730   :  { %10058 = vmatprep.subr.bf16.mxu0 %v11481_v0 }
 0x7e5   :  { %v776_v61 = vpop.f32.mrb[8].mxu0 }
 0x7e6   :  { %v780_v2 = vadd.f32 %v776_v61, %v11582_v17  ;;  %v999_v3 = vmul.f32 2.0, %v776_v61  ;;  %v7805_v4 = vpop.f32.mrb[9].mxu0 }
 0x7e7   :  { %v1009_v4 = vadd.f32 %v11988_v60, %v1008_v58 }
 0x7e8   :  { %7815 = vmatmul.mubr.msk.f32.vlgmr.msra.gmra.mrb[8].mxu1 %vm65_vm1, %v780_v2  ;;  %v1000_v7 = vadd.f32 %v999_v3, %v998_v48 }
 0x7e9   :  { %10036 = vmatpush3.bf16.msra.mxu1 %v11623_v37  ;;  %7884 = vmatprep.mubr.msk.f32.mxu1 %vm11482_vm0, %v11483_v1 }
 0x7ea   :  { %10037 = vmatprep.subr.bf16.mxu1 %v11481_v0 }
 0x7ed   :  { %10039 = vmatpush3.bf16.msra.mxu1 %v11629_v39 }
 0x7ee   :  { %10040 = vmatprep.subr.bf16.mxu1 %v11481_v0 }
 0x7f1   :  { %10042 = vmatpush3.bf16.msra.mxu1 %v11639_v42 }
 0x7f2   :  { %10043 = vmatprep.subr.bf16.mxu1 %v11481_v0 }
 0x7f5   :  { %10045 = vmatpush3.bf16.msra.mxu1 %v11649_v45 }
 0x7f6   :  { %10046 = vmatprep.subr.bf16.mxu1 %v11481_v0 }
 0x7f9   :  { %10048 = vmatpush3.bf16.msra.mxu1 %v11672_v53 }
 0x7fa   :  { %10049 = vmatprep.subr.bf16.mxu1 %v11481_v0 }
 0x7fd   :  { %10051 = vmatpush3.bf16.msra.mxu1 %v11682_v56 }
 0x7fe   :  { %10052 = vmatprep.subr.bf16.mxu1 %v11481_v0 }
 0x801   :  { %10054 = vmatpush3.bf16.msra.mxu1 %v11691_v59 }
 0x802   :  { %10055 = vmatprep.subr.bf16.mxu1 %v11481_v0 }
 0x805   :  { %10057 = vmatpush3.bf16.msra.mxu1 %v11701_v62 }
 0x806   :  { %10064 = vmatprep.subr.bf16.mxu1 %v11481_v0 }
 0x8bb   :  { %v850_v8 = vpop.f32.mrb[8].mxu1 }
 0x8bc   :  { %v851_v9 = vadd.f32 %v11657_v46, %v850_v8  ;;  %v7816_v10 = vpop.f32.mrb[9].mxu1 }
 0x8be   :  { %v854_v11 = vmax.f32 %v851_v9, 0.0 }
 0x8c0   :  { %7850 = vmatmul.mubr.f32.vlgmr.msra.gmra.mrb[10].mxu0 %v854_v11 }
 0x8c1   :  { %10060 = vmatpush3.bf16.msra.mxu0 %v11564_v5  ;;  %7895 = vmatprep.mubr.msk.f32.mxu0 %vm11482_vm0, %v11483_v1 }
 0x8c2   :  { %10061 = vmatprep.subr.bf16.mxu0 %v11481_v0 }
 0x8c5   :  { %10063 = vmatpush3.bf16.msra.mxu0 %v11571_v12 }
 0x8c6   :  { %10088 = vmatprep.subr.bf16.mxu0 %v11481_v0 }
 0x993   :  { %v921_v15 = vpop.f32.mrb[10].mxu0 }
 0x994   :  { %v922_v16 = vadd.f32 %v11709_v63, %v921_v15  ;;  %v7851_v19 = vpop.f32.mrb[11].mxu0 }
 0x996   :  { %11373 = vtanh.f32 %v922_v16 }
 0x9a0   :  { %v11374_v25 = vpop.eup %11373 }
 0x9a1   :  { %v926_v28 = vmul.f32 %v11374_v25, %v114_v22 }
 0x9a3   :  { %7885 = vmatmul.mubr.f32.vlgmr.msra.gmra.mrb[10].mxu1 %v926_v28 }
 0x9a4   :  { %10066 = vmatpush3.bf16.msra.mxu1 %v11573_v13  ;;  %7930 = vmatprep.mubr.msk.f32.mxu1 %vm11482_vm0, %v11483_v1 }
 0x9a5   :  { %10067 = vmatprep.subr.bf16.mxu1 %v11481_v0 }
 0x9a8   :  { %10069 = vmatpush3.bf16.msra.mxu1 %v11577_v14 }
 0x9a9   :  { %10070 = vmatprep.subr.bf16.mxu1 %v11481_v0 }
 0x9ac   :  { %10072 = vmatpush3.bf16.msra.mxu1 %v11585_v18 }
 0x9ad   :  { %10073 = vmatprep.subr.bf16.mxu1 %v11481_v0 }
 0x9b0   :  { %10075 = vmatpush3.bf16.msra.mxu1 %v11593_v21 }
 0x9b1   :  { %10076 = vmatprep.subr.bf16.mxu1 %v11481_v0 }
 0x9b4   :  { %10078 = vmatpush3.bf16.msra.mxu1 %v11597_v24 }
 0x9b5   :  { %10079 = vmatprep.subr.bf16.mxu1 %v11481_v0 }
 0x9b8   :  { %10081 = vmatpush3.bf16.msra.mxu1 %v11601_v27 }
 0x9b9   :  { %10082 = vmatprep.subr.bf16.mxu1 %v11481_v0 }
 0x9bc   :  { %10084 = vmatpush3.bf16.msra.mxu1 %v11605_v30 }
 0x9bd   :  { %10085 = vmatprep.subr.bf16.mxu1 %v11481_v0 }
 0x9c0   :  { %10087 = vmatpush3.bf16.msra.mxu1 %v11610_v33 }
 0x9c1   :  { %10112 = vmatprep.subr.bf16.mxu1 %v11481_v0 }
 0xa76   :  { %v993_v6 = vpop.f32.mrb[10].mxu1 }
 0xa77   :  { %v1001_v23 = vadd.f32 %v1000_v7, %v993_v6  ;;  %v7886_v26 = vpop.f32.mrb[11].mxu1  ;;  %v1010_v7 = vmul.f32 0.5, %v1009_v4 }
 0xa79   :  { %v1002_v29 = vmul.f32 0.16666667, %v1001_v23  ;;  %v1011_v8 = vadd.f32 %v11928_v41, %v1010_v7 }
 0xa7b   :  { %v11895_v31 = vadd.f32 %v1002_v29, %v11582_v17 }
 0xa7d   :  { %7896 = vmatmul.mubr.msk.f32.vlgmr.msra.gmra.mrb[12].mxu0 %vm65_vm1, %v11895_v31 }
 0xa7e   :  { %10090 = vmatpush3.bf16.msra.mxu0 %v11623_v37  ;;  %7965 = vmatprep.mubr.msk.f32.mxu0 %vm11482_vm0, %v11483_v1 }
 0xa7f   :  { %10091 = vmatprep.subr.bf16.mxu0 %v11481_v0 }
 0xa82   :  { %10093 = vmatpush3.bf16.msra.mxu0 %v11629_v39 }
 0xa83   :  { %10094 = vmatprep.subr.bf16.mxu0 %v11481_v0 }
 0xa86   :  { %10096 = vmatpush3.bf16.msra.mxu0 %v11639_v42 }
 0xa87   :  { %10097 = vmatprep.subr.bf16.mxu0 %v11481_v0 }
 0xa8a   :  { %10099 = vmatpush3.bf16.msra.mxu0 %v11649_v45 }
 0xa8b   :  { %10100 = vmatprep.subr.bf16.mxu0 %v11481_v0 }
 0xa8e   :  { %10102 = vmatpush3.bf16.msra.mxu0 %v11672_v53 }
 0xa8f   :  { %10103 = vmatprep.subr.bf16.mxu0 %v11481_v0 }
 0xa92   :  { %10105 = vmatpush3.bf16.msra.mxu0 %v11682_v56 }
 0xa93   :  { %10106 = vmatprep.subr.bf16.mxu0 %v11481_v0 }
 0xa96   :  { %10108 = vmatpush3.bf16.msra.mxu0 %v11691_v59 }
 0xa97   :  { %10109 = vmatprep.subr.bf16.mxu0 %v11481_v0 }
 0xa9a   :  { %10111 = vmatpush3.bf16.msra.mxu0 %v11701_v62 }
 0xa9b   :  { %10118 = vmatprep.subr.bf16.mxu0 %v11481_v0 }
 0xb50   :  { %v1083_v17 = vpop.f32.mrb[12].mxu0 }
 0xb51   :  { %v1084_v32 = vadd.f32 %v11657_v46, %v1083_v17  ;;  %v7897_v34 = vpop.f32.mrb[13].mxu0 }
 0xb53   :  { %v1087_v35 = vmax.f32 %v1084_v32, 0.0 }
 0xb55   :  { %7931 = vmatmul.mubr.f32.vlgmr.msra.gmra.mrb[12].mxu1 %v1087_v35 }
 0xb56   :  { %10114 = vmatpush3.bf16.msra.mxu1 %v11564_v5  ;;  %7976 = vmatprep.mubr.msk.f32.mxu1 %vm11482_vm0, %v11483_v1 }
 0xb57   :  { %10115 = vmatprep.subr.bf16.mxu1 %v11481_v0 }
 0xb5a   :  { %10117 = vmatpush3.bf16.msra.mxu1 %v11571_v12 }
 0xb5b   :  { %10142 = vmatprep.subr.bf16.mxu1 %v11481_v0 }
 0xc28   :  { %v1154_v36 = vpop.f32.mrb[12].mxu1 }
 0xc29   :  { %v1155_v38 = vadd.f32 %v11709_v63, %v1154_v36  ;;  %v7932_v40 = vpop.f32.mrb[13].mxu1 }
 0xc2b   :  { %11375 = vtanh.f32 %v1155_v38 }
 0xc35   :  { %v11376_v43 = vpop.eup %11375 }
 0xc36   :  { %v1159_v44 = vmul.f32 %v11376_v43, %v11928_v41 }
 0xc38   :  { %7966 = vmatmul.mubr.f32.vlgmr.msra.gmra.mrb[14].mxu0 %v1159_v44 }
 0xc39   :  { %10120 = vmatpush3.bf16.msra.mxu0 %v11573_v13  ;;  %8011 = vmatprep.mubr.msk.f32.mxu0 %vm11482_vm0, %v11483_v1 }
 0xc3a   :  { %10121 = vmatprep.subr.bf16.mxu0 %v11481_v0 }
 0xc3d   :  { %10123 = vmatpush3.bf16.msra.mxu0 %v11577_v14 }
 0xc3e   :  { %10124 = vmatprep.subr.bf16.mxu0 %v11481_v0 }
 0xc41   :  { %10126 = vmatpush3.bf16.msra.mxu0 %v11585_v18 }
 0xc42   :  { %10127 = vmatprep.subr.bf16.mxu0 %v11481_v0 }
 0xc45   :  { %10129 = vmatpush3.bf16.msra.mxu0 %v11593_v21 }
 0xc46   :  { %10130 = vmatprep.subr.bf16.mxu0 %v11481_v0 }
 0xc49   :  { %10132 = vmatpush3.bf16.msra.mxu0 %v11597_v24 }
 0xc4a   :  { %10133 = vmatprep.subr.bf16.mxu0 %v11481_v0 }
 0xc4d   :  { %10135 = vmatpush3.bf16.msra.mxu0 %v11601_v27 }
 0xc4e   :  { %10136 = vmatprep.subr.bf16.mxu0 %v11481_v0 }
 0xc51   :  { %10138 = vmatpush3.bf16.msra.mxu0 %v11605_v30 }
 0xc52   :  { %10139 = vmatprep.subr.bf16.mxu0 %v11481_v0 }
 0xc55   :  { %10141 = vmatpush3.bf16.msra.mxu0 %v11610_v33 }
 0xc56   :  { %10166 = vmatprep.subr.bf16.mxu0 %v11481_v0 }
 0xd0b   :  { %v11949_v47 = vpop.f32.mrb[14].mxu0 }
 0xd0c   :  { %v1230_v48 = vmul.f32 0.5, %v11949_v47  ;;  %v7967_v49 = vpop.f32.mrb[15].mxu0 }
 0xd0e   :  { %v1231_v50 = vadd.f32 %v1230_v48, %v11895_v31 }
 0xd10   :  { %7977 = vmatmul.mubr.msk.f32.vlgmr.msra.gmra.mrb[14].mxu1 %vm65_vm1, %v1231_v50 }
 0xd11   :  { %10144 = vmatpush3.bf16.msra.mxu1 %v11623_v37  ;;  %8046 = vmatprep.mubr.msk.f32.mxu1 %vm11482_vm0, %v11483_v1 }
 0xd12   :  { %10145 = vmatprep.subr.bf16.mxu1 %v11481_v0 }
 0xd15   :  { %10147 = vmatpush3.bf16.msra.mxu1 %v11629_v39 }
 0xd16   :  { %10148 = vmatprep.subr.bf16.mxu1 %v11481_v0 }
 0xd19   :  { %10150 = vmatpush3.bf16.msra.mxu1 %v11639_v42 }
 0xd1a   :  { %10151 = vmatprep.subr.bf16.mxu1 %v11481_v0 }
 0xd1d   :  { %10153 = vmatpush3.bf16.msra.mxu1 %v11649_v45 }
 0xd1e   :  { %10154 = vmatprep.subr.bf16.mxu1 %v11481_v0 }
 0xd21   :  { %10156 = vmatpush3.bf16.msra.mxu1 %v11672_v53 }
 0xd22   :  { %10157 = vmatprep.subr.bf16.mxu1 %v11481_v0 }
 0xd25   :  { %10159 = vmatpush3.bf16.msra.mxu1 %v11682_v56 }
 0xd26   :  { %10160 = vmatprep.subr.bf16.mxu1 %v11481_v0 }
 0xd29   :  { %10162 = vmatpush3.bf16.msra.mxu1 %v11691_v59 }
 0xd2a   :  { %10163 = vmatprep.subr.bf16.mxu1 %v11481_v0 }
 0xd2d   :  { %10165 = vmatpush3.bf16.msra.mxu1 %v11701_v62 }
 0xd2e   :  { %10172 = vmatprep.subr.bf16.mxu1 %v11481_v0 }
 0xde3   :  { %v1301_v51 = vpop.f32.mrb[14].mxu1 }
 0xde4   :  { %v1302_v52 = vadd.f32 %v11657_v46, %v1301_v51  ;;  %v7978_v54 = vpop.f32.mrb[15].mxu1 }
 0xde5   :  { %v1012_v54 = vadd.f32 %v11988_v60, %v11928_v41 }
 0xde6   :  { %v1305_v55 = vmax.f32 %v1302_v52, 0.0 }
 0xde8   :  { %8012 = vmatmul.mubr.f32.vlgmr.msra.gmra.mrb[16].mxu0 %v1305_v55  ;;  %v1013_v55 = vadd.f32 %v11982_v57, %v1012_v54 }
 0xde9   :  { %10168 = vmatpush3.bf16.msra.mxu0 %v11564_v5  ;;  %8057 = vmatprep.mubr.msk.f32.mxu0 %vm11482_vm0, %v11483_v1 }
 0xdea   :  { %10169 = vmatprep.subr.bf16.mxu0 %v11481_v0 }
 0xded   :  { %10171 = vmatpush3.bf16.msra.mxu0 %v11571_v12 }
 0xdee   :  { %10196 = vmatprep.subr.bf16.mxu0 %v11481_v0 }
 0xebb   :  { %v1372_v61 = vpop.f32.mrb[16].mxu0 }
 0xebc   :  { %v1373_v2 = vadd.f32 %v11709_v63, %v1372_v61  ;;  %v8013_v3 = vpop.f32.mrb[17].mxu0 }
 0xebe   :  { %11377 = vtanh.f32 %v1373_v2 }
 0xec8   :  { %v11378_v9 = vpop.eup %11377 }
 0xec9   :  { %v1377_v10 = vmul.f32 %v11378_v9, %v1011_v8 }
 0xecb   :  { %8047 = vmatmul.mubr.f32.vlgmr.msra.gmra.mrb[16].mxu1 %v1377_v10 }
 0xecc   :  { %10174 = vmatpush3.bf16.msra.mxu1 %v11573_v13  ;;  %8092 = vmatprep.mubr.msk.f32.mxu1 %vm11482_vm0, %v11483_v1 }
 0xecd   :  { %10175 = vmatprep.subr.bf16.mxu1 %v11481_v0 }
 0xed0   :  { %10177 = vmatpush3.bf16.msra.mxu1 %v11577_v14 }
 0xed1   :  { %10178 = vmatprep.subr.bf16.mxu1 %v11481_v0 }
 0xed4   :  { %10180 = vmatpush3.bf16.msra.mxu1 %v11585_v18 }
 0xed5   :  { %10181 = vmatprep.subr.bf16.mxu1 %v11481_v0 }
 0xed8   :  { %10183 = vmatpush3.bf16.msra.mxu1 %v11593_v21 }
 0xed9   :  { %10184 = vmatprep.subr.bf16.mxu1 %v11481_v0 }
 0xedc   :  { %10186 = vmatpush3.bf16.msra.mxu1 %v11597_v24 }
 0xedd   :  { %10187 = vmatprep.subr.bf16.mxu1 %v11481_v0 }
 0xee0   :  { %10189 = vmatpush3.bf16.msra.mxu1 %v11601_v27 }
 0xee1   :  { %10190 = vmatprep.subr.bf16.mxu1 %v11481_v0 }
 0xee4   :  { %10192 = vmatpush3.bf16.msra.mxu1 %v11605_v30 }
 0xee5   :  { %10193 = vmatprep.subr.bf16.mxu1 %v11481_v0 }
 0xee8   :  { %10195 = vmatpush3.bf16.msra.mxu1 %v11610_v33 }
 0xee9   :  { %10220 = vmatprep.subr.bf16.mxu1 %v11481_v0 }
 0xf9e   :  { %v1444_v11 = vpop.f32.mrb[16].mxu1 }
 0xf9f   :  { %v1448_v15 = vmul.f32 0.5, %v1444_v11  ;;  %v1883_v16 = vmul.f32 2.0, %v1444_v11  ;;  %v8048_v19 = vpop.f32.mrb[17].mxu1 }
 0xfa1   :  { %v1449_v20 = vadd.f32 %v1448_v15, %v11895_v31  ;;  %v1884_v22 = vadd.f32 %v1883_v16, %v11949_v47 }
 0xfa3   :  { %8058 = vmatmul.mubr.msk.f32.vlgmr.msra.gmra.mrb[18].mxu0 %vm65_vm1, %v1449_v20 }
 0xfa4   :  { %10198 = vmatpush3.bf16.msra.mxu0 %v11623_v37  ;;  %8127 = vmatprep.mubr.msk.f32.mxu0 %vm11482_vm0, %v11483_v1 }
 0xfa5   :  { %10199 = vmatprep.subr.bf16.mxu0 %v11481_v0 }
 0xfa8   :  { %10201 = vmatpush3.bf16.msra.mxu0 %v11629_v39 }
 0xfa9   :  { %10202 = vmatprep.subr.bf16.mxu0 %v11481_v0 }
 0xfac   :  { %10204 = vmatpush3.bf16.msra.mxu0 %v11639_v42 }
 0xfad   :  { %10205 = vmatprep.subr.bf16.mxu0 %v11481_v0 }
 0xfb0   :  { %10207 = vmatpush3.bf16.msra.mxu0 %v11649_v45 }
 0xfb1   :  { %10208 = vmatprep.subr.bf16.mxu0 %v11481_v0 }
 0xfb4   :  { %10210 = vmatpush3.bf16.msra.mxu0 %v11672_v53 }
 0xfb5   :  { %10211 = vmatprep.subr.bf16.mxu0 %v11481_v0 }
 0xfb8   :  { %10213 = vmatpush3.bf16.msra.mxu0 %v11682_v56 }
 0xfb9   :  { %10214 = vmatprep.subr.bf16.mxu0 %v11481_v0 }
 0xfbc   :  { %10216 = vmatpush3.bf16.msra.mxu0 %v11691_v59 }
 0xfbd   :  { %10217 = vmatprep.subr.bf16.mxu0 %v11481_v0 }
 0xfc0   :  { %10219 = vmatpush3.bf16.msra.mxu0 %v11701_v62 }
 0xfc1   :  { %10226 = vmatprep.subr.bf16.mxu0 %v11481_v0 }
0x1076   :  { %v1519_v25 = vpop.f32.mrb[18].mxu0 }
0x1077   :  { %v1520_v28 = vadd.f32 %v11657_v46, %v1519_v25  ;;  %v8059_v6 = vpop.f32.mrb[19].mxu0 }
0x1079   :  { %v1523_v23 = vmax.f32 %v1520_v28, 0.0  ;;  %v12188_v28 = vld [vmem:[%s13198_s3] ss:$0 sm:$0xff] }
0x107b   :  { %8093 = vmatmul.mubr.f32.vlgmr.msra.gmra.mrb[18].mxu1 %v1523_v23 }
0x107c   :  { %10222 = vmatpush3.bf16.msra.mxu1 %v11564_v5  ;;  %8138 = vmatprep.mubr.msk.f32.mxu1 %vm11482_vm0, %v11483_v1 }
0x107d   :  { %10223 = vmatprep.subr.bf16.mxu1 %v11481_v0 }
0x1080   :  { %10225 = vmatpush3.bf16.msra.mxu1 %v11571_v12 }
0x1081   :  { %10250 = vmatprep.subr.bf16.mxu1 %v11481_v0 }
0x114e   :  { %v1590_v26 = vpop.f32.mrb[18].mxu1 }
0x114f   :  { %v1591_v29 = vadd.f32 %v11709_v63, %v1590_v26  ;;  %v8094_v17 = vpop.f32.mrb[19].mxu1 }
0x1151   :  { %11379 = vtanh.f32 %v1591_v29  ;;  %v12200_v29 = vld [vmem:[%s13195_s0 + $0x40] sm:$0xff] }
0x1152   :  { %v1894_v17 = vmul.f32 0.5, %v12200_v29 }
0x115b   :  { %v11380_v32 = vpop.eup %11379 }
0x115c   :  { %v1595_v34 = vmul.f32 %v11380_v32, %v1011_v8  ;;  %v12206_v32 = vld [vmem:[%s13195_s0 + $0x38] sm:$0xff] }
0x115e   :  { %8128 = vmatmul.mubr.f32.vlgmr.msra.gmra.mrb[20].mxu0 %v1595_v34 }
0x115f   :  { %10228 = vmatpush3.bf16.msra.mxu0 %v11573_v13  ;;  %8173 = vmatprep.mubr.msk.f32.mxu0 %vm11482_vm0, %v11483_v1 }
0x1160   :  { %10229 = vmatprep.subr.bf16.mxu0 %v11481_v0 }
0x1163   :  { %10231 = vmatpush3.bf16.msra.mxu0 %v11577_v14 }
0x1164   :  { %10232 = vmatprep.subr.bf16.mxu0 %v11481_v0 }
0x1167   :  { %10234 = vmatpush3.bf16.msra.mxu0 %v11585_v18 }
0x1168   :  { %10235 = vmatprep.subr.bf16.mxu0 %v11481_v0 }
0x116b   :  { %10237 = vmatpush3.bf16.msra.mxu0 %v11593_v21 }
0x116c   :  { %10238 = vmatprep.subr.bf16.mxu0 %v11481_v0 }
0x116f   :  { %10240 = vmatpush3.bf16.msra.mxu0 %v11597_v24 }
0x1170   :  { %10241 = vmatprep.subr.bf16.mxu0 %v11481_v0 }
0x1173   :  { %10243 = vmatpush3.bf16.msra.mxu0 %v11601_v27 }
0x1174   :  { %10244 = vmatprep.subr.bf16.mxu0 %v11481_v0 }
0x1177   :  { %10246 = vmatpush3.bf16.msra.mxu0 %v11605_v30 }
0x1178   :  { %10247 = vmatprep.subr.bf16.mxu0 %v11481_v0 }
0x117b   :  { %10249 = vmatpush3.bf16.msra.mxu0 %v11610_v33 }
0x117c   :  { %10274 = vmatprep.subr.bf16.mxu0 %v11481_v0 }
0x1231   :  { %v1662_v35 = vpop.f32.mrb[20].mxu0 }
0x1232   :  { %v1666_v36 = vadd.f32 %v1662_v35, %v11895_v31  ;;  %v1885_v38 = vmul.f32 2.0, %v1662_v35  ;;  %v8129_v40 = vpop.f32.mrb[21].mxu0  ;;  %v12211_v35 = vld [vmem:[%s13200_s5] ss:$0 sm:$0xff] }
0x1233   :  { %v1895_v40 = vadd.f32 %v12206_v32, %v1894_v17 }
0x1234   :  { %8139 = vmatmul.mubr.msk.f32.vlgmr.msra.gmra.mrb[20].mxu1 %vm65_vm1, %v1666_v36  ;;  %v1886_v43 = vadd.f32 %v1885_v38, %v1884_v22 }
0x1235   :  { %10252 = vmatpush3.bf16.msra.mxu1 %v11623_v37  ;;  %8208 = vmatprep.mubr.msk.f32.mxu1 %vm11482_vm0, %v11483_v1 }
0x1236   :  { %10253 = vmatprep.subr.bf16.mxu1 %v11481_v0 }
0x1239   :  { %10255 = vmatpush3.bf16.msra.mxu1 %v11629_v39 }
0x123a   :  { %10256 = vmatprep.subr.bf16.mxu1 %v11481_v0 }
0x123d   :  { %10258 = vmatpush3.bf16.msra.mxu1 %v11639_v42 }
0x123e   :  { %10259 = vmatprep.subr.bf16.mxu1 %v11481_v0 }
0x1241   :  { %10261 = vmatpush3.bf16.msra.mxu1 %v11649_v45 }
0x1242   :  { %10262 = vmatprep.subr.bf16.mxu1 %v11481_v0 }
0x1245   :  { %10264 = vmatpush3.bf16.msra.mxu1 %v11672_v53 }
0x1246   :  { %10265 = vmatprep.subr.bf16.mxu1 %v11481_v0 }
0x1249   :  { %10267 = vmatpush3.bf16.msra.mxu1 %v11682_v56 }
0x124a   :  { %10268 = vmatprep.subr.bf16.mxu1 %v11481_v0 }
0x124d   :  { %10270 = vmatpush3.bf16.msra.mxu1 %v11691_v59 }
0x124e   :  { %10271 = vmatprep.subr.bf16.mxu1 %v11481_v0 }
0x1251   :  { %10273 = vmatpush3.bf16.msra.mxu1 %v11701_v62 }
0x1252   :  { %10280 = vmatprep.subr.bf16.mxu1 %v11481_v0 }
0x1307   :  { %v1736_v44 = vpop.f32.mrb[20].mxu1 }
0x1308   :  { %v1737_v47 = vadd.f32 %v11657_v46, %v1736_v44  ;;  %v8140_v48 = vpop.f32.mrb[21].mxu1 }
0x130a   :  { %v1740_v49 = vmax.f32 %v1737_v47, 0.0 }
0x130c   :  { %8174 = vmatmul.mubr.f32.vlgmr.msra.gmra.mrb[22].mxu0 %v1740_v49 }
0x130d   :  { %10276 = vmatpush3.bf16.msra.mxu0 %v11564_v5  ;;  %8219 = vmatprep.mubr.msk.f32.mxu0 %vm11482_vm0, %v11483_v1 }
0x130e   :  { %10277 = vmatprep.subr.bf16.mxu0 %v11481_v0 }
0x1311   :  { %10279 = vmatpush3.bf16.msra.mxu0 %v11571_v12 }
0x1312   :  { %10304 = vmatprep.subr.bf16.mxu0 %v11481_v0 }
0x13df   :  { %v1807_v50 = vpop.f32.mrb[22].mxu0 }
0x13e0   :  { %v1808_v51 = vadd.f32 %v11709_v63, %v1807_v50  ;;  %v8175_v52 = vpop.f32.mrb[23].mxu0 }
0x13e2   :  { %11381 = vtanh.f32 %v1808_v51 }
0x13ec   :  { %v11382_v58 = vpop.eup %11381 }
0x13ed   :  { %v1812_v61 = vmul.f32 %v11382_v58, %v1013_v55 }
0x13ef   :  { %8209 = vmatmul.mubr.f32.vlgmr.msra.gmra.mrb[22].mxu1 %v1812_v61 }
0x13f0   :  { %10282 = vmatpush3.bf16.msra.mxu1 %v11573_v13  ;;  %8254 = vmatprep.mubr.msk.f32.mxu1 %vm11482_vm0, %v11483_v1 }
0x13f1   :  { %10283 = vmatprep.subr.bf16.mxu1 %v11481_v0 }
0x13f4   :  { %10285 = vmatpush3.bf16.msra.mxu1 %v11577_v14 }
0x13f5   :  { %10286 = vmatprep.subr.bf16.mxu1 %v11481_v0 }
0x13f8   :  { %10288 = vmatpush3.bf16.msra.mxu1 %v11585_v18 }
0x13f9   :  { %10289 = vmatprep.subr.bf16.mxu1 %v11481_v0 }
0x13fc   :  { %10291 = vmatpush3.bf16.msra.mxu1 %v11593_v21 }
0x13fd   :  { %10292 = vmatprep.subr.bf16.mxu1 %v11481_v0 }
0x1400   :  { %10294 = vmatpush3.bf16.msra.mxu1 %v11597_v24 }
0x1401   :  { %10295 = vmatprep.subr.bf16.mxu1 %v11481_v0 }
0x1404   :  { %10297 = vmatpush3.bf16.msra.mxu1 %v11601_v27 }
0x1405   :  { %10298 = vmatprep.subr.bf16.mxu1 %v11481_v0 }
0x1408   :  { %10300 = vmatpush3.bf16.msra.mxu1 %v11605_v30 }
0x1409   :  { %10301 = vmatprep.subr.bf16.mxu1 %v11481_v0 }
0x140c   :  { %10303 = vmatpush3.bf16.msra.mxu1 %v11610_v33 }
0x140d   :  { %10328 = vmatprep.subr.bf16.mxu1 %v11481_v0 }
0x14c2   :  { %v1879_v41 = vpop.f32.mrb[22].mxu1 }
0x14c3   :  { %v1887_v57 = vadd.f32 %v1886_v43, %v1879_v41  ;;  %v8210_v60 = vpop.f32.mrb[23].mxu1  ;;  %v1896_v43 = vmul.f32 0.5, %v1895_v40 }
0x14c5   :  { %v1888_v2 = vmul.f32 0.16666667, %v1887_v57 }
0x14c7   :  { %v12108_v3 = vadd.f32 %v1888_v2, %v11895_v31 }
0x14c9   :  { %8220 = vmatmul.mubr.msk.f32.vlgmr.msra.gmra.mrb[24].mxu0 %vm65_vm1, %v12108_v3 }
0x14ca   :  { %10306 = vmatpush3.bf16.msra.mxu0 %v11623_v37  ;;  %8289 = vmatprep.mubr.msk.f32.mxu0 %vm11482_vm0, %v11483_v1 }
0x14cb   :  { %10307 = vmatprep.subr.bf16.mxu0 %v11481_v0 }
0x14ce   :  { %10309 = vmatpush3.bf16.msra.mxu0 %v11629_v39 }
0x14cf   :  { %10310 = vmatprep.subr.bf16.mxu0 %v11481_v0 }
0x14d2   :  { %10312 = vmatpush3.bf16.msra.mxu0 %v11639_v42 }
0x14d3   :  { %10313 = vmatprep.subr.bf16.mxu0 %v11481_v0 }
0x14d6   :  { %10315 = vmatpush3.bf16.msra.mxu0 %v11649_v45 }
0x14d7   :  { %10316 = vmatprep.subr.bf16.mxu0 %v11481_v0 }
0x14da   :  { %10318 = vmatpush3.bf16.msra.mxu0 %v11672_v53 }
0x14db   :  { %10319 = vmatprep.subr.bf16.mxu0 %v11481_v0 }
0x14de   :  { %10321 = vmatpush3.bf16.msra.mxu0 %v11682_v56 }
0x14df   :  { %10322 = vmatprep.subr.bf16.mxu0 %v11481_v0 }
0x14e2   :  { %10324 = vmatpush3.bf16.msra.mxu0 %v11691_v59 }
0x14e3   :  { %10325 = vmatprep.subr.bf16.mxu0 %v11481_v0 }
0x14e6   :  { %10327 = vmatpush3.bf16.msra.mxu0 %v11701_v62 }
0x14e7   :  { %10334 = vmatprep.subr.bf16.mxu0 %v11481_v0 }
0x159c   :  { %v1969_v31 = vpop.f32.mrb[24].mxu0 }
0x159d   :  { %v1970_v4 = vadd.f32 %v11657_v46, %v1969_v31  ;;  %v8221_v7 = vpop.f32.mrb[25].mxu0  ;;  %v12141_v46 = vld [vmem:[%s13195_s0 + $0x30] sm:$0xff] }
0x159e   :  { %v1897_v44 = vadd.f32 %v12141_v46, %v1896_v43 }
0x159f   :  { %v1973_v8 = vmax.f32 %v1970_v4, 0.0 }
0x15a1   :  { %8255 = vmatmul.mubr.f32.vlgmr.msra.gmra.mrb[24].mxu1 %v1973_v8 }
0x15a2   :  { %10330 = vmatpush3.bf16.msra.mxu1 %v11564_v5  ;;  %8300 = vmatprep.mubr.msk.f32.mxu1 %vm11482_vm0, %v11483_v1 }
0x15a3   :  { %10331 = vmatprep.subr.bf16.mxu1 %v11481_v0 }
0x15a6   :  { %10333 = vmatpush3.bf16.msra.mxu1 %v11571_v12 }
0x15a7   :  { %10358 = vmatprep.subr.bf16.mxu1 %v11481_v0 }
0x1674   :  { %v2040_v9 = vpop.f32.mrb[24].mxu1 }
0x1675   :  { %v2041_v10 = vadd.f32 %v11709_v63, %v2040_v9  ;;  %v8256_v11 = vpop.f32.mrb[25].mxu1 }
0x1677   :  { %11383 = vtanh.f32 %v2041_v10 }
0x1681   :  { %v11384_v15 = vpop.eup %11383 }
0x1682   :  { %v2045_v16 = vmul.f32 %v11384_v15, %v12141_v46 }
0x1684   :  { %8290 = vmatmul.mubr.f32.vlgmr.msra.gmra.mrb[26].mxu0 %v2045_v16 }
0x1685   :  { %10336 = vmatpush3.bf16.msra.mxu0 %v11573_v13  ;;  %8335 = vmatprep.mubr.msk.f32.mxu0 %vm11482_vm0, %v11483_v1 }
0x1686   :  { %10337 = vmatprep.subr.bf16.mxu0 %v11481_v0 }
0x1689   :  { %10339 = vmatpush3.bf16.msra.mxu0 %v11577_v14 }
0x168a   :  { %10340 = vmatprep.subr.bf16.mxu0 %v11481_v0 }
0x168d   :  { %10342 = vmatpush3.bf16.msra.mxu0 %v11585_v18 }
0x168e   :  { %10343 = vmatprep.subr.bf16.mxu0 %v11481_v0 }
0x1691   :  { %10345 = vmatpush3.bf16.msra.mxu0 %v11593_v21 }
0x1692   :  { %10346 = vmatprep.subr.bf16.mxu0 %v11481_v0 }
0x1695   :  { %10348 = vmatpush3.bf16.msra.mxu0 %v11597_v24 }
0x1696   :  { %10349 = vmatprep.subr.bf16.mxu0 %v11481_v0 }
0x1699   :  { %10351 = vmatpush3.bf16.msra.mxu0 %v11601_v27 }
0x169a   :  { %10352 = vmatprep.subr.bf16.mxu0 %v11481_v0 }
0x169d   :  { %10354 = vmatpush3.bf16.msra.mxu0 %v11605_v30 }
0x169e   :  { %10355 = vmatprep.subr.bf16.mxu0 %v11481_v0 }
0x16a1   :  { %10357 = vmatpush3.bf16.msra.mxu0 %v11610_v33 }
0x16a2   :  { %10382 = vmatprep.subr.bf16.mxu0 %v11481_v0 }
0x1757   :  { %v12162_v63 = vpop.f32.mrb[26].mxu0 }
0x1758   :  { %v2116_v19 = vmul.f32 0.5, %v12162_v63  ;;  %v8291_v20 = vpop.f32.mrb[27].mxu0 }
0x175a   :  { %v2117_v22 = vadd.f32 %v2116_v19, %v12108_v3 }
0x175c   :  { %8301 = vmatmul.mubr.msk.f32.vlgmr.msra.gmra.mrb[26].mxu1 %vm65_vm1, %v2117_v22 }
0x175d   :  { %10360 = vmatpush3.bf16.msra.mxu1 %v11623_v37  ;;  %8370 = vmatprep.mubr.msk.f32.mxu1 %vm11482_vm0, %v11483_v1 }
0x175e   :  { %10361 = vmatprep.subr.bf16.mxu1 %v11481_v0 }
0x1761   :  { %10363 = vmatpush3.bf16.msra.mxu1 %v11629_v39 }
0x1762   :  { %10364 = vmatprep.subr.bf16.mxu1 %v11481_v0 }
0x1765   :  { %10366 = vmatpush3.bf16.msra.mxu1 %v11639_v42 }
0x1766   :  { %10367 = vmatprep.subr.bf16.mxu1 %v11481_v0 }
0x1769   :  { %10369 = vmatpush3.bf16.msra.mxu1 %v11649_v45 }
0x176a   :  { %10370 = vmatprep.subr.bf16.mxu1 %v11481_v0 }
0x176d   :  { %10372 = vmatpush3.bf16.msra.mxu1 %v11672_v53 }
0x176e   :  { %10373 = vmatprep.subr.bf16.mxu1 %v11481_v0 }
0x1771   :  { %10375 = vmatpush3.bf16.msra.mxu1 %v11682_v56 }
0x1772   :  { %10376 = vmatprep.subr.bf16.mxu1 %v11481_v0 }
0x1775   :  { %10378 = vmatpush3.bf16.msra.mxu1 %v11691_v59 }
0x1776   :  { %10379 = vmatprep.subr.bf16.mxu1 %v11481_v0 }
0x1779   :  { %10381 = vmatpush3.bf16.msra.mxu1 %v11701_v62 }
0x177a   :  { %10388 = vmatprep.subr.bf16.mxu1 %v11481_v0 }
0x182f   :  { %v2187_v25 = vpop.f32.mrb[26].mxu1 }
0x1830   :  { %v2188_v6 = vadd.f32 %v12188_v28, %v2187_v25  ;;  %v8302_v23 = vpop.f32.mrb[27].mxu1 }
0x1831   :  { %v1898_v23 = vadd.f32 %v12206_v32, %v12141_v46 }
0x1832   :  { %v2191_v26 = vmax.f32 %v2188_v6, 0.0 }
0x1834   :  { %8336 = vmatmul.mubr.f32.vlgmr.msra.gmra.mrb[28].mxu0 %v2191_v26  ;;  %v1899_v26 = vadd.f32 %v12200_v29, %v1898_v23 }
0x1835   :  { %10384 = vmatpush3.bf16.msra.mxu0 %v11564_v5  ;;  %8381 = vmatprep.mubr.msk.f32.mxu0 %vm11482_vm0, %v11483_v1 }
0x1836   :  { %10385 = vmatprep.subr.bf16.mxu0 %v11481_v0 }
0x1839   :  { %10387 = vmatpush3.bf16.msra.mxu0 %v11571_v12 }
0x183a   :  { %10412 = vmatprep.subr.bf16.mxu0 %v11481_v0 }
0x1907   :  { %v2258_v34 = vpop.f32.mrb[28].mxu0 }
0x1908   :  { %v2259_v36 = vadd.f32 %v12211_v35, %v2258_v34  ;;  %v8337_v38 = vpop.f32.mrb[29].mxu0 }
0x190a   :  { %11385 = vtanh.f32 %v2259_v36 }
0x1914   :  { %v11386_v47 = vpop.eup %11385 }
0x1915   :  { %v2263_v48 = vmul.f32 %v11386_v47, %v1897_v44 }
0x1917   :  { %8371 = vmatmul.mubr.f32.vlgmr.msra.gmra.mrb[28].mxu1 %v2263_v48 }
0x1918   :  { %10390 = vmatpush3.bf16.msra.mxu1 %v11573_v13  ;;  %8416 = vmatprep.mubr.msk.f32.mxu1 %vm11482_vm0, %v11483_v1 }
0x1919   :  { %10391 = vmatprep.subr.bf16.mxu1 %v11481_v0 }
0x191c   :  { %10393 = vmatpush3.bf16.msra.mxu1 %v11577_v14 }
0x191d   :  { %10394 = vmatprep.subr.bf16.mxu1 %v11481_v0 }
0x1920   :  { %10396 = vmatpush3.bf16.msra.mxu1 %v11585_v18 }
0x1921   :  { %10397 = vmatprep.subr.bf16.mxu1 %v11481_v0 }
0x1924   :  { %10399 = vmatpush3.bf16.msra.mxu1 %v11593_v21 }
0x1925   :  { %10400 = vmatprep.subr.bf16.mxu1 %v11481_v0 }
0x1928   :  { %10402 = vmatpush3.bf16.msra.mxu1 %v11597_v24 }
0x1929   :  { %10403 = vmatprep.subr.bf16.mxu1 %v11481_v0 }
0x192c   :  { %10405 = vmatpush3.bf16.msra.mxu1 %v11601_v27 }
0x192d   :  { %10406 = vmatprep.subr.bf16.mxu1 %v11481_v0 }
0x1930   :  { %10408 = vmatpush3.bf16.msra.mxu1 %v11605_v30 }
0x1931   :  { %10409 = vmatprep.subr.bf16.mxu1 %v11481_v0 }
0x1934   :  { %10411 = vmatpush3.bf16.msra.mxu1 %v11610_v33 }
0x1935   :  { %10436 = vmatprep.subr.bf16.mxu1 %v11481_v0 }
0x19ea   :  { %v2330_v49 = vpop.f32.mrb[28].mxu1 }
0x19eb   :  { %v2334_v50 = vmul.f32 0.5, %v2330_v49  ;;  %v2769_v51 = vmul.f32 2.0, %v2330_v49  ;;  %v8372_v52 = vpop.f32.mrb[29].mxu1 }
0x19ed   :  { %v2335_v54 = vadd.f32 %v2334_v50, %v12108_v3  ;;  %v2770_v55 = vadd.f32 %v2769_v51, %v12162_v63  ;;  %v12364_v50 = vld [vmem:[%s13195_s0 + $0x48] sm:$0xff] }
0x19ef   :  { %8382 = vmatmul.mubr.msk.f32.vlgmr.msra.gmra.mrb[30].mxu0 %vm65_vm1, %v2335_v54 }
0x19f0   :  { %10414 = vmatpush3.bf16.msra.mxu0 %v11623_v37  ;;  %8451 = vmatprep.mubr.msk.f32.mxu0 %vm11482_vm0, %v11483_v1 }
0x19f1   :  { %10415 = vmatprep.subr.bf16.mxu0 %v11481_v0 }
0x19f4   :  { %10417 = vmatpush3.bf16.msra.mxu0 %v11629_v39 }
0x19f5   :  { %10418 = vmatprep.subr.bf16.mxu0 %v11481_v0 }
0x19f8   :  { %10420 = vmatpush3.bf16.msra.mxu0 %v11639_v42 }
0x19f9   :  { %10421 = vmatprep.subr.bf16.mxu0 %v11481_v0 }
0x19fc   :  { %10423 = vmatpush3.bf16.msra.mxu0 %v11649_v45 }
0x19fd   :  { %10424 = vmatprep.subr.bf16.mxu0 %v11481_v0 }
0x1a00   :  { %10426 = vmatpush3.bf16.msra.mxu0 %v11672_v53 }
0x1a01   :  { %10427 = vmatprep.subr.bf16.mxu0 %v11481_v0 }
0x1a04   :  { %10429 = vmatpush3.bf16.msra.mxu0 %v11682_v56 }
0x1a05   :  { %10430 = vmatprep.subr.bf16.mxu0 %v11481_v0 }
0x1a08   :  { %10432 = vmatpush3.bf16.msra.mxu0 %v11691_v59 }
0x1a09   :  { %10433 = vmatprep.subr.bf16.mxu0 %v11481_v0 }
0x1a0c   :  { %10435 = vmatpush3.bf16.msra.mxu0 %v11701_v62 }
0x1a0d   :  { %10442 = vmatprep.subr.bf16.mxu0 %v11481_v0 }
0x1ac2   :  { %v2405_v58 = vpop.f32.mrb[30].mxu0 }
0x1ac3   :  { %v2406_v61 = vadd.f32 %v12188_v28, %v2405_v58  ;;  %v8383_v41 = vpop.f32.mrb[31].mxu0 }
0x1ac5   :  { %v2409_v57 = vmax.f32 %v2406_v61, 0.0 }
0x1ac7   :  { %8417 = vmatmul.mubr.f32.vlgmr.msra.gmra.mrb[30].mxu1 %v2409_v57 }
0x1ac8   :  { %10438 = vmatpush3.bf16.msra.mxu1 %v11564_v5  ;;  %8462 = vmatprep.mubr.msk.f32.mxu1 %vm11482_vm0, %v11483_v1 }
0x1ac9   :  { %10439 = vmatprep.subr.bf16.mxu1 %v11481_v0 }
0x1acc   :  { %10441 = vmatpush3.bf16.msra.mxu1 %v11571_v12 }
0x1acd   :  { %10466 = vmatprep.subr.bf16.mxu1 %v11481_v0 }
0x1b9a   :  { %v2476_v60 = vpop.f32.mrb[30].mxu1 }
0x1b9b   :  { %v2477_v2 = vadd.f32 %v12211_v35, %v2476_v60  ;;  %v8418_v31 = vpop.f32.mrb[31].mxu1 }
0x1b9c   :  { %v12418_v31 = vld [vmem:[%s13195_s0 + $0x58] sm:$0xff] }
0x1b9d   :  { %11387 = vtanh.f32 %v2477_v2 }
0x1ba7   :  { %v11388_v4 = vpop.eup %11387 }
0x1ba8   :  { %v2481_v7 = vmul.f32 %v11388_v4, %v1897_v44  ;;  %v2780_v4 = vmul.f32 0.5, %v12418_v31 }
0x1baa   :  { %8452 = vmatmul.mubr.f32.vlgmr.msra.gmra.mrb[32].mxu0 %v2481_v7  ;;  %v12424_v7 = vld [vmem:[%s13195_s0 + $0x50] sm:$0xff] }
0x1bab   :  { %10444 = vmatpush3.bf16.msra.mxu0 %v11573_v13  ;;  %8497 = vmatprep.mubr.msk.f32.mxu0 %vm11482_vm0, %v11483_v1 }
0x1bac   :  { %10445 = vmatprep.subr.bf16.mxu0 %v11481_v0 }
0x1baf   :  { %10447 = vmatpush3.bf16.msra.mxu0 %v11577_v14 }
0x1bb0   :  { %10448 = vmatprep.subr.bf16.mxu0 %v11481_v0 }
0x1bb3   :  { %10450 = vmatpush3.bf16.msra.mxu0 %v11585_v18 }
0x1bb4   :  { %10451 = vmatprep.subr.bf16.mxu0 %v11481_v0 }
0x1bb7   :  { %10453 = vmatpush3.bf16.msra.mxu0 %v11593_v21 }
0x1bb8   :  { %10454 = vmatprep.subr.bf16.mxu0 %v11481_v0 }
0x1bbb   :  { %10456 = vmatpush3.bf16.msra.mxu0 %v11597_v24 }
0x1bbc   :  { %10457 = vmatprep.subr.bf16.mxu0 %v11481_v0 }
0x1bbf   :  { %10459 = vmatpush3.bf16.msra.mxu0 %v11601_v27 }
0x1bc0   :  { %10460 = vmatprep.subr.bf16.mxu0 %v11481_v0 }
0x1bc3   :  { %10462 = vmatpush3.bf16.msra.mxu0 %v11605_v30 }
0x1bc4   :  { %10463 = vmatprep.subr.bf16.mxu0 %v11481_v0 }
0x1bc7   :  { %10465 = vmatpush3.bf16.msra.mxu0 %v11610_v33 }
0x1bc8   :  { %10490 = vmatprep.subr.bf16.mxu0 %v11481_v0 }
0x1c7d   :  { %v2548_v8 = vpop.f32.mrb[32].mxu0 }
0x1c7e   :  { %v2552_v9 = vadd.f32 %v2548_v8, %v12108_v3  ;;  %v2771_v10 = vmul.f32 2.0, %v2548_v8  ;;  %v8453_v11 = vpop.f32.mrb[33].mxu0 }
0x1c7f   :  { %v2781_v11 = vadd.f32 %v12424_v7, %v2780_v4 }
0x1c80   :  { %8463 = vmatmul.mubr.msk.f32.vlgmr.msra.gmra.mrb[32].mxu1 %vm65_vm1, %v2552_v9  ;;  %v2772_v15 = vadd.f32 %v2771_v10, %v2770_v55 }
0x1c81   :  { %10468 = vmatpush3.bf16.msra.mxu1 %v11623_v37  ;;  %8532 = vmatprep.mubr.msk.f32.mxu1 %vm11482_vm0, %v11483_v1 }
0x1c82   :  { %10469 = vmatprep.subr.bf16.mxu1 %v11481_v0 }
0x1c85   :  { %10471 = vmatpush3.bf16.msra.mxu1 %v11629_v39 }
0x1c86   :  { %10472 = vmatprep.subr.bf16.mxu1 %v11481_v0 }
0x1c89   :  { %10474 = vmatpush3.bf16.msra.mxu1 %v11639_v42 }
0x1c8a   :  { %10475 = vmatprep.subr.bf16.mxu1 %v11481_v0 }
0x1c8d   :  { %10477 = vmatpush3.bf16.msra.mxu1 %v11649_v45 }
0x1c8e   :  { %10478 = vmatprep.subr.bf16.mxu1 %v11481_v0 }
0x1c91   :  { %10480 = vmatpush3.bf16.msra.mxu1 %v11672_v53 }
0x1c92   :  { %10481 = vmatprep.subr.bf16.mxu1 %v11481_v0 }
0x1c95   :  { %10483 = vmatpush3.bf16.msra.mxu1 %v11682_v56 }
0x1c96   :  { %10484 = vmatprep.subr.bf16.mxu1 %v11481_v0 }
0x1c99   :  { %10486 = vmatpush3.bf16.msra.mxu1 %v11691_v59 }
0x1c9a   :  { %10487 = vmatprep.subr.bf16.mxu1 %v11481_v0 }
0x1c9d   :  { %10489 = vmatpush3.bf16.msra.mxu1 %v11701_v62 }
0x1c9e   :  { %10496 = vmatprep.subr.bf16.mxu1 %v11481_v0 }
0x1d53   :  { %v2622_v16 = vpop.f32.mrb[32].mxu1 }
0x1d54   :  { %v2623_v63 = vadd.f32 %v12188_v28, %v2622_v16  ;;  %v8464_v19 = vpop.f32.mrb[33].mxu1 }
0x1d56   :  { %v2626_v20 = vmax.f32 %v2623_v63, 0.0 }
0x1d58   :  { %8498 = vmatmul.mubr.f32.vlgmr.msra.gmra.mrb[34].mxu0 %v2626_v20 }
0x1d59   :  { %10492 = vmatpush3.bf16.msra.mxu0 %v11564_v5  ;;  %8543 = vmatprep.mubr.msk.f32.mxu0 %vm11482_vm0, %v11483_v1 }
0x1d5a   :  { %10493 = vmatprep.subr.bf16.mxu0 %v11481_v0 }
0x1d5d   :  { %10495 = vmatpush3.bf16.msra.mxu0 %v11571_v12 }
0x1d5e   :  { %10520 = vmatprep.subr.bf16.mxu0 %v11481_v0 }
0x1e2b   :  { %v2693_v22 = vpop.f32.mrb[34].mxu0 }
0x1e2c   :  { %v2694_v25 = vadd.f32 %v12211_v35, %v2693_v22  ;;  %v8499_v6 = vpop.f32.mrb[35].mxu0 }
0x1e2e   :  { %11389 = vtanh.f32 %v2694_v25 }
0x1e38   :  { %v11390_v17 = vpop.eup %11389 }
0x1e39   :  { %v2698_v34 = vmul.f32 %v11390_v17, %v1899_v26 }
0x1e3b   :  { %8533 = vmatmul.mubr.f32.vlgmr.msra.gmra.mrb[34].mxu1 %v2698_v34 }
0x1e3c   :  { %10498 = vmatpush3.bf16.msra.mxu1 %v11573_v13  ;;  %8578 = vmatprep.mubr.msk.f32.mxu1 %vm11482_vm0, %v11483_v1 }
0x1e3d   :  { %10499 = vmatprep.subr.bf16.mxu1 %v11481_v0 }
0x1e40   :  { %10501 = vmatpush3.bf16.msra.mxu1 %v11577_v14 }
0x1e41   :  { %10502 = vmatprep.subr.bf16.mxu1 %v11481_v0 }
0x1e44   :  { %10504 = vmatpush3.bf16.msra.mxu1 %v11585_v18 }
0x1e45   :  { %10505 = vmatprep.subr.bf16.mxu1 %v11481_v0 }
0x1e48   :  { %10507 = vmatpush3.bf16.msra.mxu1 %v11593_v21 }
0x1e49   :  { %10508 = vmatprep.subr.bf16.mxu1 %v11481_v0 }
0x1e4c   :  { %10510 = vmatpush3.bf16.msra.mxu1 %v11597_v24 }
0x1e4d   :  { %10511 = vmatprep.subr.bf16.mxu1 %v11481_v0 }
0x1e50   :  { %10513 = vmatpush3.bf16.msra.mxu1 %v11601_v27 }
0x1e51   :  { %10514 = vmatprep.subr.bf16.mxu1 %v11481_v0 }
0x1e54   :  { %10516 = vmatpush3.bf16.msra.mxu1 %v11605_v30 }
0x1e55   :  { %10517 = vmatprep.subr.bf16.mxu1 %v11481_v0 }
0x1e58   :  { %10519 = vmatpush3.bf16.msra.mxu1 %v11610_v33 }
0x1e59   :  { %10544 = vmatprep.subr.bf16.mxu1 %v11481_v0 }
0x1f0e   :  { %v2765_v46 = vpop.f32.mrb[34].mxu1 }
0x1f0f   :  { %v2773_v29 = vadd.f32 %v2772_v15, %v2765_v46  ;;  %v8534_v32 = vpop.f32.mrb[35].mxu1  ;;  %v2782_v15 = vmul.f32 0.5, %v2781_v11 }
0x1f11   :  { %v2774_v36 = vmul.f32 0.16666667, %v2773_v29  ;;  %v2783_v16 = vadd.f32 %v12364_v50, %v2782_v15 }
0x1f13   :  { %v12331_v38 = vadd.f32 %v2774_v36, %v12108_v3 }
0x1f15   :  { %8544 = vmatmul.mubr.msk.f32.vlgmr.msra.gmra.mrb[36].mxu0 %vm65_vm1, %v12331_v38 }
0x1f16   :  { %10522 = vmatpush3.bf16.msra.mxu0 %v11623_v37  ;;  %8613 = vmatprep.mubr.msk.f32.mxu0 %vm11482_vm0, %v11483_v1 }
0x1f17   :  { %10523 = vmatprep.subr.bf16.mxu0 %v11481_v0 }
0x1f1a   :  { %10525 = vmatpush3.bf16.msra.mxu0 %v11629_v39 }
0x1f1b   :  { %10526 = vmatprep.subr.bf16.mxu0 %v11481_v0 }
0x1f1e   :  { %10528 = vmatpush3.bf16.msra.mxu0 %v11639_v42 }
0x1f1f   :  { %10529 = vmatprep.subr.bf16.mxu0 %v11481_v0 }
0x1f22   :  { %10531 = vmatpush3.bf16.msra.mxu0 %v11649_v45 }
0x1f23   :  { %10532 = vmatprep.subr.bf16.mxu0 %v11481_v0 }
0x1f26   :  { %10534 = vmatpush3.bf16.msra.mxu0 %v11672_v53 }
0x1f27   :  { %10535 = vmatprep.subr.bf16.mxu0 %v11481_v0 }
0x1f2a   :  { %10537 = vmatpush3.bf16.msra.mxu0 %v11682_v56 }
0x1f2b   :  { %10538 = vmatprep.subr.bf16.mxu0 %v11481_v0 }
0x1f2e   :  { %10540 = vmatpush3.bf16.msra.mxu0 %v11691_v59 }
0x1f2f   :  { %10541 = vmatprep.subr.bf16.mxu0 %v11481_v0 }
0x1f32   :  { %10543 = vmatpush3.bf16.msra.mxu0 %v11701_v62 }
0x1f33   :  { %10550 = vmatprep.subr.bf16.mxu0 %v11481_v0 }
0x1fe8   :  { %v2855_v3 = vpop.f32.mrb[36].mxu0 }
0x1fe9   :  { %v2856_v40 = vadd.f32 %v12188_v28, %v2855_v3  ;;  %v8545_v43 = vpop.f32.mrb[37].mxu0 }
0x1feb   :  { %v2859_v44 = vmax.f32 %v2856_v40, 0.0 }
0x1fed   :  { %8579 = vmatmul.mubr.f32.vlgmr.msra.gmra.mrb[36].mxu1 %v2859_v44 }
0x1fee   :  { %10546 = vmatpush3.bf16.msra.mxu1 %v11564_v5  ;;  %8624 = vmatprep.mubr.msk.f32.mxu1 %vm11482_vm0, %v11483_v1 }
0x1fef   :  { %10547 = vmatprep.subr.bf16.mxu1 %v11481_v0 }
0x1ff2   :  { %10549 = vmatpush3.bf16.msra.mxu1 %v11571_v12 }
0x1ff3   :  { %10574 = vmatprep.subr.bf16.mxu1 %v11481_v0 }
0x20c0   :  { %v2926_v47 = vpop.f32.mrb[36].mxu1 }
0x20c1   :  { %v2927_v48 = vadd.f32 %v12211_v35, %v2926_v47  ;;  %v8580_v49 = vpop.f32.mrb[37].mxu1 }
0x20c3   :  { %11391 = vtanh.f32 %v2927_v48 }
0x20cd   :  { %v11392_v51 = vpop.eup %11391 }
0x20ce   :  { %v2931_v52 = vmul.f32 %v11392_v51, %v12364_v50 }
0x20d0   :  { %8614 = vmatmul.mubr.f32.vlgmr.msra.gmra.mrb[38].mxu0 %v2931_v52 }
0x20d1   :  { %10552 = vmatpush3.bf16.msra.mxu0 %v11573_v13  ;;  %8659 = vmatprep.mubr.msk.f32.mxu0 %vm11482_vm0, %v11483_v1 }
0x20d2   :  { %10553 = vmatprep.subr.bf16.mxu0 %v11481_v0 }
0x20d5   :  { %10555 = vmatpush3.bf16.msra.mxu0 %v11577_v14 }
0x20d6   :  { %10556 = vmatprep.subr.bf16.mxu0 %v11481_v0 }
0x20d9   :  { %10558 = vmatpush3.bf16.msra.mxu0 %v11585_v18 }
0x20da   :  { %10559 = vmatprep.subr.bf16.mxu0 %v11481_v0 }
0x20dd   :  { %10561 = vmatpush3.bf16.msra.mxu0 %v11593_v21 }
0x20de   :  { %10562 = vmatprep.subr.bf16.mxu0 %v11481_v0 }
0x20e1   :  { %10564 = vmatpush3.bf16.msra.mxu0 %v11597_v24 }
0x20e2   :  { %10565 = vmatprep.subr.bf16.mxu0 %v11481_v0 }
0x20e5   :  { %10567 = vmatpush3.bf16.msra.mxu0 %v11601_v27 }
0x20e6   :  { %10568 = vmatprep.subr.bf16.mxu0 %v11481_v0 }
0x20e9   :  { %10570 = vmatpush3.bf16.msra.mxu0 %v11605_v30 }
0x20ea   :  { %10571 = vmatprep.subr.bf16.mxu0 %v11481_v0 }
0x20ed   :  { %10573 = vmatpush3.bf16.msra.mxu0 %v11610_v33 }
0x20ee   :  { %10598 = vmatprep.subr.bf16.mxu0 %v11481_v0 }
0x21a3   :  { %v12385_v54 = vpop.f32.mrb[38].mxu0 }
0x21a4   :  { %v3002_v55 = vmul.f32 0.5, %v12385_v54  ;;  %v8615_v58 = vpop.f32.mrb[39].mxu0 }
0x21a6   :  { %v3003_v61 = vadd.f32 %v3002_v55, %v12331_v38 }
0x21a8   :  { %8625 = vmatmul.mubr.msk.f32.vlgmr.msra.gmra.mrb[38].mxu1 %vm65_vm1, %v3003_v61 }
0x21a9   :  { %10576 = vmatpush3.bf16.msra.mxu1 %v11623_v37  ;;  %8694 = vmatprep.mubr.msk.f32.mxu1 %vm11482_vm0, %v11483_v1 }
0x21aa   :  { %10577 = vmatprep.subr.bf16.mxu1 %v11481_v0 }
0x21ad   :  { %10579 = vmatpush3.bf16.msra.mxu1 %v11629_v39 }
0x21ae   :  { %10580 = vmatprep.subr.bf16.mxu1 %v11481_v0 }
0x21b1   :  { %10582 = vmatpush3.bf16.msra.mxu1 %v11639_v42 }
0x21b2   :  { %10583 = vmatprep.subr.bf16.mxu1 %v11481_v0 }
0x21b5   :  { %10585 = vmatpush3.bf16.msra.mxu1 %v11649_v45 }
0x21b6   :  { %10586 = vmatprep.subr.bf16.mxu1 %v11481_v0 }
0x21b9   :  { %10588 = vmatpush3.bf16.msra.mxu1 %v11672_v53 }
0x21ba   :  { %10589 = vmatprep.subr.bf16.mxu1 %v11481_v0 }
0x21bd   :  { %10591 = vmatpush3.bf16.msra.mxu1 %v11682_v56 }
0x21be   :  { %10592 = vmatprep.subr.bf16.mxu1 %v11481_v0 }
0x21c1   :  { %10594 = vmatpush3.bf16.msra.mxu1 %v11691_v59 }
0x21c2   :  { %10595 = vmatprep.subr.bf16.mxu1 %v11481_v0 }
0x21c5   :  { %10597 = vmatpush3.bf16.msra.mxu1 %v11701_v62 }
0x21c6   :  { %10604 = vmatprep.subr.bf16.mxu1 %v11481_v0 }
0x227b   :  { %v3073_v41 = vpop.f32.mrb[38].mxu1 }
0x227c   :  { %v3074_v57 = vadd.f32 %v12188_v28, %v3073_v41  ;;  %v8626_v60 = vpop.f32.mrb[39].mxu1 }
0x227d   :  { %v2784_v60 = vadd.f32 %v12424_v7, %v12364_v50 }
0x227e   :  { %v3077_v2 = vmax.f32 %v3074_v57, 0.0 }
0x2280   :  { %8660 = vmatmul.mubr.f32.vlgmr.msra.gmra.mrb[40].mxu0 %v3077_v2  ;;  %v2785_v2 = vadd.f32 %v12418_v31, %v2784_v60 }
0x2281   :  { %10600 = vmatpush3.bf16.msra.mxu0 %v11564_v5  ;;  %8705 = vmatprep.mubr.msk.f32.mxu0 %vm11482_vm0, %v11483_v1 }
0x2282   :  { %10601 = vmatprep.subr.bf16.mxu0 %v11481_v0 }
0x2285   :  { %10603 = vmatpush3.bf16.msra.mxu0 %v11571_v12 }
0x2286   :  { %10628 = vmatprep.subr.bf16.mxu0 %v11481_v0 }
0x2353   :  { %v3144_v8 = vpop.f32.mrb[40].mxu0 }
0x2354   :  { %v3145_v9 = vadd.f32 %v12211_v35, %v3144_v8  ;;  %v8661_v10 = vpop.f32.mrb[41].mxu0 }
0x2356   :  { %11393 = vtanh.f32 %v3145_v9 }
0x2360   :  { %v11394_v63 = vpop.eup %11393 }
0x2361   :  { %v3149_v19 = vmul.f32 %v11394_v63, %v2783_v16 }
0x2363   :  { %8695 = vmatmul.mubr.f32.vlgmr.msra.gmra.mrb[40].mxu1 %v3149_v19 }
0x2364   :  { %10606 = vmatpush3.bf16.msra.mxu1 %v11573_v13  ;;  %8740 = vmatprep.mubr.msk.f32.mxu1 %vm11482_vm0, %v11483_v1 }
0x2365   :  { %10607 = vmatprep.subr.bf16.mxu1 %v11481_v0 }
0x2368   :  { %10609 = vmatpush3.bf16.msra.mxu1 %v11577_v14 }
0x2369   :  { %10610 = vmatprep.subr.bf16.mxu1 %v11481_v0 }
0x236c   :  { %10612 = vmatpush3.bf16.msra.mxu1 %v11585_v18 }
0x236d   :  { %10613 = vmatprep.subr.bf16.mxu1 %v11481_v0 }
0x2370   :  { %10615 = vmatpush3.bf16.msra.mxu1 %v11593_v21 }
0x2371   :  { %10616 = vmatprep.subr.bf16.mxu1 %v11481_v0 }
0x2374   :  { %10618 = vmatpush3.bf16.msra.mxu1 %v11597_v24 }
0x2375   :  { %10619 = vmatprep.subr.bf16.mxu1 %v11481_v0 }
0x2378   :  { %10621 = vmatpush3.bf16.msra.mxu1 %v11601_v27 }
0x2379   :  { %10622 = vmatprep.subr.bf16.mxu1 %v11481_v0 }
0x237c   :  { %10624 = vmatpush3.bf16.msra.mxu1 %v11605_v30 }
0x237d   :  { %10625 = vmatprep.subr.bf16.mxu1 %v11481_v0 }
0x2380   :  { %10627 = vmatpush3.bf16.msra.mxu1 %v11610_v33 }
0x2381   :  { %10652 = vmatprep.subr.bf16.mxu1 %v11481_v0 }
0x2436   :  { %v3216_v20 = vpop.f32.mrb[40].mxu1 }
0x2437   :  { %v3220_v22 = vmul.f32 0.5, %v3216_v20  ;;  %v3655_v25 = vmul.f32 2.0, %v3216_v20  ;;  %v8696_v6 = vpop.f32.mrb[41].mxu1 }
0x2439   :  { %v3221_v23 = vadd.f32 %v3220_v22, %v12331_v38  ;;  %v3656_v26 = vadd.f32 %v3655_v25, %v12385_v54  ;;  %v12577_v22 = vld [vmem:[%s13195_s0 + $0x60] sm:$0xff] }
0x243b   :  { %8706 = vmatmul.mubr.msk.f32.vlgmr.msra.gmra.mrb[42].mxu0 %vm65_vm1, %v3221_v23 }
0x243c   :  { %10630 = vmatpush3.bf16.msra.mxu0 %v11623_v37  ;;  %8775 = vmatprep.mubr.msk.f32.mxu0 %vm11482_vm0, %v11483_v1 }
0x243d   :  { %10631 = vmatprep.subr.bf16.mxu0 %v11481_v0 }
0x2440   :  { %10633 = vmatpush3.bf16.msra.mxu0 %v11629_v39 }
0x2441   :  { %10634 = vmatprep.subr.bf16.mxu0 %v11481_v0 }
0x2444   :  { %10636 = vmatpush3.bf16.msra.mxu0 %v11639_v42 }
0x2445   :  { %10637 = vmatprep.subr.bf16.mxu0 %v11481_v0 }
0x2448   :  { %10639 = vmatpush3.bf16.msra.mxu0 %v11649_v45 }
0x2449   :  { %10640 = vmatprep.subr.bf16.mxu0 %v11481_v0 }
0x244c   :  { %10642 = vmatpush3.bf16.msra.mxu0 %v11672_v53 }
0x244d   :  { %10643 = vmatprep.subr.bf16.mxu0 %v11481_v0 }
0x2450   :  { %10645 = vmatpush3.bf16.msra.mxu0 %v11682_v56 }
0x2451   :  { %10646 = vmatprep.subr.bf16.mxu0 %v11481_v0 }
0x2454   :  { %10648 = vmatpush3.bf16.msra.mxu0 %v11691_v59 }
0x2455   :  { %10649 = vmatprep.subr.bf16.mxu0 %v11481_v0 }
0x2458   :  { %10651 = vmatpush3.bf16.msra.mxu0 %v11701_v62 }
0x2459   :  { %10658 = vmatprep.subr.bf16.mxu0 %v11481_v0 }
0x250e   :  { %v3291_v17 = vpop.f32.mrb[42].mxu0 }
0x250f   :  { %v3292_v34 = vadd.f32 %v12188_v28, %v3291_v17  ;;  %v8707_v46 = vpop.f32.mrb[43].mxu0 }
0x2511   :  { %v3295_v29 = vmax.f32 %v3292_v34, 0.0 }
0x2513   :  { %8741 = vmatmul.mubr.f32.vlgmr.msra.gmra.mrb[42].mxu1 %v3295_v29 }
0x2514   :  { %10654 = vmatpush3.bf16.msra.mxu1 %v11564_v5  ;;  %8786 = vmatprep.mubr.msk.f32.mxu1 %vm11482_vm0, %v11483_v1 }
0x2515   :  { %10655 = vmatprep.subr.bf16.mxu1 %v11481_v0 }
0x2518   :  { %10657 = vmatpush3.bf16.msra.mxu1 %v11571_v12 }
0x2519   :  { %10682 = vmatprep.subr.bf16.mxu1 %v11481_v0 }
0x25e6   :  { %v3362_v32 = vpop.f32.mrb[42].mxu1 }
0x25e7   :  { %v3363_v36 = vadd.f32 %v12211_v35, %v3362_v32  ;;  %v8742_v3 = vpop.f32.mrb[43].mxu1 }
0x25e8   :  { %v12631_v3 = vld [vmem:[%s13195_s0 + $0x70] sm:$0xff] }
0x25e9   :  { %11395 = vtanh.f32 %v3363_v36 }
0x25f3   :  { %v11396_v40 = vpop.eup %11395 }
0x25f4   :  { %v3367_v43 = vmul.f32 %v11396_v40, %v2783_v16  ;;  %v12637_v40 = vld [vmem:[%s13195_s0 + $0x68] sm:$0xff] }
0x25f6   :  { %8776 = vmatmul.mubr.f32.vlgmr.msra.gmra.mrb[44].mxu0 %v3367_v43 }
0x25f7   :  { %10660 = vmatpush3.bf16.msra.mxu0 %v11573_v13  ;;  %8821 = vmatprep.mubr.msk.f32.mxu0 %vm11482_vm0, %v11483_v1 }
0x25f8   :  { %10661 = vmatprep.subr.bf16.mxu0 %v11481_v0 }
0x25fb   :  { %10663 = vmatpush3.bf16.msra.mxu0 %v11577_v14 }
0x25fc   :  { %10664 = vmatprep.subr.bf16.mxu0 %v11481_v0 }
0x25ff   :  { %10666 = vmatpush3.bf16.msra.mxu0 %v11585_v18 }
0x2600   :  { %10667 = vmatprep.subr.bf16.mxu0 %v11481_v0 }
0x2603   :  { %10669 = vmatpush3.bf16.msra.mxu0 %v11593_v21 }
0x2604   :  { %10670 = vmatprep.subr.bf16.mxu0 %v11481_v0 }
0x2607   :  { %10672 = vmatpush3.bf16.msra.mxu0 %v11597_v24 }
0x2608   :  { %10673 = vmatprep.subr.bf16.mxu0 %v11481_v0 }
0x260b   :  { %10675 = vmatpush3.bf16.msra.mxu0 %v11601_v27 }
0x260c   :  { %10676 = vmatprep.subr.bf16.mxu0 %v11481_v0 }
0x260f   :  { %10678 = vmatpush3.bf16.msra.mxu0 %v11605_v30 }
0x2610   :  { %10679 = vmatprep.subr.bf16.mxu0 %v11481_v0 }
0x2613   :  { %10681 = vmatpush3.bf16.msra.mxu0 %v11610_v33 }
0x2614   :  { %10706 = vmatprep.subr.bf16.mxu0 %v11481_v0 }
0x26c9   :  { %v3434_v44 = vpop.f32.mrb[44].mxu0 }
0x26ca   :  { %v3438_v47 = vadd.f32 %v3434_v44, %v12331_v38  ;;  %v3657_v48 = vmul.f32 2.0, %v3434_v44  ;;  %v8777_v49 = vpop.f32.mrb[45].mxu0 }
0x26cc   :  { %8787 = vmatmul.mubr.msk.f32.vlgmr.msra.gmra.mrb[44].mxu1 %vm65_vm1, %v3438_v47  ;;  %v3658_v51 = vadd.f32 %v3657_v48, %v3656_v26 }
0x26cd   :  { %10684 = vmatpush3.bf16.msra.mxu1 %v11623_v37  ;;  %8856 = vmatprep.mubr.msk.f32.mxu1 %vm11482_vm0, %v11483_v1 }
0x26ce   :  { %10685 = vmatprep.subr.bf16.mxu1 %v11481_v0 }
0x26d1   :  { %10687 = vmatpush3.bf16.msra.mxu1 %v11629_v39 }
0x26d2   :  { %10688 = vmatprep.subr.bf16.mxu1 %v11481_v0 }
0x26d5   :  { %10690 = vmatpush3.bf16.msra.mxu1 %v11639_v42 }
0x26d6   :  { %10691 = vmatprep.subr.bf16.mxu1 %v11481_v0 }
0x26d9   :  { %10693 = vmatpush3.bf16.msra.mxu1 %v11649_v45 }
0x26da   :  { %10694 = vmatprep.subr.bf16.mxu1 %v11481_v0 }
0x26dd   :  { %10696 = vmatpush3.bf16.msra.mxu1 %v11672_v53 }
0x26de   :  { %10697 = vmatprep.subr.bf16.mxu1 %v11481_v0 }
0x26e1   :  { %10699 = vmatpush3.bf16.msra.mxu1 %v11682_v56 }
0x26e2   :  { %10700 = vmatprep.subr.bf16.mxu1 %v11481_v0 }
0x26e5   :  { %10702 = vmatpush3.bf16.msra.mxu1 %v11691_v59 }
0x26e6   :  { %10703 = vmatprep.subr.bf16.mxu1 %v11481_v0 }
0x26e9   :  { %10705 = vmatpush3.bf16.msra.mxu1 %v11701_v62 }
0x26ea   :  { %10712 = vmatprep.subr.bf16.mxu1 %v11481_v0 }
0x279f   :  { %v3508_v52 = vpop.f32.mrb[44].mxu1 }
0x27a0   :  { %v3509_v54 = vadd.f32 %v12188_v28, %v3508_v52  ;;  %v8788_v55 = vpop.f32.mrb[45].mxu1 }
0x27a2   :  { %v3512_v58 = vmax.f32 %v3509_v54, 0.0 }
0x27a4   :  { %8822 = vmatmul.mubr.f32.vlgmr.msra.gmra.mrb[46].mxu0 %v3512_v58 }
0x27a5   :  { %10708 = vmatpush3.bf16.msra.mxu0 %v11564_v5  ;;  %8867 = vmatprep.mubr.msk.f32.mxu0 %vm11482_vm0, %v11483_v1 }
0x27a6   :  { %10709 = vmatprep.subr.bf16.mxu0 %v11481_v0 }
0x27a9   :  { %10711 = vmatpush3.bf16.msra.mxu0 %v11571_v12 }
0x27aa   :  { %10736 = vmatprep.subr.bf16.mxu0 %v11481_v0 }
0x2877   :  { %v3579_v61 = vpop.f32.mrb[46].mxu0 }
0x2878   :  { %v3580_v41 = vadd.f32 %v12211_v35, %v3579_v61  ;;  %v8823_v57 = vpop.f32.mrb[47].mxu0 }
0x287a   :  { %11397 = vtanh.f32 %v3580_v41 }
0x2884   :  { %v11398_v4 = vpop.eup %11397 }
0x2885   :  { %v3584_v8 = vmul.f32 %v11398_v4, %v2785_v2  ;;  %v12684_v2 = vld [vmem:[%s13198_s3] ss:$0 sm:$0xff] }
0x2887   :  { %8857 = vmatmul.mubr.f32.vlgmr.msra.gmra.mrb[46].mxu1 %v3584_v8 }
0x2888   :  { %10714 = vmatpush3.bf16.msra.mxu1 %v11573_v13  ;;  %8902 = vmatprep.mubr.msk.f32.mxu1 %vm11482_vm0, %v11483_v1 }
0x2889   :  { %10715 = vmatprep.subr.bf16.mxu1 %v11481_v0 }
0x288c   :  { %10717 = vmatpush3.bf16.msra.mxu1 %v11577_v14 }
0x288d   :  { %10718 = vmatprep.subr.bf16.mxu1 %v11481_v0 }
0x2890   :  { %10720 = vmatpush3.bf16.msra.mxu1 %v11585_v18 }
0x2891   :  { %10721 = vmatprep.subr.bf16.mxu1 %v11481_v0 }
0x2894   :  { %10723 = vmatpush3.bf16.msra.mxu1 %v11593_v21 }
0x2895   :  { %10724 = vmatprep.subr.bf16.mxu1 %v11481_v0 }
0x2898   :  { %10726 = vmatpush3.bf16.msra.mxu1 %v11597_v24 }
0x2899   :  { %10727 = vmatprep.subr.bf16.mxu1 %v11481_v0 }
0x289c   :  { %10729 = vmatpush3.bf16.msra.mxu1 %v11601_v27 }
0x289d   :  { %10730 = vmatprep.subr.bf16.mxu1 %v11481_v0 }
0x28a0   :  { %10732 = vmatpush3.bf16.msra.mxu1 %v11605_v30 }
0x28a1   :  { %10733 = vmatprep.subr.bf16.mxu1 %v11481_v0 }
0x28a4   :  { %10735 = vmatpush3.bf16.msra.mxu1 %v11610_v33 }
0x28a5   :  { %10760 = vmatprep.subr.bf16.mxu1 %v11481_v0 }
0x295a   :  { %v3651_v50 = vpop.f32.mrb[46].mxu1 }
0x295b   :  { %v3659_v31 = vadd.f32 %v3658_v51, %v3651_v50  ;;  %v8858_v7 = vpop.f32.mrb[47].mxu1 }
0x295c   :  { %v12696_v7 = vld [vmem:[%s13200_s5] ss:$0 sm:$0xff] }
0x295d   :  { %v3660_v9 = vmul.f32 0.16666667, %v3659_v31 }
0x295f   :  { %v12544_v10 = vadd.f32 %v3660_v9, %v12331_v38 }
0x2961   :  { %8868 = vmatmul.mubr.msk.f32.vlgmr.msra.gmra.mrb[48].mxu0 %vm65_vm1, %v12544_v10 }
0x2962   :  { %10738 = vmatpush3.bf16.msra.mxu0 %v11623_v37  ;;  %8937 = vmatprep.mubr.msk.f32.mxu0 %vm11482_vm0, %v11483_v1 }
0x2963   :  { %10739 = vmatprep.subr.bf16.mxu0 %v11481_v0 }
0x2966   :  { %10741 = vmatpush3.bf16.msra.mxu0 %v11629_v39 }
0x2967   :  { %10742 = vmatprep.subr.bf16.mxu0 %v11481_v0 }
0x296a   :  { %10744 = vmatpush3.bf16.msra.mxu0 %v11639_v42 }
0x296b   :  { %10745 = vmatprep.subr.bf16.mxu0 %v11481_v0 }
0x296e   :  { %10747 = vmatpush3.bf16.msra.mxu0 %v11649_v45 }
0x296f   :  { %10748 = vmatprep.subr.bf16.mxu0 %v11481_v0 }
0x2972   :  { %10750 = vmatpush3.bf16.msra.mxu0 %v11672_v53 }
0x2973   :  { %10751 = vmatprep.subr.bf16.mxu0 %v11481_v0 }
0x2976   :  { %10753 = vmatpush3.bf16.msra.mxu0 %v11682_v56 }
0x2977   :  { %10754 = vmatprep.subr.bf16.mxu0 %v11481_v0 }
0x297a   :  { %10756 = vmatpush3.bf16.msra.mxu0 %v11691_v59 }
0x297b   :  { %10757 = vmatprep.subr.bf16.mxu0 %v11481_v0 }
0x297e   :  { %10759 = vmatpush3.bf16.msra.mxu0 %v11701_v62 }
0x297f   :  { %10766 = vmatprep.subr.bf16.mxu0 %v11481_v0 }
0x2a34   :  { %v3741_v38 = vpop.f32.mrb[48].mxu0 }
0x2a35   :  { %v3742_v11 = vadd.f32 %v12188_v28, %v3741_v38  ;;  %v8869_v15 = vpop.f32.mrb[49].mxu0 }
0x2a37   :  { %v3745_v16 = vmax.f32 %v3742_v11, 0.0 }
0x2a39   :  { %8903 = vmatmul.mubr.f32.vlgmr.msra.gmra.mrb[48].mxu1 %v3745_v16 }
0x2a3a   :  { %10762 = vmatpush3.bf16.msra.mxu1 %v11564_v5  ;;  %8948 = vmatprep.mubr.msk.f32.mxu1 %vm11482_vm0, %v11483_v1 }
0x2a3b   :  { %10763 = vmatprep.subr.bf16.mxu1 %v11481_v0 }
0x2a3e   :  { %10765 = vmatpush3.bf16.msra.mxu1 %v11571_v12 }
0x2a3f   :  { %10790 = vmatprep.subr.bf16.mxu1 %v11481_v0 }
0x2b0c   :  { %v3812_v63 = vpop.f32.mrb[48].mxu1 }
0x2b0d   :  { %v3813_v19 = vadd.f32 %v12211_v35, %v3812_v63  ;;  %v8904_v20 = vpop.f32.mrb[49].mxu1 }
0x2b0f   :  { %11399 = vtanh.f32 %v3813_v19 }
0x2b19   :  { %v11400_v25 = vpop.eup %11399 }
0x2b1a   :  { %v3817_v6 = vmul.f32 %v11400_v25, %v12577_v22 }
0x2b1c   :  { %8938 = vmatmul.mubr.f32.vlgmr.msra.gmra.mrb[50].mxu0 %v3817_v6 }
0x2b1d   :  { %10768 = vmatpush3.bf16.msra.mxu0 %v11573_v13  ;;  %8983 = vmatprep.mubr.msk.f32.mxu0 %vm11482_vm0, %v11483_v1 }
0x2b1e   :  { %10769 = vmatprep.subr.bf16.mxu0 %v11481_v0 }
0x2b21   :  { %10771 = vmatpush3.bf16.msra.mxu0 %v11577_v14 }
0x2b22   :  { %10772 = vmatprep.subr.bf16.mxu0 %v11481_v0 }
0x2b25   :  { %10774 = vmatpush3.bf16.msra.mxu0 %v11585_v18 }
0x2b26   :  { %10775 = vmatprep.subr.bf16.mxu0 %v11481_v0 }
0x2b29   :  { %10777 = vmatpush3.bf16.msra.mxu0 %v11593_v21 }
0x2b2a   :  { %10778 = vmatprep.subr.bf16.mxu0 %v11481_v0 }
0x2b2d   :  { %10780 = vmatpush3.bf16.msra.mxu0 %v11597_v24 }
0x2b2e   :  { %10781 = vmatprep.subr.bf16.mxu0 %v11481_v0 }
0x2b31   :  { %10783 = vmatpush3.bf16.msra.mxu0 %v11601_v27 }
0x2b32   :  { %10784 = vmatprep.subr.bf16.mxu0 %v11481_v0 }
0x2b35   :  { %10786 = vmatpush3.bf16.msra.mxu0 %v11605_v30 }
0x2b36   :  { %10787 = vmatprep.subr.bf16.mxu0 %v11481_v0 }
0x2b39   :  { %10789 = vmatpush3.bf16.msra.mxu0 %v11610_v33 }
0x2b3a   :  { %10814 = vmatprep.subr.bf16.mxu0 %v11481_v0 }
0x2bef   :  { %v12598_v23 = vpop.f32.mrb[50].mxu0 }
0x2bf0   :  { %v3888_v26 = vmul.f32 0.5, %v12598_v23  ;;  %v8939_v17 = vpop.f32.mrb[51].mxu0 }
0x2bf2   :  { %v3889_v34 = vadd.f32 %v3888_v26, %v12544_v10 }
0x2bf4   :  { %8949 = vmatmul.mubr.msk.f32.vlgmr.msra.gmra.mrb[50].mxu1 %vm65_vm1, %v3889_v34 }
0x2bf5   :  { %10792 = vmatpush3.bf16.msra.mxu1 %v11623_v37  ;;  %9018 = vmatprep.mubr.msk.f32.mxu1 %vm11482_vm0, %v11483_v1 }
0x2bf6   :  { %10793 = vmatprep.subr.bf16.mxu1 %v11481_v0 }
0x2bf9   :  { %10795 = vmatpush3.bf16.msra.mxu1 %v11629_v39 }
0x2bfa   :  { %10796 = vmatprep.subr.bf16.mxu1 %v11481_v0 }
0x2bfd   :  { %10798 = vmatpush3.bf16.msra.mxu1 %v11639_v42 }
0x2bfe   :  { %10799 = vmatprep.subr.bf16.mxu1 %v11481_v0 }
0x2c01   :  { %10801 = vmatpush3.bf16.msra.mxu1 %v11649_v45 }
0x2c02   :  { %10802 = vmatprep.subr.bf16.mxu1 %v11481_v0 }
0x2c05   :  { %10804 = vmatpush3.bf16.msra.mxu1 %v11672_v53 }
0x2c06   :  { %10805 = vmatprep.subr.bf16.mxu1 %v11481_v0 }
0x2c09   :  { %10807 = vmatpush3.bf16.msra.mxu1 %v11682_v56 }
0x2c0a   :  { %10808 = vmatprep.subr.bf16.mxu1 %v11481_v0 }
0x2c0d   :  { %10810 = vmatpush3.bf16.msra.mxu1 %v11691_v59 }
0x2c0e   :  { %10811 = vmatprep.subr.bf16.mxu1 %v11481_v0 }
0x2c11   :  { %10813 = vmatpush3.bf16.msra.mxu1 %v11701_v62 }
0x2c12   :  { %10820 = vmatprep.subr.bf16.mxu1 %v11481_v0 }
0x2cc7   :  { %v3959_v46 = vpop.f32.mrb[50].mxu1 }
0x2cc8   :  { %v3960_v29 = vadd.f32 %v12188_v28, %v3959_v46  ;;  %v8950_v32 = vpop.f32.mrb[51].mxu1  ;;  %v3666_v28 = vmul.f32 0.5, %v12631_v3 }
0x2cc9   :  { %v3670_v32 = vadd.f32 %v12637_v40, %v12577_v22 }
0x2cca   :  { %v3963_v36 = vmax.f32 %v3960_v29, 0.0  ;;  %v3667_v48 = vadd.f32 %v12637_v40, %v3666_v28 }
0x2ccc   :  { %8984 = vmatmul.mubr.f32.vlgmr.msra.gmra.mrb[52].mxu0 %v3963_v36  ;;  %v3668_v49 = vmul.f32 0.5, %v3667_v48  ;;  %v3671_v36 = vadd.f32 %v12631_v3, %v3670_v32 }
0x2ccd   :  { %10816 = vmatpush3.bf16.msra.mxu0 %v11564_v5  ;;  %9029 = vmatprep.mubr.msk.f32.mxu0 %vm11482_vm0, %v11483_v1 }
0x2cce   :  { %10817 = vmatprep.subr.bf16.mxu0 %v11481_v0  ;;  %v3669_v51 = vadd.f32 %v12577_v22, %v3668_v49 }
0x2cd1   :  { %10819 = vmatpush3.bf16.msra.mxu0 %v11571_v12 }
0x2cd2   :  { %10844 = vmatprep.subr.bf16.mxu0 %v11481_v0 }
0x2d9f   :  { %v4030_v43 = vpop.f32.mrb[52].mxu0 }
0x2da0   :  { %v4031_v44 = vadd.f32 %v12211_v35, %v4030_v43  ;;  %v8985_v47 = vpop.f32.mrb[53].mxu0 }
0x2da2   :  { %11401 = vtanh.f32 %v4031_v44 }
0x2dac   :  { %v11402_v52 = vpop.eup %11401 }
0x2dad   :  { %v4035_v54 = vmul.f32 %v11402_v52, %v3669_v51 }
0x2daf   :  { %9019 = vmatmul.mubr.f32.vlgmr.msra.gmra.mrb[52].mxu1 %v4035_v54 }
0x2db0   :  { %10822 = vmatpush3.bf16.msra.mxu1 %v11573_v13  ;;  %9064 = vmatprep.mubr.msk.f32.mxu1 %vm11482_vm0, %v11483_v1 }
0x2db1   :  { %10823 = vmatprep.subr.bf16.mxu1 %v11481_v0 }
0x2db4   :  { %10825 = vmatpush3.bf16.msra.mxu1 %v11577_v14 }
0x2db5   :  { %10826 = vmatprep.subr.bf16.mxu1 %v11481_v0 }
0x2db8   :  { %10828 = vmatpush3.bf16.msra.mxu1 %v11585_v18 }
0x2db9   :  { %10829 = vmatprep.subr.bf16.mxu1 %v11481_v0 }
0x2dbc   :  { %10831 = vmatpush3.bf16.msra.mxu1 %v11593_v21 }
0x2dbd   :  { %10832 = vmatprep.subr.bf16.mxu1 %v11481_v0 }
0x2dc0   :  { %10834 = vmatpush3.bf16.msra.mxu1 %v11597_v24 }
0x2dc1   :  { %10835 = vmatprep.subr.bf16.mxu1 %v11481_v0 }
0x2dc4   :  { %10837 = vmatpush3.bf16.msra.mxu1 %v11601_v27 }
0x2dc5   :  { %10838 = vmatprep.subr.bf16.mxu1 %v11481_v0 }
0x2dc8   :  { %10840 = vmatpush3.bf16.msra.mxu1 %v11605_v30 }
0x2dc9   :  { %10841 = vmatprep.subr.bf16.mxu1 %v11481_v0 }
0x2dcc   :  { %10843 = vmatpush3.bf16.msra.mxu1 %v11610_v33 }
0x2dcd   :  { %10868 = vmatprep.subr.bf16.mxu1 %v11481_v0 }
0x2e82   :  { %v4102_v35 = vpop.f32.mrb[52].mxu1 }
0x2e83   :  { %v4106_v55 = vmul.f32 0.5, %v4102_v35  ;;  %v4541_v58 = vmul.f32 2.0, %v4102_v35  ;;  %v9020_v61 = vpop.f32.mrb[53].mxu1 }
0x2e85   :  { %v4107_v41 = vadd.f32 %v4106_v55, %v12544_v10  ;;  %v4542_v57 = vadd.f32 %v4541_v58, %v12598_v23  ;;  %v12800_v55 = vld [vmem:[%s13195_s0 + $0x78] sm:$0xff] }
0x2e87   :  { %9030 = vmatmul.mubr.msk.f32.vlgmr.msra.gmra.mrb[54].mxu0 %vm65_vm1, %v4107_v41 }
0x2e88   :  { %10846 = vmatpush3.bf16.msra.mxu0 %v11623_v37  ;;  %9099 = vmatprep.mubr.msk.f32.mxu0 %vm11482_vm0, %v11483_v1 }
0x2e89   :  { %10847 = vmatprep.subr.bf16.mxu0 %v11481_v0 }
0x2e8c   :  { %10849 = vmatpush3.bf16.msra.mxu0 %v11629_v39 }
0x2e8d   :  { %10850 = vmatprep.subr.bf16.mxu0 %v11481_v0 }
0x2e90   :  { %10852 = vmatpush3.bf16.msra.mxu0 %v11639_v42 }
0x2e91   :  { %10853 = vmatprep.subr.bf16.mxu0 %v11481_v0 }
0x2e94   :  { %10855 = vmatpush3.bf16.msra.mxu0 %v11649_v45 }
0x2e95   :  { %10856 = vmatprep.subr.bf16.mxu0 %v11481_v0 }
0x2e98   :  { %10858 = vmatpush3.bf16.msra.mxu0 %v11672_v53 }
0x2e99   :  { %10859 = vmatprep.subr.bf16.mxu0 %v11481_v0 }
0x2e9c   :  { %10861 = vmatpush3.bf16.msra.mxu0 %v11682_v56 }
0x2e9d   :  { %10862 = vmatprep.subr.bf16.mxu0 %v11481_v0 }
0x2ea0   :  { %10864 = vmatpush3.bf16.msra.mxu0 %v11691_v59 }
0x2ea1   :  { %10865 = vmatprep.subr.bf16.mxu0 %v11481_v0 }
0x2ea4   :  { %10867 = vmatpush3.bf16.msra.mxu0 %v11701_v62 }
0x2ea5   :  { %10874 = vmatprep.subr.bf16.mxu0 %v11481_v0 }
0x2f5a   :  { %v4177_v60 = vpop.f32.mrb[54].mxu0 }
0x2f5b   :  { %v4178_v4 = vadd.f32 %v12684_v2, %v4177_v60  ;;  %v9031_v8 = vpop.f32.mrb[55].mxu0 }
0x2f5d   :  { %v4181_v50 = vmax.f32 %v4178_v4, 0.0 }
0x2f5f   :  { %9065 = vmatmul.mubr.f32.vlgmr.msra.gmra.mrb[54].mxu1 %v4181_v50 }
0x2f60   :  { %10870 = vmatpush3.bf16.msra.mxu1 %v11564_v5  ;;  %9110 = vmatprep.mubr.msk.f32.mxu1 %vm11482_vm0, %v11483_v1 }
0x2f61   :  { %10871 = vmatprep.subr.bf16.mxu1 %v11481_v0 }
0x2f64   :  { %10873 = vmatpush3.bf16.msra.mxu1 %v11571_v12 }
0x2f65   :  { %10898 = vmatprep.subr.bf16.mxu1 %v11481_v0 }
0x3032   :  { %v4248_v31 = vpop.f32.mrb[54].mxu1 }
0x3033   :  { %v4249_v9 = vadd.f32 %v12696_v7, %v4248_v31  ;;  %v9066_v38 = vpop.f32.mrb[55].mxu1 }
0x3034   :  { %v12854_v38 = vld [vmem:[%s13195_s0 + $0x88] sm:$0xff] }
0x3035   :  { %11403 = vtanh.f32 %v4249_v9 }
0x303f   :  { %v11404_v11 = vpop.eup %11403 }
0x3040   :  { %v4253_v15 = vmul.f32 %v11404_v11, %v3669_v51  ;;  %v4552_v11 = vmul.f32 0.5, %v12854_v38 }
0x3042   :  { %9100 = vmatmul.mubr.f32.vlgmr.msra.gmra.mrb[56].mxu0 %v4253_v15  ;;  %v12860_v15 = vld [vmem:[%s13195_s0 + $0x80] sm:$0xff] }
0x3043   :  { %10876 = vmatpush3.bf16.msra.mxu0 %v11573_v13  ;;  %9145 = vmatprep.mubr.msk.f32.mxu0 %vm11482_vm0, %v11483_v1 }
0x3044   :  { %10877 = vmatprep.subr.bf16.mxu0 %v11481_v0 }
0x3047   :  { %10879 = vmatpush3.bf16.msra.mxu0 %v11577_v14 }
0x3048   :  { %10880 = vmatprep.subr.bf16.mxu0 %v11481_v0 }
0x304b   :  { %10882 = vmatpush3.bf16.msra.mxu0 %v11585_v18 }
0x304c   :  { %10883 = vmatprep.subr.bf16.mxu0 %v11481_v0 }
0x304f   :  { %10885 = vmatpush3.bf16.msra.mxu0 %v11593_v21 }
0x3050   :  { %10886 = vmatprep.subr.bf16.mxu0 %v11481_v0 }
0x3053   :  { %10888 = vmatpush3.bf16.msra.mxu0 %v11597_v24 }
0x3054   :  { %10889 = vmatprep.subr.bf16.mxu0 %v11481_v0 }
0x3057   :  { %10891 = vmatpush3.bf16.msra.mxu0 %v11601_v27 }
0x3058   :  { %10892 = vmatprep.subr.bf16.mxu0 %v11481_v0 }
0x305b   :  { %10894 = vmatpush3.bf16.msra.mxu0 %v11605_v30 }
0x305c   :  { %10895 = vmatprep.subr.bf16.mxu0 %v11481_v0 }
0x305f   :  { %10897 = vmatpush3.bf16.msra.mxu0 %v11610_v33 }
0x3060   :  { %10922 = vmatprep.subr.bf16.mxu0 %v11481_v0 }
0x3115   :  { %v4320_v16 = vpop.f32.mrb[56].mxu0 }
0x3116   :  { %v4324_v63 = vadd.f32 %v4320_v16, %v12544_v10  ;;  %v4543_v19 = vmul.f32 2.0, %v4320_v16  ;;  %v9101_v20 = vpop.f32.mrb[57].mxu0 }
0x3117   :  { %v4553_v20 = vadd.f32 %v12860_v15, %v4552_v11 }
0x3118   :  { %9111 = vmatmul.mubr.msk.f32.vlgmr.msra.gmra.mrb[56].mxu1 %vm65_vm1, %v4324_v63  ;;  %v4544_v25 = vadd.f32 %v4543_v19, %v4542_v57 }
0x3119   :  { %10900 = vmatpush3.bf16.msra.mxu1 %v11623_v37  ;;  %9180 = vmatprep.mubr.msk.f32.mxu1 %vm11482_vm0, %v11483_v1 }
0x311a   :  { %10901 = vmatprep.subr.bf16.mxu1 %v11481_v0 }
0x311d   :  { %10903 = vmatpush3.bf16.msra.mxu1 %v11629_v39 }
0x311e   :  { %10904 = vmatprep.subr.bf16.mxu1 %v11481_v0 }
0x3121   :  { %10906 = vmatpush3.bf16.msra.mxu1 %v11639_v42 }
0x3122   :  { %10907 = vmatprep.subr.bf16.mxu1 %v11481_v0 }
0x3125   :  { %10909 = vmatpush3.bf16.msra.mxu1 %v11649_v45 }
0x3126   :  { %10910 = vmatprep.subr.bf16.mxu1 %v11481_v0 }
0x3129   :  { %10912 = vmatpush3.bf16.msra.mxu1 %v11672_v53 }
0x312a   :  { %10913 = vmatprep.subr.bf16.mxu1 %v11481_v0 }
0x312d   :  { %10915 = vmatpush3.bf16.msra.mxu1 %v11682_v56 }
0x312e   :  { %10916 = vmatprep.subr.bf16.mxu1 %v11481_v0 }
0x3131   :  { %10918 = vmatpush3.bf16.msra.mxu1 %v11691_v59 }
0x3132   :  { %10919 = vmatprep.subr.bf16.mxu1 %v11481_v0 }
0x3135   :  { %10921 = vmatpush3.bf16.msra.mxu1 %v11701_v62 }
0x3136   :  { %10928 = vmatprep.subr.bf16.mxu1 %v11481_v0 }
0x31eb   :  { %v4394_v6 = vpop.f32.mrb[56].mxu1 }
0x31ec   :  { %v4395_v23 = vadd.f32 %v12684_v2, %v4394_v6  ;;  %v9112_v26 = vpop.f32.mrb[57].mxu1 }
0x31ee   :  { %v4398_v17 = vmax.f32 %v4395_v23, 0.0 }
0x31f0   :  { %9146 = vmatmul.mubr.f32.vlgmr.msra.gmra.mrb[58].mxu0 %v4398_v17 }
0x31f1   :  { %10924 = vmatpush3.bf16.msra.mxu0 %v11564_v5  ;;  %9191 = vmatprep.mubr.msk.f32.mxu0 %vm11482_vm0, %v11483_v1 }
0x31f2   :  { %10925 = vmatprep.subr.bf16.mxu0 %v11481_v0 }
0x31f5   :  { %10927 = vmatpush3.bf16.msra.mxu0 %v11571_v12 }
0x31f6   :  { %10952 = vmatprep.subr.bf16.mxu0 %v11481_v0 }
0x32c3   :  { %v4465_v34 = vpop.f32.mrb[58].mxu0 }
0x32c4   :  { %v4466_v46 = vadd.f32 %v12696_v7, %v4465_v34  ;;  %v9147_v29 = vpop.f32.mrb[59].mxu0 }
0x32c6   :  { %11405 = vtanh.f32 %v4466_v46 }
0x32d0   :  { %v11406_v28 = vpop.eup %11405 }
0x32d1   :  { %v4470_v43 = vmul.f32 %v11406_v28, %v3671_v36 }
0x32d3   :  { %9181 = vmatmul.mubr.f32.vlgmr.msra.gmra.mrb[58].mxu1 %v4470_v43 }
0x32d4   :  { %10930 = vmatpush3.bf16.msra.mxu1 %v11573_v13  ;;  %9226 = vmatprep.mubr.msk.f32.mxu1 %vm11482_vm0, %v11483_v1 }
0x32d5   :  { %10931 = vmatprep.subr.bf16.mxu1 %v11481_v0 }
0x32d8   :  { %10933 = vmatpush3.bf16.msra.mxu1 %v11577_v14 }
0x32d9   :  { %10934 = vmatprep.subr.bf16.mxu1 %v11481_v0 }
0x32dc   :  { %10936 = vmatpush3.bf16.msra.mxu1 %v11585_v18 }
0x32dd   :  { %10937 = vmatprep.subr.bf16.mxu1 %v11481_v0 }
0x32e0   :  { %10939 = vmatpush3.bf16.msra.mxu1 %v11593_v21 }
0x32e1   :  { %10940 = vmatprep.subr.bf16.mxu1 %v11481_v0 }
0x32e4   :  { %10942 = vmatpush3.bf16.msra.mxu1 %v11597_v24 }
0x32e5   :  { %10943 = vmatprep.subr.bf16.mxu1 %v11481_v0 }
0x32e8   :  { %10945 = vmatpush3.bf16.msra.mxu1 %v11601_v27 }
0x32e9   :  { %10946 = vmatprep.subr.bf16.mxu1 %v11481_v0 }
0x32ec   :  { %10948 = vmatpush3.bf16.msra.mxu1 %v11605_v30 }
0x32ed   :  { %10949 = vmatprep.subr.bf16.mxu1 %v11481_v0 }
0x32f0   :  { %10951 = vmatpush3.bf16.msra.mxu1 %v11610_v33 }
0x32f1   :  { %10976 = vmatprep.subr.bf16.mxu1 %v11481_v0 }
0x33a6   :  { %v4537_v22 = vpop.f32.mrb[58].mxu1 }
0x33a7   :  { %v4545_v3 = vadd.f32 %v4544_v25, %v4537_v22  ;;  %v9182_v40 = vpop.f32.mrb[59].mxu1  ;;  %v4554_v25 = vmul.f32 0.5, %v4553_v20 }
0x33a9   :  { %v4546_v44 = vmul.f32 0.16666667, %v4545_v3  ;;  %v4555_v6 = vadd.f32 %v12800_v55, %v4554_v25 }
0x33ab   :  { %v12767_v47 = vadd.f32 %v4546_v44, %v12544_v10 }
0x33ad   :  { %9192 = vmatmul.mubr.msk.f32.vlgmr.msra.gmra.mrb[60].mxu0 %vm65_vm1, %v12767_v47 }
0x33ae   :  { %10954 = vmatpush3.bf16.msra.mxu0 %v11623_v37  ;;  %9261 = vmatprep.mubr.msk.f32.mxu0 %vm11482_vm0, %v11483_v1 }
0x33af   :  { %10955 = vmatprep.subr.bf16.mxu0 %v11481_v0 }
0x33b2   :  { %10957 = vmatpush3.bf16.msra.mxu0 %v11629_v39 }
0x33b3   :  { %10958 = vmatprep.subr.bf16.mxu0 %v11481_v0 }
0x33b6   :  { %10960 = vmatpush3.bf16.msra.mxu0 %v11639_v42 }
0x33b7   :  { %10961 = vmatprep.subr.bf16.mxu0 %v11481_v0 }
0x33ba   :  { %10963 = vmatpush3.bf16.msra.mxu0 %v11649_v45 }
0x33bb   :  { %10964 = vmatprep.subr.bf16.mxu0 %v11481_v0 }
0x33be   :  { %10966 = vmatpush3.bf16.msra.mxu0 %v11672_v53 }
0x33bf   :  { %10967 = vmatprep.subr.bf16.mxu0 %v11481_v0 }
0x33c2   :  { %10969 = vmatpush3.bf16.msra.mxu0 %v11682_v56 }
0x33c3   :  { %10970 = vmatprep.subr.bf16.mxu0 %v11481_v0 }
0x33c6   :  { %10972 = vmatpush3.bf16.msra.mxu0 %v11691_v59 }
0x33c7   :  { %10973 = vmatprep.subr.bf16.mxu0 %v11481_v0 }
0x33ca   :  { %10975 = vmatpush3.bf16.msra.mxu0 %v11701_v62 }
0x33cb   :  { %10982 = vmatprep.subr.bf16.mxu0 %v11481_v0 }
0x3480   :  { %v4627_v10 = vpop.f32.mrb[60].mxu0 }
0x3481   :  { %v4628_v48 = vadd.f32 %v12684_v2, %v4627_v10  ;;  %v9193_v49 = vpop.f32.mrb[61].mxu0 }
0x3483   :  { %v4631_v51 = vmax.f32 %v4628_v48, 0.0 }
0x3485   :  { %9227 = vmatmul.mubr.f32.vlgmr.msra.gmra.mrb[60].mxu1 %v4631_v51 }
0x3486   :  { %10978 = vmatpush3.bf16.msra.mxu1 %v11564_v5  ;;  %9272 = vmatprep.mubr.msk.f32.mxu1 %vm11482_vm0, %v11483_v1 }
0x3487   :  { %10979 = vmatprep.subr.bf16.mxu1 %v11481_v0 }
0x348a   :  { %10981 = vmatpush3.bf16.msra.mxu1 %v11571_v12 }
0x348b   :  { %11006 = vmatprep.subr.bf16.mxu1 %v11481_v0 }
0x3558   :  { %v4698_v52 = vpop.f32.mrb[60].mxu1 }
0x3559   :  { %v4699_v54 = vadd.f32 %v12696_v7, %v4698_v52  ;;  %v9228_v35 = vpop.f32.mrb[61].mxu1 }
0x355b   :  { %11407 = vtanh.f32 %v4699_v54 }
0x3565   :  { %v11408_v58 = vpop.eup %11407 }
0x3566   :  { %v4703_v61 = vmul.f32 %v11408_v58, %v12800_v55 }
0x3568   :  { %9262 = vmatmul.mubr.f32.vlgmr.msra.gmra.mrb[62].mxu0 %v4703_v61 }
0x3569   :  { %10984 = vmatpush3.bf16.msra.mxu0 %v11573_v13  ;;  %9307 = vmatprep.mubr.msk.f32.mxu0 %vm11482_vm0, %v11483_v1 }
0x356a   :  { %10985 = vmatprep.subr.bf16.mxu0 %v11481_v0 }
0x356d   :  { %10987 = vmatpush3.bf16.msra.mxu0 %v11577_v14 }
0x356e   :  { %10988 = vmatprep.subr.bf16.mxu0 %v11481_v0 }
0x3571   :  { %10990 = vmatpush3.bf16.msra.mxu0 %v11585_v18 }
0x3572   :  { %10991 = vmatprep.subr.bf16.mxu0 %v11481_v0 }
0x3575   :  { %10993 = vmatpush3.bf16.msra.mxu0 %v11593_v21 }
0x3576   :  { %10994 = vmatprep.subr.bf16.mxu0 %v11481_v0 }
0x3579   :  { %10996 = vmatpush3.bf16.msra.mxu0 %v11597_v24 }
0x357a   :  { %10997 = vmatprep.subr.bf16.mxu0 %v11481_v0 }
0x357d   :  { %10999 = vmatpush3.bf16.msra.mxu0 %v11601_v27 }
0x357e   :  { %11000 = vmatprep.subr.bf16.mxu0 %v11481_v0 }
0x3581   :  { %11002 = vmatpush3.bf16.msra.mxu0 %v11605_v30 }
0x3582   :  { %11003 = vmatprep.subr.bf16.mxu0 %v11481_v0 }
0x3585   :  { %11005 = vmatpush3.bf16.msra.mxu0 %v11610_v33 }
0x3586   :  { %11030 = vmatprep.subr.bf16.mxu0 %v11481_v0 }
0x363b   :  { %v12821_v41 = vpop.f32.mrb[62].mxu0 }
0x363c   :  { %v4774_v57 = vmul.f32 0.5, %v12821_v41  ;;  %v9263_v60 = vpop.f32.mrb[63].mxu0 }
0x363e   :  { %v4775_v4 = vadd.f32 %v4774_v57, %v12767_v47 }
0x3640   :  { %9273 = vmatmul.mubr.msk.f32.vlgmr.msra.gmra.mrb[62].mxu1 %vm65_vm1, %v4775_v4 }
0x3641   :  { %11008 = vmatpush3.bf16.msra.mxu1 %v11623_v37  ;;  %9342 = vmatprep.mubr.msk.f32.mxu1 %vm11482_vm0, %v11483_v1 }
0x3642   :  { %11009 = vmatprep.subr.bf16.mxu1 %v11481_v0 }
0x3645   :  { %11011 = vmatpush3.bf16.msra.mxu1 %v11629_v39 }
0x3646   :  { %11012 = vmatprep.subr.bf16.mxu1 %v11481_v0 }
0x3649   :  { %11014 = vmatpush3.bf16.msra.mxu1 %v11639_v42 }
0x364a   :  { %11015 = vmatprep.subr.bf16.mxu1 %v11481_v0 }
0x364d   :  { %11017 = vmatpush3.bf16.msra.mxu1 %v11649_v45 }
0x364e   :  { %11018 = vmatprep.subr.bf16.mxu1 %v11481_v0 }
0x3651   :  { %11020 = vmatpush3.bf16.msra.mxu1 %v11672_v53 }
0x3652   :  { %11021 = vmatprep.subr.bf16.mxu1 %v11481_v0 }
0x3655   :  { %11023 = vmatpush3.bf16.msra.mxu1 %v11682_v56 }
0x3656   :  { %11024 = vmatprep.subr.bf16.mxu1 %v11481_v0 }
0x3659   :  { %11026 = vmatpush3.bf16.msra.mxu1 %v11691_v59 }
0x365a   :  { %11027 = vmatprep.subr.bf16.mxu1 %v11481_v0 }
0x365d   :  { %11029 = vmatpush3.bf16.msra.mxu1 %v11701_v62 }
0x365e   :  { %11036 = vmatprep.subr.bf16.mxu1 %v11481_v0 }
0x3713   :  { %v4845_v8 = vpop.f32.mrb[62].mxu1 }
0x3714   :  { %v4846_v50 = vadd.f32 %v12684_v2, %v4845_v8  ;;  %v9274_v31 = vpop.f32.mrb[63].mxu1 }
0x3715   :  { %v4556_v31 = vadd.f32 %v12860_v15, %v12800_v55 }
0x3716   :  { %v4849_v9 = vmax.f32 %v4846_v50, 0.0 }
0x3718   :  { %9308 = vmatmul.mubr.f32.vlgmr.msra.gmra.mrb[64].mxu0 %v4849_v9  ;;  %v4557_v9 = vadd.f32 %v12854_v38, %v4556_v31 }
0x3719   :  { %11032 = vmatpush3.bf16.msra.mxu0 %v11564_v5  ;;  %9353 = vmatprep.mubr.msk.f32.mxu0 %vm11482_vm0, %v11483_v1 }
0x371a   :  { %11033 = vmatprep.subr.bf16.mxu0 %v11481_v0 }
0x371d   :  { %11035 = vmatpush3.bf16.msra.mxu0 %v11571_v12 }
0x371e   :  { %11060 = vmatprep.subr.bf16.mxu0 %v11481_v0 }
0x37eb   :  { %v4916_v16 = vpop.f32.mrb[64].mxu0 }
0x37ec   :  { %v4917_v63 = vadd.f32 %v12696_v7, %v4916_v16  ;;  %v9309_v19 = vpop.f32.mrb[65].mxu0 }
0x37ee   :  { %11409 = vtanh.f32 %v4917_v63 }
0x37f8   :  { %v11410_v23 = vpop.eup %11409 }
0x37f9   :  { %v4921_v26 = vmul.f32 %v11410_v23, %v4555_v6 }
0x37fb   :  { %9343 = vmatmul.mubr.f32.vlgmr.msra.gmra.mrb[64].mxu1 %v4921_v26 }
0x37fc   :  { %11038 = vmatpush3.bf16.msra.mxu1 %v11573_v13  ;;  %9388 = vmatprep.mubr.msk.f32.mxu1 %vm11482_vm0, %v11483_v1 }
0x37fd   :  { %11039 = vmatprep.subr.bf16.mxu1 %v11481_v0 }
0x3800   :  { %11041 = vmatpush3.bf16.msra.mxu1 %v11577_v14 }
0x3801   :  { %11042 = vmatprep.subr.bf16.mxu1 %v11481_v0 }
0x3804   :  { %11044 = vmatpush3.bf16.msra.mxu1 %v11585_v18 }
0x3805   :  { %11045 = vmatprep.subr.bf16.mxu1 %v11481_v0 }
0x3808   :  { %11047 = vmatpush3.bf16.msra.mxu1 %v11593_v21 }
0x3809   :  { %11048 = vmatprep.subr.bf16.mxu1 %v11481_v0 }
0x380c   :  { %11050 = vmatpush3.bf16.msra.mxu1 %v11597_v24 }
0x380d   :  { %11051 = vmatprep.subr.bf16.mxu1 %v11481_v0 }
0x3810   :  { %11053 = vmatpush3.bf16.msra.mxu1 %v11601_v27 }
0x3811   :  { %11054 = vmatprep.subr.bf16.mxu1 %v11481_v0 }
0x3814   :  { %11056 = vmatpush3.bf16.msra.mxu1 %v11605_v30 }
0x3815   :  { %11057 = vmatprep.subr.bf16.mxu1 %v11481_v0 }
0x3818   :  { %11059 = vmatpush3.bf16.msra.mxu1 %v11610_v33 }
0x3819   :  { %11084 = vmatprep.subr.bf16.mxu1 %v11481_v0 }
0x38ce   :  { %v4988_v17 = vpop.f32.mrb[64].mxu1 }
0x38cf   :  { %v4992_v34 = vmul.f32 0.5, %v4988_v17  ;;  %v5427_v46 = vmul.f32 2.0, %v4988_v17  ;;  %v9344_v29 = vpop.f32.mrb[65].mxu1 }
0x38d1   :  { %v4993_v32 = vadd.f32 %v4992_v34, %v12767_v47  ;;  %v5428_v36 = vadd.f32 %v5427_v46, %v12821_v41  ;;  %v13013_v34 = vld [vmem:[%s13195_s0 + $0x90] sm:$0xff] }
0x38d3   :  { %9354 = vmatmul.mubr.msk.f32.vlgmr.msra.gmra.mrb[66].mxu0 %vm65_vm1, %v4993_v32 }
0x38d4   :  { %11062 = vmatpush3.bf16.msra.mxu0 %v11623_v37  ;;  %9423 = vmatprep.mubr.msk.f32.mxu0 %vm11482_vm0, %v11483_v1 }
0x38d5   :  { %11063 = vmatprep.subr.bf16.mxu0 %v11481_v0 }
0x38d8   :  { %11065 = vmatpush3.bf16.msra.mxu0 %v11629_v39 }
0x38d9   :  { %11066 = vmatprep.subr.bf16.mxu0 %v11481_v0 }
0x38dc   :  { %11068 = vmatpush3.bf16.msra.mxu0 %v11639_v42 }
0x38dd   :  { %11069 = vmatprep.subr.bf16.mxu0 %v11481_v0 }
0x38e0   :  { %11071 = vmatpush3.bf16.msra.mxu0 %v11649_v45 }
0x38e1   :  { %11072 = vmatprep.subr.bf16.mxu0 %v11481_v0 }
0x38e4   :  { %11074 = vmatpush3.bf16.msra.mxu0 %v11672_v53 }
0x38e5   :  { %11075 = vmatprep.subr.bf16.mxu0 %v11481_v0 }
0x38e8   :  { %11077 = vmatpush3.bf16.msra.mxu0 %v11682_v56 }
0x38e9   :  { %11078 = vmatprep.subr.bf16.mxu0 %v11481_v0 }
0x38ec   :  { %11080 = vmatpush3.bf16.msra.mxu0 %v11691_v59 }
0x38ed   :  { %11081 = vmatprep.subr.bf16.mxu0 %v11481_v0 }
0x38f0   :  { %11083 = vmatpush3.bf16.msra.mxu0 %v11701_v62 }
0x38f1   :  { %11090 = vmatprep.subr.bf16.mxu0 %v11481_v0 }
0x39a6   :  { %v5063_v28 = vpop.f32.mrb[66].mxu0 }
0x39a7   :  { %v5064_v43 = vadd.f32 %v12684_v2, %v5063_v28  ;;  %v9355_v22 = vpop.f32.mrb[67].mxu0 }
0x39a9   :  { %v5067_v3 = vmax.f32 %v5064_v43, 0.0 }
0x39ab   :  { %9389 = vmatmul.mubr.f32.vlgmr.msra.gmra.mrb[66].mxu1 %v5067_v3 }
0x39ac   :  { %11086 = vmatpush3.bf16.msra.mxu1 %v11564_v5  ;;  %9434 = vmatprep.mubr.msk.f32.mxu1 %vm11482_vm0, %v11483_v1 }
0x39ad   :  { %11087 = vmatprep.subr.bf16.mxu1 %v11481_v0 }
0x39b0   :  { %11089 = vmatpush3.bf16.msra.mxu1 %v11571_v12 }
0x39b1   :  { %11114 = vmatprep.subr.bf16.mxu1 %v11481_v0 }
0x3a7e   :  { %v5134_v40 = vpop.f32.mrb[66].mxu1 }
0x3a7f   :  { %v5135_v44 = vadd.f32 %v12696_v7, %v5134_v40  ;;  %v9390_v10 = vpop.f32.mrb[67].mxu1 }
0x3a80   :  { %v13067_v10 = vld [vmem:[%s13195_s0 + $0xa0] sm:$0xff] }
0x3a81   :  { %11411 = vtanh.f32 %v5135_v44 }
0x3a8b   :  { %v11412_v48 = vpop.eup %11411 }
0x3a8c   :  { %v5139_v49 = vmul.f32 %v11412_v48, %v4555_v6  ;;  %v5438_v48 = vmul.f32 0.5, %v13067_v10 }
0x3a8e   :  { %9424 = vmatmul.mubr.f32.vlgmr.msra.gmra.mrb[68].mxu0 %v5139_v49  ;;  %v13073_v49 = vld [vmem:[%s13195_s0 + $0x98] sm:$0xff] }
0x3a8f   :  { %11092 = vmatpush3.bf16.msra.mxu0 %v11573_v13  ;;  %9469 = vmatprep.mubr.msk.f32.mxu0 %vm11482_vm0, %v11483_v1 }
0x3a90   :  { %11093 = vmatprep.subr.bf16.mxu0 %v11481_v0 }
0x3a93   :  { %11095 = vmatpush3.bf16.msra.mxu0 %v11577_v14 }
0x3a94   :  { %11096 = vmatprep.subr.bf16.mxu0 %v11481_v0 }
0x3a97   :  { %11098 = vmatpush3.bf16.msra.mxu0 %v11585_v18 }
0x3a98   :  { %11099 = vmatprep.subr.bf16.mxu0 %v11481_v0 }
0x3a9b   :  { %11101 = vmatpush3.bf16.msra.mxu0 %v11593_v21 }
0x3a9c   :  { %11102 = vmatprep.subr.bf16.mxu0 %v11481_v0 }
0x3a9f   :  { %11104 = vmatpush3.bf16.msra.mxu0 %v11597_v24 }
0x3aa0   :  { %11105 = vmatprep.subr.bf16.mxu0 %v11481_v0 }
0x3aa3   :  { %11107 = vmatpush3.bf16.msra.mxu0 %v11601_v27 }
0x3aa4   :  { %11108 = vmatprep.subr.bf16.mxu0 %v11481_v0 }
0x3aa7   :  { %11110 = vmatpush3.bf16.msra.mxu0 %v11605_v30 }
0x3aa8   :  { %11111 = vmatprep.subr.bf16.mxu0 %v11481_v0 }
0x3aab   :  { %11113 = vmatpush3.bf16.msra.mxu0 %v11610_v33 }
0x3aac   :  { %11138 = vmatprep.subr.bf16.mxu0 %v11481_v0 }
0x3b61   :  { %v5206_v51 = vpop.f32.mrb[68].mxu0 }
0x3b62   :  { %v5210_v52 = vadd.f32 %v5206_v51, %v12767_v47  ;;  %v5429_v54 = vmul.f32 2.0, %v5206_v51  ;;  %v9425_v35 = vpop.f32.mrb[69].mxu0 }
0x3b63   :  { %v5439_v35 = vadd.f32 %v13073_v49, %v5438_v48 }
0x3b64   :  { %9435 = vmatmul.mubr.msk.f32.vlgmr.msra.gmra.mrb[68].mxu1 %vm65_vm1, %v5210_v52  ;;  %v5430_v58 = vadd.f32 %v5429_v54, %v5428_v36 }
0x3b65   :  { %11116 = vmatpush3.bf16.msra.mxu1 %v11623_v37  ;;  %9504 = vmatprep.mubr.msk.f32.mxu1 %vm11482_vm0, %v11483_v1 }
0x3b66   :  { %11117 = vmatprep.subr.bf16.mxu1 %v11481_v0 }
0x3b69   :  { %11119 = vmatpush3.bf16.msra.mxu1 %v11629_v39 }
0x3b6a   :  { %11120 = vmatprep.subr.bf16.mxu1 %v11481_v0 }
0x3b6d   :  { %11122 = vmatpush3.bf16.msra.mxu1 %v11639_v42 }
0x3b6e   :  { %11123 = vmatprep.subr.bf16.mxu1 %v11481_v0 }
0x3b71   :  { %11125 = vmatpush3.bf16.msra.mxu1 %v11649_v45 }
0x3b72   :  { %11126 = vmatprep.subr.bf16.mxu1 %v11481_v0 }
0x3b75   :  { %11128 = vmatpush3.bf16.msra.mxu1 %v11672_v53 }
0x3b76   :  { %11129 = vmatprep.subr.bf16.mxu1 %v11481_v0 }
0x3b79   :  { %11131 = vmatpush3.bf16.msra.mxu1 %v11682_v56 }
0x3b7a   :  { %11132 = vmatprep.subr.bf16.mxu1 %v11481_v0 }
0x3b7d   :  { %11134 = vmatpush3.bf16.msra.mxu1 %v11691_v59 }
0x3b7e   :  { %11135 = vmatprep.subr.bf16.mxu1 %v11481_v0 }
0x3b81   :  { %11137 = vmatpush3.bf16.msra.mxu1 %v11701_v62 }
0x3b82   :  { %11144 = vmatprep.subr.bf16.mxu1 %v11481_v0 }
0x3c37   :  { %v5280_v61 = vpop.f32.mrb[68].mxu1 }
0x3c38   :  { %v5281_v41 = vadd.f32 %v12684_v2, %v5280_v61  ;;  %v9436_v57 = vpop.f32.mrb[69].mxu1 }
0x3c3a   :  { %v5284_v60 = vmax.f32 %v5281_v41, 0.0 }
0x3c3c   :  { %9470 = vmatmul.mubr.f32.vlgmr.msra.gmra.mrb[70].mxu0 %v5284_v60 }
0x3c3d   :  { %11140 = vmatpush3.bf16.msra.mxu0 %v11564_v5  ;;  %9515 = vmatprep.mubr.msk.f32.mxu0 %vm11482_vm0, %v11483_v1 }
0x3c3e   :  { %11141 = vmatprep.subr.bf16.mxu0 %v11481_v0 }
0x3c41   :  { %11143 = vmatpush3.bf16.msra.mxu0 %v11571_v12 }
0x3c42   :  { %11168 = vmatprep.subr.bf16.mxu0 %v11481_v0 }
0x3d0f   :  { %v5351_v4 = vpop.f32.mrb[70].mxu0 }
0x3d10   :  { %v5352_v8 = vadd.f32 %v12696_v7, %v5351_v4  ;;  %v9471_v50 = vpop.f32.mrb[71].mxu0 }
0x3d12   :  { %11413 = vtanh.f32 %v5352_v8 }
0x3d1c   :  { %v11414_v11 = vpop.eup %11413 }
0x3d1d   :  { %v5356_v16 = vmul.f32 %v11414_v11, %v4557_v9 }
0x3d1f   :  { %9505 = vmatmul.mubr.f32.vlgmr.msra.gmra.mrb[70].mxu1 %v5356_v16 }
0x3d20   :  { %11146 = vmatpush3.bf16.msra.mxu1 %v11573_v13  ;;  %9550 = vmatprep.mubr.msk.f32.mxu1 %vm11482_vm0, %v11483_v1 }
0x3d21   :  { %11147 = vmatprep.subr.bf16.mxu1 %v11481_v0 }
0x3d24   :  { %11149 = vmatpush3.bf16.msra.mxu1 %v11577_v14 }
0x3d25   :  { %11150 = vmatprep.subr.bf16.mxu1 %v11481_v0 }
0x3d28   :  { %11152 = vmatpush3.bf16.msra.mxu1 %v11585_v18 }
0x3d29   :  { %11153 = vmatprep.subr.bf16.mxu1 %v11481_v0 }
0x3d2c   :  { %11155 = vmatpush3.bf16.msra.mxu1 %v11593_v21 }
0x3d2d   :  { %11156 = vmatprep.subr.bf16.mxu1 %v11481_v0 }
0x3d30   :  { %11158 = vmatpush3.bf16.msra.mxu1 %v11597_v24 }
0x3d31   :  { %11159 = vmatprep.subr.bf16.mxu1 %v11481_v0 }
0x3d34   :  { %11161 = vmatpush3.bf16.msra.mxu1 %v11601_v27 }
0x3d35   :  { %11162 = vmatprep.subr.bf16.mxu1 %v11481_v0 }
0x3d38   :  { %11164 = vmatpush3.bf16.msra.mxu1 %v11605_v30 }
0x3d39   :  { %11165 = vmatprep.subr.bf16.mxu1 %v11481_v0 }
0x3d3c   :  { %11167 = vmatpush3.bf16.msra.mxu1 %v11610_v33 }
0x3d3d   :  { %11192 = vmatprep.subr.bf16.mxu1 %v11481_v0 }
0x3df2   :  { %v5423_v55 = vpop.f32.mrb[70].mxu1 }
0x3df3   :  { %v5431_v38 = vadd.f32 %v5430_v58, %v5423_v55  ;;  %v9506_v15 = vpop.f32.mrb[71].mxu1  ;;  %v5440_v58 = vmul.f32 0.5, %v5439_v35 }
0x3df5   :  { %v5432_v63 = vmul.f32 0.16666667, %v5431_v38  ;;  %v5441_v61 = vadd.f32 %v13013_v34, %v5440_v58 }
0x3df7   :  { %v12980_v19 = vadd.f32 %v5432_v63, %v12767_v47 }
0x3df9   :  { %9516 = vmatmul.mubr.msk.f32.vlgmr.msra.gmra.mrb[72].mxu0 %vm65_vm1, %v12980_v19 }
0x3dfa   :  { %11170 = vmatpush3.bf16.msra.mxu0 %v11623_v37  ;;  %9585 = vmatprep.mubr.msk.f32.mxu0 %vm11482_vm0, %v11483_v1 }
0x3dfb   :  { %11171 = vmatprep.subr.bf16.mxu0 %v11481_v0 }
0x3dfe   :  { %11173 = vmatpush3.bf16.msra.mxu0 %v11629_v39 }
0x3dff   :  { %11174 = vmatprep.subr.bf16.mxu0 %v11481_v0 }
0x3e02   :  { %11176 = vmatpush3.bf16.msra.mxu0 %v11639_v42 }
0x3e03   :  { %11177 = vmatprep.subr.bf16.mxu0 %v11481_v0 }
0x3e06   :  { %11179 = vmatpush3.bf16.msra.mxu0 %v11649_v45 }
0x3e07   :  { %11180 = vmatprep.subr.bf16.mxu0 %v11481_v0 }
0x3e0a   :  { %11182 = vmatpush3.bf16.msra.mxu0 %v11672_v53 }
0x3e0b   :  { %11183 = vmatprep.subr.bf16.mxu0 %v11481_v0 }
0x3e0e   :  { %11185 = vmatpush3.bf16.msra.mxu0 %v11682_v56 }
0x3e0f   :  { %11186 = vmatprep.subr.bf16.mxu0 %v11481_v0 }
0x3e12   :  { %11188 = vmatpush3.bf16.msra.mxu0 %v11691_v59 }
0x3e13   :  { %11189 = vmatprep.subr.bf16.mxu0 %v11481_v0 }
0x3e16   :  { %11191 = vmatpush3.bf16.msra.mxu0 %v11701_v62 }
0x3e17   :  { %11198 = vmatprep.subr.bf16.mxu0 %v11481_v0 }
0x3ecc   :  { %v5513_v47 = vpop.f32.mrb[72].mxu0 }
0x3ecd   :  { %v5514_v20 = vadd.f32 %v12684_v2, %v5513_v47  ;;  %v9517_v25 = vpop.f32.mrb[73].mxu0 }
0x3ecf   :  { %v5517_v6 = vmax.f32 %v5514_v20, 0.0 }
0x3ed1   :  { %9551 = vmatmul.mubr.f32.vlgmr.msra.gmra.mrb[72].mxu1 %v5517_v6  ;;  %v6326_v6 = vld [vmem:[%s13202_s7 + $0x10] sm:$0xff] }
0x3ed2   :  { %11194 = vmatpush3.bf16.msra.mxu1 %v11564_v5  ;;  %9596 = vmatprep.mubr.msk.f32.mxu1 %vm11482_vm0, %v11483_v1 }
0x3ed3   :  { %11195 = vmatprep.subr.bf16.mxu1 %v11481_v0 }
0x3ed6   :  { %11197 = vmatpush3.bf16.msra.mxu1 %v11571_v12 }
0x3ed7   :  { %11222 = vmatprep.subr.bf16.mxu1 %v11481_v0 }
0x3fa4   :  { %v5584_v23 = vpop.f32.mrb[72].mxu1 }
0x3fa5   :  { %v5585_v26 = vadd.f32 %v12696_v7, %v5584_v23  ;;  %v9552_v17 = vpop.f32.mrb[73].mxu1  ;;  %v6327_v23 = vld [vmem:[%s13202_s7 + $0x18] sm:$0xff] }
0x3fa7   :  { %11415 = vtanh.f32 %v5585_v26  ;;  %v11358_v26 = vpack.c.bf16 %v6327_v23, %v6326_v6 }
0x3fb1   :  { %v11416_v46 = vpop.eup %11415 }
0x3fb2   :  { %v5589_v29 = vmul.f32 %v11416_v46, %v13013_v34 }
0x3fb4   :  { %9586 = vmatmul.mubr.f32.vlgmr.msra.gmra.mrb[74].mxu0 %v5589_v29 }
0x3fb5   :  { %11200 = vmatpush3.bf16.msra.mxu0 %v11573_v13  ;;  %9631 = vmatprep.mubr.msk.f32.mxu0 %vm11482_vm0, %v11483_v1 }
0x3fb6   :  { %11201 = vmatprep.subr.bf16.mxu0 %v11481_v0 }
0x3fb9   :  { %11203 = vmatpush3.bf16.msra.mxu0 %v11577_v14 }
0x3fba   :  { %11204 = vmatprep.subr.bf16.mxu0 %v11481_v0 }
0x3fbd   :  { %11206 = vmatpush3.bf16.msra.mxu0 %v11585_v18 }
0x3fbe   :  { %11207 = vmatprep.subr.bf16.mxu0 %v11481_v0 }
0x3fc1   :  { %11209 = vmatpush3.bf16.msra.mxu0 %v11593_v21 }
0x3fc2   :  { %11210 = vmatprep.subr.bf16.mxu0 %v11481_v0 }
0x3fc5   :  { %11212 = vmatpush3.bf16.msra.mxu0 %v11597_v24 }
0x3fc6   :  { %11213 = vmatprep.subr.bf16.mxu0 %v11481_v0 }
0x3fc9   :  { %11215 = vmatpush3.bf16.msra.mxu0 %v11601_v27 }
0x3fca   :  { %11216 = vmatprep.subr.bf16.mxu0 %v11481_v0 }
0x3fcd   :  { %11218 = vmatpush3.bf16.msra.mxu0 %v11605_v30 }
0x3fce   :  { %11219 = vmatprep.subr.bf16.mxu0 %v11481_v0 }
0x3fd1   :  { %11221 = vmatpush3.bf16.msra.mxu0 %v11610_v33 }
0x3fd2   :  { %11246 = vmatprep.subr.bf16.mxu0 %v11481_v0 }
0x4087   :  { %v13034_v32 = vpop.f32.mrb[74].mxu0 }
0x4088   :  { %v5660_v36 = vmul.f32 0.5, %v13034_v32  ;;  %v9587_v28 = vpop.f32.mrb[75].mxu0 }
0x408a   :  { %v5661_v43 = vadd.f32 %v5660_v36, %v12980_v19 }
0x408c   :  { %9597 = vmatmul.mubr.msk.f32.vlgmr.msra.gmra.mrb[74].mxu1 %vm65_vm1, %v5661_v43 }
0x408d   :  { %11224 = vmatpush3.bf16.msra.mxu1 %v11623_v37  ;;  %9666 = vmatprep.mubr.msk.f32.mxu1 %vm11482_vm0, %v11483_v1 }
0x408e   :  { %11225 = vmatprep.subr.bf16.mxu1 %v11481_v0 }
0x4091   :  { %11227 = vmatpush3.bf16.msra.mxu1 %v11629_v39 }
0x4092   :  { %11228 = vmatprep.subr.bf16.mxu1 %v11481_v0 }
0x4095   :  { %11230 = vmatpush3.bf16.msra.mxu1 %v11639_v42 }
0x4096   :  { %11231 = vmatprep.subr.bf16.mxu1 %v11481_v0 }
0x4099   :  { %11233 = vmatpush3.bf16.msra.mxu1 %v11649_v45 }
0x409a   :  { %11234 = vmatprep.subr.bf16.mxu1 %v11481_v0 }
0x409d   :  { %11236 = vmatpush3.bf16.msra.mxu1 %v11672_v53 }
0x409e   :  { %11237 = vmatprep.subr.bf16.mxu1 %v11481_v0 }
0x40a1   :  { %11239 = vmatpush3.bf16.msra.mxu1 %v11682_v56 }
0x40a2   :  { %11240 = vmatprep.subr.bf16.mxu1 %v11481_v0 }
0x40a5   :  { %11242 = vmatpush3.bf16.msra.mxu1 %v11691_v59 }
0x40a6   :  { %11243 = vmatprep.subr.bf16.mxu1 %v11481_v0 }
0x40a9   :  { %11245 = vmatpush3.bf16.msra.mxu1 %v11701_v62 }
0x40aa   :  { %11252 = vmatprep.subr.bf16.mxu1 %v11481_v0 }
0x415f   :  { %v5731_v22 = vpop.f32.mrb[74].mxu1 }
0x4160   :  { %v5732_v3 = vadd.f32 %v12684_v2, %v5731_v22  ;;  %v9598_v40 = vpop.f32.mrb[75].mxu1 }
0x4162   :  { %v5735_v44 = vmax.f32 %v5732_v3, 0.0 }
0x4164   :  { %9632 = vmatmul.mubr.f32.vlgmr.msra.gmra.mrb[76].mxu0 %v5735_v44 }
0x4165   :  { %11248 = vmatpush3.bf16.msra.mxu0 %v11564_v5  ;;  %9677 = vmatprep.mubr.msk.f32.mxu0 %vm11482_vm0, %v11483_v1 }
0x4166   :  { %11249 = vmatprep.subr.bf16.mxu0 %v11481_v0 }
0x4169   :  { %11251 = vmatpush3.bf16.msra.mxu0 %v11571_v12 }
0x416a   :  { %11276 = vmatprep.subr.bf16.mxu0 %v11481_v0 }
0x4237   :  { %v5802_v51 = vpop.f32.mrb[76].mxu0 }
0x4238   :  { %v5803_v52 = vadd.f32 %v12696_v7, %v5802_v51  ;;  %v9633_v54 = vpop.f32.mrb[77].mxu0 }
0x423a   :  { %11417 = vtanh.f32 %v5803_v52 }
0x4244   :  { %v11418_v41 = vpop.eup %11417 }
0x4245   :  { %v5807_v57 = vmul.f32 %v11418_v41, %v5441_v61 }
0x4247   :  { %9667 = vmatmul.mubr.f32.vlgmr.msra.gmra.mrb[76].mxu1 %v5807_v57 }
0x4248   :  { %11254 = vmatpush3.bf16.msra.mxu1 %v11573_v13  ;;  %9712 = vmatprep.mubr.msk.f32.mxu1 %vm11482_vm0, %v11483_v1 }
0x4249   :  { %11255 = vmatprep.subr.bf16.mxu1 %v11481_v0 }
0x424c   :  { %11257 = vmatpush3.bf16.msra.mxu1 %v11577_v14 }
0x424d   :  { %11258 = vmatprep.subr.bf16.mxu1 %v11481_v0 }
0x4250   :  { %11260 = vmatpush3.bf16.msra.mxu1 %v11585_v18 }
0x4251   :  { %11261 = vmatprep.subr.bf16.mxu1 %v11481_v0 }
0x4254   :  { %11263 = vmatpush3.bf16.msra.mxu1 %v11593_v21 }
0x4255   :  { %11264 = vmatprep.subr.bf16.mxu1 %v11481_v0 }
0x4258   :  { %11266 = vmatpush3.bf16.msra.mxu1 %v11597_v24 }
0x4259   :  { %11267 = vmatprep.subr.bf16.mxu1 %v11481_v0 }
0x425c   :  { %11269 = vmatpush3.bf16.msra.mxu1 %v11601_v27 }
0x425d   :  { %11270 = vmatprep.subr.bf16.mxu1 %v11481_v0 }
0x4260   :  { %11272 = vmatpush3.bf16.msra.mxu1 %v11605_v30 }
0x4261   :  { %11273 = vmatprep.subr.bf16.mxu1 %v11481_v0 }
0x4264   :  { %11275 = vmatpush3.bf16.msra.mxu1 %v11610_v33 }
0x4265   :  { %11300 = vmatprep.subr.bf16.mxu1 %v11481_v0 }
0x431a   :  { %v5874_v60 = vpop.f32.mrb[76].mxu1 }
0x431b   :  { %v5878_v4 = vmul.f32 0.5, %v5874_v60  ;;  %v6313_v8 = vmul.f32 2.0, %v5874_v60  ;;  %v9668_v50 = vpop.f32.mrb[77].mxu1 }
0x431d   :  { %v5879_v31 = vadd.f32 %v5878_v4, %v12980_v19  ;;  %v6314_v9 = vadd.f32 %v6313_v8, %v13034_v32 }
0x431f   :  { %9678 = vmatmul.mubr.msk.f32.vlgmr.msra.gmra.mrb[78].mxu0 %vm65_vm1, %v5879_v31 }
0x4320   :  { %11278 = vmatpush3.bf16.msra.mxu0 %v11623_v37  ;;  %9747 = vmatprep.mubr.msk.f32.mxu0 %vm11482_vm0, %v11483_v1 }
0x4321   :  { %11279 = vmatprep.subr.bf16.mxu0 %v11481_v0 }
0x4324   :  { %11281 = vmatpush3.bf16.msra.mxu0 %v11629_v39 }
0x4325   :  { %11282 = vmatprep.subr.bf16.mxu0 %v11481_v0 }
0x4328   :  { %11284 = vmatpush3.bf16.msra.mxu0 %v11639_v42 }
0x4329   :  { %11285 = vmatprep.subr.bf16.mxu0 %v11481_v0 }
0x432c   :  { %11287 = vmatpush3.bf16.msra.mxu0 %v11649_v45 }
0x432d   :  { %11288 = vmatprep.subr.bf16.mxu0 %v11481_v0 }
0x4330   :  { %11290 = vmatpush3.bf16.msra.mxu0 %v11672_v53 }
0x4331   :  { %11291 = vmatprep.subr.bf16.mxu0 %v11481_v0 }
0x4334   :  { %11293 = vmatpush3.bf16.msra.mxu0 %v11682_v56 }
0x4335   :  { %11294 = vmatprep.subr.bf16.mxu0 %v11481_v0 }
0x4338   :  { %11296 = vmatpush3.bf16.msra.mxu0 %v11691_v59 }
0x4339   :  { %11297 = vmatprep.subr.bf16.mxu0 %v11481_v0 }
0x433c   :  { %11299 = vmatpush3.bf16.msra.mxu0 %v11701_v62 }
0x433d   :  { %11306 = vmatprep.subr.bf16.mxu0 %v11481_v0 }
0x43f2   :  { %v5949_v11 = vpop.f32.mrb[78].mxu0 }
0x43f3   :  { %v5950_v16 = vadd.f32 %v12684_v2, %v5949_v11  ;;  %v9679_v55 = vpop.f32.mrb[79].mxu0 }
0x43f5   :  { %v5953_v38 = vmax.f32 %v5950_v16, 0.0 }
0x43f7   :  { %9713 = vmatmul.mubr.f32.vlgmr.msra.gmra.mrb[78].mxu1 %v5953_v38 }
0x43f8   :  { %11302 = vmatpush3.bf16.msra.mxu1 %v11564_v5  ;;  %9758 = vmatprep.mubr.msk.f32.mxu1 %vm11482_vm0, %v11483_v1 }
0x43f9   :  { %11303 = vmatprep.subr.bf16.mxu1 %v11481_v0 }
0x43fc   :  { %11305 = vmatpush3.bf16.msra.mxu1 %v11571_v12 }
0x43fd   :  { %11330 = vmatprep.subr.bf16.mxu1 %v11481_v0 }
0x44ca   :  { %v6020_v15 = vpop.f32.mrb[78].mxu1 }
0x44cb   :  { %v6021_v63 = vadd.f32 %v12696_v7, %v6020_v15  ;;  %v9714_v47 = vpop.f32.mrb[79].mxu1  ;;  %v6325_v7 = vld [vmem:[%s13202_s7 + $0x8] sm:$0xff] }
0x44cd   :  { %11419 = vtanh.f32 %v6021_v63 }
0x44d7   :  { %v11420_v2 = vpop.eup %11419 }
0x44d8   :  { %v6025_v20 = vmul.f32 %v11420_v2, %v5441_v61 }
0x44da   :  { %9748 = vmatmul.mubr.f32.vlgmr.msra.gmra.mrb[80].mxu0 %v6025_v20 }
0x44db   :  { %11308 = vmatpush3.bf16.msra.mxu0 %v11573_v13  ;;  %9793 = vmatprep.mubr.msk.f32.mxu0 %vm11482_vm0, %v11483_v1 }
0x44dc   :  { %11309 = vmatprep.subr.bf16.mxu0 %v11481_v0 }
0x44df   :  { %11311 = vmatpush3.bf16.msra.mxu0 %v11577_v14 }
0x44e0   :  { %11312 = vmatprep.subr.bf16.mxu0 %v11481_v0 }
0x44e3   :  { %11314 = vmatpush3.bf16.msra.mxu0 %v11585_v18 }
0x44e4   :  { %11315 = vmatprep.subr.bf16.mxu0 %v11481_v0 }
0x44e7   :  { %11317 = vmatpush3.bf16.msra.mxu0 %v11593_v21 }
0x44e8   :  { %11318 = vmatprep.subr.bf16.mxu0 %v11481_v0 }
0x44eb   :  { %11320 = vmatpush3.bf16.msra.mxu0 %v11597_v24  ;;  %v11427_v24 = vld [vmem:[%s13198_s3] ss:$0 sm:$0xff] }
0x44ec   :  { %11321 = vmatprep.subr.bf16.mxu0 %v11481_v0 }
0x44ef   :  { %11323 = vmatpush3.bf16.msra.mxu0 %v11601_v27 }
0x44f0   :  { %11324 = vmatprep.subr.bf16.mxu0 %v11481_v0 }
0x44f3   :  { %11326 = vmatpush3.bf16.msra.mxu0 %v11605_v30 }
0x44f4   :  { %11327 = vmatprep.subr.bf16.mxu0 %v11481_v0 }
0x44f7   :  { %11329 = vmatpush3.bf16.msra.mxu0 %v11610_v33 }
0x44f8   :  { %11354 = vmatprep.subr.bf16.mxu0 %v11481_v0 }
0x45ad   :  { %v6092_v5 = vpop.f32.mrb[80].mxu0 }
0x45ae   :  { %v6096_v12 = vadd.f32 %v6092_v5, %v12980_v19  ;;  %v6315_v13 = vmul.f32 2.0, %v6092_v5  ;;  %v9749_v14 = vpop.f32.mrb[81].mxu0 }
0x45b0   :  { %9759 = vmatmul.mubr.msk.f32.vlgmr.msra.gmra.mrb[80].mxu1 %vm65_vm1, %v6096_v12  ;;  %v6316_v18 = vadd.f32 %v6315_v13, %v6314_v9 }
0x45b1   :  { %11332 = vmatpush3.bf16.msra.mxu1 %v11623_v37  ;;  %9828 = vmatprep.mubr.msk.f32.mxu1 %vm11482_vm0, %v11483_v1 }
0x45b2   :  { %11333 = vmatprep.subr.bf16.mxu1 %v11481_v0 }
0x45b5   :  { %11335 = vmatpush3.bf16.msra.mxu1 %v11629_v39  ;;  %v11428_v39 = vld [vmem:[%s13200_s5] ss:$0 sm:$0xff] }
0x45b6   :  { %11336 = vmatprep.subr.bf16.mxu1 %v11481_v0 }
0x45b9   :  { %11338 = vmatpush3.bf16.msra.mxu1 %v11639_v42 }
0x45ba   :  { %11339 = vmatprep.subr.bf16.mxu1 %v11481_v0 }
0x45bd   :  { %11341 = vmatpush3.bf16.msra.mxu1 %v11649_v45 }
0x45be   :  { %11342 = vmatprep.subr.bf16.mxu1 %v11481_v0 }
0x45c1   :  { %11344 = vmatpush3.bf16.msra.mxu1 %v11672_v53  ;;  %v5442_v53 = vadd.f32 %v13073_v49, %v13013_v34 }
0x45c2   :  { %11345 = vmatprep.subr.bf16.mxu1 %v11481_v0 }
0x45c5   :  { %11347 = vmatpush3.bf16.msra.mxu1 %v11682_v56  ;;  %v5443_v56 = vadd.f32 %v13067_v10, %v5442_v53 }
0x45c6   :  { %11348 = vmatprep.subr.bf16.mxu1 %v11481_v0 }
0x45c9   :  { %11350 = vmatpush3.bf16.msra.mxu1 %v11691_v59 }
0x45ca   :  { %11351 = vmatprep.subr.bf16.mxu1 %v11481_v0 }
0x45cd   :  { %11353 = vmatpush3.bf16.msra.mxu1 %v11701_v62 }
0x4683   :  { %v6166_v21 = vpop.f32.mrb[80].mxu1 }
0x4684   :  { %v6167_v27 = vadd.f32 %v11427_v24, %v6166_v21  ;;  %v9760_v30 = vpop.f32.mrb[81].mxu1 }
0x4686   :  { %v6170_v33 = vmax.f32 %v6167_v27, 0.0 }
0x4688   :  { %9794 = vmatmul.mubr.f32.vlgmr.msra.gmra.mrb[82].mxu0 %v6170_v33 }
0x4689   :  { %9839 = vmatprep.mubr.msk.f32.mxu0 %vm11482_vm0, %v11483_v1  ;;  %v6324_v1 = vld [vmem:[%s13202_s7] sm:$0xff] }
0x468a   :  { %v11355_v25 = vpack.c.bf16 %v6325_v7, %v6324_v1 }
0x468c   :  { %11356 = vmatpush3.bf16.msra.mxu0 %v11355_v25 }
0x468d   :  { %11357 = vmatprep.subr.bf16.mxu0 %v11481_v0  ;;  %v6464_v0 = vld [vmem:[%s13203_s8] ss:$0 sm:$0xff] }
0x4690   :  { %11359 = vmatpush3.bf16.msra.mxu0 %v11358_v26 }
0x475b   :  { %v6237_v37 = vpop.f32.mrb[82].mxu0 }
0x475c   :  { %v6238_v42 = vadd.f32 %v11428_v39, %v6237_v37  ;;  %v9795_v45 = vpop.f32.mrb[83].mxu0 }
0x475e   :  { %11421 = vtanh.f32 %v6238_v42 }
0x4768   :  { %v11422_v59 = vpop.eup %11421 }
0x4769   :  { %v6242_v62 = vmul.f32 %v11422_v59, %v5443_v56 }
0x476b   :  { %9829 = vmatmul.mubr.f32.vlgmr.msra.gmra.mrb[82].mxu1 %v6242_v62 }
0x483e   :  { %v6309_v17 = vpop.f32.mrb[82].mxu1 }
0x483f   :  { %v6317_v34 = vadd.f32 %v6316_v18, %v6309_v17  ;;  %v9830_v46 = vpop.f32.mrb[83].mxu1 }
0x4841   :  { %v6318_v29 = vmul.f32 0.16666667, %v6317_v34 }
0x4843   :  { %v6319_v32 = vadd.f32 %v6318_v29, %v12980_v19 }
0x4845   :  { %6320 = vst.msk [vmem:[#allocation2] sm:$0xff] %vm65_vm1, %v6319_v32  ;;  %9840 = vmatmul.mubr.msk.f32.vlgmr.msra.gmra.mrb[84].mxu0 %vm65_vm1, %v6319_v32 }
0x4918   :  { %v6404_v36 = vpop.f32.mrb[84].mxu0 }
0x4919   :  { %v6405_v28 = vadd.f32 %v6464_v0, %v6404_v36  ;;  %v9841_v43 = vpop.f32.mrb[85].mxu0 }
0x491b   :  { %6409 = vst.msk [vmem:[%s13204_s9] sm:$0xff] %vm6408_vm2, %v6405_v28 }
0x491c   :  { %6414 = vsyncpa [#allocation4], 1 }
0x491d   :  { %6415 = vsyncpa [#allocation6], 1 }

</bundles_post_ra>
